<compile_context>
chip_gen: v7x
topology: tpu7x:2x2x1
jax: 0.10.0
libtpu: 0.0.40
codegen_flags: <defaults>
</compile_context>

<pallas_src>
import functools

import jax
import jax.numpy as jnp
import numpy as np
from jax.experimental import pallas as pl
from jax.experimental.pallas import tpu as pltpu

EPS = 1e-8


def _temporal_block_kernel(x_ref, w1_ref, wd_ref, w2_ref, gb_ref, alpha_ref,
                           o_ref, y_scr, *, kernel_size, dilation, padding,
                           mblk, matmul_dtype):
    C, Wb = x_ref.shape
    H = w1_ref.shape[0]
    K = Wb // mblk
    inv_n = 1.0 / float(H * K)          # gLN normalizes over (channels, time)

    md = matmul_dtype

    w1 = w1_ref[...]                    # [H, C]
    wd = wd_ref[...]                    # [H, ks]
    gb = gb_ref[...]                    # [H, 4] = (gamma1, beta1, gamma2, beta2)
    g1, b1 = gb[:, 0:1], gb[:, 1:2]
    g2, b2 = gb[:, 2:3], gb[:, 3:4]
    a1 = alpha_ref[0]                   # scalar PReLU slopes (SMEM)
    a2 = alpha_ref[1]

    # Depthwise taps: per-tap time shift, hoisted lane-edge masks (depend only
    # on the tap index), and the tap weight columns.
    shifts = [j * dilation - padding for j in range(kernel_size)]
    lanes = jax.lax.broadcasted_iota(jnp.int32, (1, K), 1)
    masks = [(lanes >= -s) & (lanes < K - s) for s in shifts]
    wcols = [wd[:, j:j + 1] for j in range(kernel_size)]

    # ---- 1x1 conv (B -> H), slab-wide MXU dot, + PReLU #1; park in scratch ----
    y = jnp.dot(w1.astype(md), x_ref[...].astype(md),
                preferred_element_type=jnp.float32)            # [H, Wb]
    y_scr[...] = jnp.where(y > 0, y, a1 * y)

    def gln(z, g, b):
        # One-pass stats (f32); rsqrt folded into gamma -> one FMA per element.
        ssum = jnp.sum(z)
        ssq = jnp.sum(z * z)
        mean = ssum * inv_n
        var = ssq * inv_n - mean * mean
        r = jax.lax.rsqrt(var + EPS)
        scale = g * r                                          # [H, 1]
        return z * scale + (b - mean * scale)

    # ---- per-sample middle section: gLN -> depthwise -> PReLU -> gLN ----
    def body(m, carry):
        off = pl.multiple_of(m * K, 128)
        ym = y_scr[:, pl.ds(off, K)]                           # [H, K]
        ym = gln(ym, g1, b1)

        # depthwise dilated conv (groups=H, stride=1): roll on the XLU slot,
        # select on the VPU; fully register-resident FMAs.
        acc = None
        for j in range(kernel_size):
            s = shifts[j]
            if s == 0:
                zj = ym
            else:
                zj = jnp.where(masks[j],
                               pltpu.roll(ym, (-s) % K, axis=1),
                               0.0)
            term = wcols[j] * zj
            acc = term if acc is None else acc + term
        ym = acc

        ym = jnp.where(ym > 0, ym, a2 * ym)                    # PReLU #2
        ym = gln(ym, g2, b2)
        y_scr[:, pl.ds(off, K)] = ym
        return carry

    jax.lax.fori_loop(0, mblk, body, 0, unroll=True)

    # ---- pointwise conv (H -> B), slab-wide, + residual; one lane-dense store ----
    out = jnp.dot(w2_ref[...].astype(md), y_scr[...].astype(md),
                  preferred_element_type=jnp.float32)          # [C, Wb]
    o_ref[...] = out + x_ref[...]


def _pick_mblk(M, C, H, K, vmem_budget_bytes=8 << 20):
    """Largest divisor of M under a VMEM budget, keeping the grid >= 2 (v7x)."""
    # Per-sample bytes in one grid step: x/out tiles (double-buffered by the
    # pipeline) + the f32 scratch slab.
    per_sample = K * 4 * (2 * 2 * C + H)
    cap = max(1, int(vmem_budget_bytes // max(per_sample, 1)))
    if M > 1:
        cap = min(cap, M // 2)   # grid stays >= 2 so both v7x TensorCores work
    cap = min(cap, M)
    mblk = 1
    for d in range(1, cap + 1):
        if M % d == 0:
            mblk = d
    return mblk


def temporal_block(x, params, *, kernel_size, dilation, padding,
                   matmul_dtype=jnp.float32):
    M, C, K = x.shape
    H = params["w1"].shape[0]
    assert K % 128 == 0, "lane-dense design requires K to be a multiple of 128"
    assert padding < K and (kernel_size - 1) * dilation - padding < K, \
        "roll+mask depthwise requires |shift| < K"

    mblk = _pick_mblk(M, C, H, K)
    Wb = mblk * K

    # Wrapper-side layout plumbing (done once in XLA, outside the kernel):
    # present the batch lane-dense as [C, M*K].
    x2 = jnp.transpose(x, (1, 0, 2)).reshape(C, M * K)
    gb = jnp.concatenate(
        [params["g1"], params["b1"], params["g2"], params["b2"]], axis=1)  # (H,4)
    alphas = jnp.concatenate([params["a1"], params["a2"]])                 # (2,)

    kern = functools.partial(
        _temporal_block_kernel,
        kernel_size=kernel_size, dilation=dilation, padding=padding,
        mblk=mblk, matmul_dtype=matmul_dtype)

    const2 = lambda g: (0, 0)  # noqa: E731  (weights: same block every step)
    smem = pl.BlockSpec(memory_space=pltpu.MemorySpace.SMEM)

    out2 = pl.pallas_call(
        kern,
        out_shape=jax.ShapeDtypeStruct((C, M * K), jnp.float32),
        grid=(M // mblk,),
        in_specs=[
            pl.BlockSpec((C, Wb), lambda g: (0, g)),   # x slab (lane-dense)
            pl.BlockSpec((H, C), const2),              # w1 (1x1 conv B->H)
            pl.BlockSpec((H, kernel_size), const2),    # depthwise weights
            pl.BlockSpec((C, H), const2),              # w2 (pointwise H->B)
            pl.BlockSpec((H, 4), const2),              # gLN gammas/betas
            smem,                                      # PReLU slopes (scalars)
        ],
        out_specs=pl.BlockSpec((C, Wb), lambda g: (0, g)),
        scratch_shapes=[pltpu.VMEM((H, Wb), jnp.float32)],
        compiler_params=pltpu.CompilerParams(
            dimension_semantics=("parallel",),
            vmem_limit_bytes=32 * 1024 * 1024),
    )(x2, params["w1"], params["wd"], params["w2"], gb, alphas)

    return jnp.transpose(out2.reshape(C, M, K), (1, 0, 2))


def temporal_block_ref(x, p, *, kernel_size, dilation, padding):
    """Pure-JAX reference matching the PyTorch module semantics."""
    M, C, K = x.shape
    y = jnp.einsum("hc,mck->mhk", p["w1"], x)
    y = jnp.where(y > 0, y, p["a1"][0] * y)
    mean = jnp.mean(y, axis=(1, 2), keepdims=True)
    var = jnp.mean((y - mean) ** 2, axis=(1, 2), keepdims=True)
    y = p["g1"][None] * (y - mean) / jnp.sqrt(var + EPS) + p["b1"][None]

    ypad = jnp.pad(y, ((0, 0), (0, 0), (padding, padding)))
    acc = jnp.zeros_like(y)
    for j in range(kernel_size):
        off = j * dilation
        acc = acc + p["wd"][None, :, j:j + 1] * ypad[:, :, off:off + K]
    y = acc

    y = jnp.where(y > 0, y, p["a2"][0] * y)
    mean2 = jnp.mean(y, axis=(1, 2), keepdims=True)
    var2 = jnp.mean((y - mean2) ** 2, axis=(1, 2), keepdims=True)
    y = p["g2"][None] * (y - mean2) / jnp.sqrt(var2 + EPS) + p["b2"][None]

    out = jnp.einsum("ch,mhk->mck", p["w2"], y)
    return out + x


if __name__ == "__main__":
    # Small shapes consistent with the module's forward contract.
    # K=128 keeps the lane (last) dim dense; mblk=8 samples per grid step,
    # grid=2 so both v7x TensorCores get work.
    M, B_CH, H, K = 16, 16, 32, 128            # batch, in_channels, hidden, seq
    KS, STRIDE, DILATION = 3, 1, 2
    PADDING = (KS - 1) * DILATION // 2         # non-causal: preserves length K

    key = jax.random.PRNGKey(0)
    k0, k1, k2, k3 = jax.random.split(key, 4)

    x = jax.random.normal(k0, (M, B_CH, K), jnp.float32)

    params = {
        # conv1x1 (B->H), depthwise (H, ks), pointwise (H->B) -- no biases
        "w1": 0.1 * jax.random.normal(k1, (H, B_CH), jnp.float32),
        "wd": 0.1 * jax.random.normal(k2, (H, KS), jnp.float32),
        "w2": 0.1 * jax.random.normal(k3, (B_CH, H), jnp.float32),
        # PReLU init (PyTorch default 0.25), scalar slopes kept in SMEM
        "a1": jnp.full((1,), 0.25, jnp.float32),
        "a2": jnp.full((1,), 0.25, jnp.float32),
        # gLN init: gamma=1, beta=0 (as in reset_parameters)
        "g1": jnp.ones((H, 1), jnp.float32),
        "b1": jnp.zeros((H, 1), jnp.float32),
        "g2": jnp.ones((H, 1), jnp.float32),
        "b2": jnp.zeros((H, 1), jnp.float32),
    }

    out = temporal_block(x, params, kernel_size=KS, dilation=DILATION,
                         padding=PADDING)
    out = jax.block_until_ready(out)

    ref = temporal_block_ref(x, params, kernel_size=KS, dilation=DILATION,
                             padding=PADDING)
    np.testing.assert_allclose(np.asarray(out), np.asarray(ref),
                               rtol=1e-4, atol=1e-4)
    print("KERNEL_OK")
</pallas_src>

<mosaic_0001>
module attributes {stable_mosaic.version = 11 : i64} {
  func.func @_temporal_block_kernel(%arg0: i32, %arg1: memref<16x1024xf32, #tpu.memory_space<vmem>>, %arg2: memref<32x16xf32, #tpu.memory_space<vmem>>, %arg3: memref<32x3xf32, #tpu.memory_space<vmem>>, %arg4: memref<16x32xf32, #tpu.memory_space<vmem>>, %arg5: memref<32x4xf32, #tpu.memory_space<vmem>>, %arg6: memref<2xf32, #tpu.memory_space<smem>>, %arg7: memref<16x1024xf32, #tpu.memory_space<vmem>>, %arg8: memref<32x1024xf32, #tpu.memory_space<vmem>>) attributes {dimension_semantics = [#tpu.dimension_semantics<parallel>], iteration_bounds = array<i64: 2>, scalar_prefetch = 0 : i64, scratch_operands = 1 : i64, tpu.core_type = #tpu.core_type<tc>, window_params = [{transform_indices = @transform_0, window_bounds = array<i64: 16, 1024>}, {pipeline_mode = #tpu.pipeline_mode<synchronous>, transform_indices = @transform_1, window_bounds = array<i64: 32, 16>}, {pipeline_mode = #tpu.pipeline_mode<synchronous>, transform_indices = @transform_2, window_bounds = array<i64: 32, 3>}, {pipeline_mode = #tpu.pipeline_mode<synchronous>, transform_indices = @transform_3, window_bounds = array<i64: 16, 32>}, {pipeline_mode = #tpu.pipeline_mode<synchronous>, transform_indices = @transform_4, window_bounds = array<i64: 32, 4>}, {transform_indices = @transform_5, window_bounds = array<i64: 2>}, {transform_indices = @transform_6, window_bounds = array<i64: 16, 1024>}]} {
    %c0 = arith.constant 0 : index
    %c0_0 = arith.constant 0 : index
    %0 = vector.load %arg2[%c0, %c0_0] : memref<32x16xf32, #tpu.memory_space<vmem>>, vector<32x16xf32>
    %c0_1 = arith.constant 0 : index
    %c0_2 = arith.constant 0 : index
    %1 = vector.load %arg3[%c0_1, %c0_2] : memref<32x3xf32, #tpu.memory_space<vmem>>, vector<32x3xf32>
    %c0_3 = arith.constant 0 : index
    %c0_4 = arith.constant 0 : index
    %2 = vector.load %arg5[%c0_3, %c0_4] : memref<32x4xf32, #tpu.memory_space<vmem>>, vector<32x4xf32>
    %3 = vector.extract_strided_slice %2 {offsets = [0, 0], sizes = [32, 1], strides = [1, 1]} : vector<32x4xf32> to vector<32x1xf32>
    %4 = vector.extract_strided_slice %2 {offsets = [0, 1], sizes = [32, 1], strides = [1, 1]} : vector<32x4xf32> to vector<32x1xf32>
    %5 = vector.extract_strided_slice %2 {offsets = [0, 2], sizes = [32, 1], strides = [1, 1]} : vector<32x4xf32> to vector<32x1xf32>
    %6 = vector.extract_strided_slice %2 {offsets = [0, 3], sizes = [32, 1], strides = [1, 1]} : vector<32x4xf32> to vector<32x1xf32>
    %c0_5 = arith.constant 0 : index
    %7 = memref.load %arg6[%c0_5] : memref<2xf32, #tpu.memory_space<smem>>
    %c1 = arith.constant 1 : index
    %8 = memref.load %arg6[%c1] : memref<2xf32, #tpu.memory_space<smem>>
    %9 = tpu.iota {dimensions = array<i32: 1>} : vector<1x128xi32>
    %c2_i32 = arith.constant 2 : i32
    %10 = vector.broadcast %c2_i32 : i32 to vector<1x128xi32>
    %11 = arith.cmpi sge, %9, %10 : vector<1x128xi32>
    %c130_i32 = arith.constant 130 : i32
    %12 = vector.broadcast %c130_i32 : i32 to vector<1x128xi32>
    %13 = arith.cmpi slt, %9, %12 : vector<1x128xi32>
    %14 = arith.andi %11, %13 : vector<1x128xi1>
    %c-2_i32 = arith.constant -2 : i32
    %15 = vector.broadcast %c-2_i32 : i32 to vector<1x128xi32>
    %16 = arith.cmpi sge, %9, %15 : vector<1x128xi32>
    %c126_i32 = arith.constant 126 : i32
    %17 = vector.broadcast %c126_i32 : i32 to vector<1x128xi32>
    %18 = arith.cmpi slt, %9, %17 : vector<1x128xi32>
    %19 = arith.andi %16, %18 : vector<1x128xi1>
    %20 = vector.extract_strided_slice %1 {offsets = [0, 0], sizes = [32, 1], strides = [1, 1]} : vector<32x3xf32> to vector<32x1xf32>
    %21 = vector.extract_strided_slice %1 {offsets = [0, 1], sizes = [32, 1], strides = [1, 1]} : vector<32x3xf32> to vector<32x1xf32>
    %22 = vector.extract_strided_slice %1 {offsets = [0, 2], sizes = [32, 1], strides = [1, 1]} : vector<32x3xf32> to vector<32x1xf32>
    %c0_6 = arith.constant 0 : index
    %c0_7 = arith.constant 0 : index
    %23 = vector.load %arg1[%c0_6, %c0_7] : memref<16x1024xf32, #tpu.memory_space<vmem>>, vector<16x1024xf32>
    %cst = arith.constant dense<0.000000e+00> : vector<32x1024xf32>
    %24 = tpu.matmul %0, %23, %cst {dimension_numbers = #tpu.dot_dimension_numbers<[1], [0], [0], [1], [0, 0, 1, 1], [], []>} : vector<32x16xf32>, vector<16x1024xf32>, vector<32x1024xf32> -> vector<32x1024xf32>
    %cst_8 = arith.constant 0.000000e+00 : f32
    %25 = vector.broadcast %cst_8 : f32 to vector<32x1024xf32>
    %26 = arith.cmpf ogt, %24, %25 : vector<32x1024xf32>
    %27 = vector.broadcast %7 : f32 to vector<32x1024xf32>
    %28 = arith.mulf %27, %24 : vector<32x1024xf32>
    %29 = arith.select %26, %24, %28 : vector<32x1024xi1>, vector<32x1024xf32>
    %c0_9 = arith.constant 0 : index
    %c0_10 = arith.constant 0 : index
    %30 = vector.load %arg8[%c0_9, %c0_10] : memref<32x1024xf32, #tpu.memory_space<vmem>>, vector<32x1024xf32>
    tpu.vector_store %arg8[%c0_9, %c0_10], %29 {strides = array<i32>} : memref<32x1024xf32, #tpu.memory_space<vmem>>, vector<32x1024xf32>,
    %c0_i32 = arith.constant 0 : i32
    %c128_i32 = arith.constant 128 : i32
    %31 = arith.muli %c0_i32, %c128_i32 : i32
    %32 = tpu.assume_multiple %31, 128 : i32
    %c0_11 = arith.constant 0 : index
    %33 = arith.index_cast %32 : i32 to index
    %34 = vector.load %arg8[%c0_11, %33] : memref<32x1024xf32, #tpu.memory_space<vmem>>, vector<32x128xf32>
    %35 = vector.shape_cast %34 : vector<32x128xf32> to vector<1x32x128xf32>
    %cst_12 = arith.constant dense<0.000000e+00> : vector<1xf32>
    %36 = vector.multi_reduction <add>, %35, %cst_12 [1, 2] : vector<1x32x128xf32> to vector<1xf32>
    %37 = vector.shape_cast %36 : vector<1xf32> to vector<1x1x1xf32>
    %38 = vector.extract %37[0, 0, 0] : f32 from vector<1x1x1xf32>
    %39 = arith.mulf %34, %34 : vector<32x128xf32>
    %40 = vector.shape_cast %39 : vector<32x128xf32> to vector<1x32x128xf32>
    %cst_13 = arith.constant dense<0.000000e+00> : vector<1xf32>
    %41 = vector.multi_reduction <add>, %40, %cst_13 [1, 2] : vector<1x32x128xf32> to vector<1xf32>
    %42 = vector.shape_cast %41 : vector<1xf32> to vector<1x1x1xf32>
    %43 = vector.extract %42[0, 0, 0] : f32 from vector<1x1x1xf32>
    %cst_14 = arith.constant 2.44140625E-4 : f32
    %44 = arith.mulf %38, %cst_14 : f32
    %cst_15 = arith.constant 2.44140625E-4 : f32
    %45 = arith.mulf %43, %cst_15 : f32
    %46 = arith.mulf %44, %44 : f32
    %47 = arith.subf %45, %46 : f32
    %cst_16 = arith.constant 9.99999993E-9 : f32
    %48 = arith.addf %47, %cst_16 : f32
    %49 = math.rsqrt %48 : f32
    %50 = vector.broadcast %49 : f32 to vector<32x1xf32>
    %51 = arith.mulf %3, %50 : vector<32x1xf32>
    %52 = vector.broadcast %51 : vector<32x1xf32> to vector<32x128xf32>
    %53 = arith.mulf %34, %52 : vector<32x128xf32>
    %54 = vector.broadcast %44 : f32 to vector<32x1xf32>
    %55 = arith.mulf %54, %51 : vector<32x1xf32>
    %56 = arith.subf %4, %55 : vector<32x1xf32>
    %57 = vector.broadcast %56 : vector<32x1xf32> to vector<32x128xf32>
    %58 = arith.addf %53, %57 : vector<32x128xf32>
    %c2_i32_17 = arith.constant 2 : i32
    %59 = tpu.dynamic_rotate %58 by %c2_i32_17 dim 1 : vector<32x128xf32>, i32 -> vector<32x128xf32>
    %cst_18 = arith.constant 0.000000e+00 : f32
    %60 = vector.shape_cast %14 : vector<1x128xi1> to vector<1x128xi1>
    %61 = vector.broadcast %60 : vector<1x128xi1> to vector<32x128xi1>
    %62 = vector.broadcast %cst_18 : f32 to vector<32x128xf32>
    %63 = arith.select %61, %59, %62 : vector<32x128xi1>, vector<32x128xf32>
    %64 = vector.broadcast %20 : vector<32x1xf32> to vector<32x128xf32>
    %65 = arith.mulf %64, %63 : vector<32x128xf32>
    %66 = vector.broadcast %21 : vector<32x1xf32> to vector<32x128xf32>
    %67 = arith.mulf %66, %58 : vector<32x128xf32>
    %68 = arith.addf %65, %67 : vector<32x128xf32>
    %c126_i32_19 = arith.constant 126 : i32
    %69 = tpu.dynamic_rotate %58 by %c126_i32_19 dim 1 : vector<32x128xf32>, i32 -> vector<32x128xf32>
    %cst_20 = arith.constant 0.000000e+00 : f32
    %70 = vector.shape_cast %19 : vector<1x128xi1> to vector<1x128xi1>
    %71 = vector.broadcast %70 : vector<1x128xi1> to vector<32x128xi1>
    %72 = vector.broadcast %cst_20 : f32 to vector<32x128xf32>
    %73 = arith.select %71, %69, %72 : vector<32x128xi1>, vector<32x128xf32>
    %74 = vector.broadcast %22 : vector<32x1xf32> to vector<32x128xf32>
    %75 = arith.mulf %74, %73 : vector<32x128xf32>
    %76 = arith.addf %68, %75 : vector<32x128xf32>
    %cst_21 = arith.constant 0.000000e+00 : f32
    %77 = vector.broadcast %cst_21 : f32 to vector<32x128xf32>
    %78 = arith.cmpf ogt, %76, %77 : vector<32x128xf32>
    %79 = vector.broadcast %8 : f32 to vector<32x128xf32>
    %80 = arith.mulf %79, %76 : vector<32x128xf32>
    %81 = arith.select %78, %76, %80 : vector<32x128xi1>, vector<32x128xf32>
    %82 = vector.shape_cast %81 : vector<32x128xf32> to vector<1x32x128xf32>
    %cst_22 = arith.constant dense<0.000000e+00> : vector<1xf32>
    %83 = vector.multi_reduction <add>, %82, %cst_22 [1, 2] : vector<1x32x128xf32> to vector<1xf32>
    %84 = vector.shape_cast %83 : vector<1xf32> to vector<1x1x1xf32>
    %85 = vector.extract %84[0, 0, 0] : f32 from vector<1x1x1xf32>
    %86 = arith.mulf %81, %81 : vector<32x128xf32>
    %87 = vector.shape_cast %86 : vector<32x128xf32> to vector<1x32x128xf32>
    %cst_23 = arith.constant dense<0.000000e+00> : vector<1xf32>
    %88 = vector.multi_reduction <add>, %87, %cst_23 [1, 2] : vector<1x32x128xf32> to vector<1xf32>
    %89 = vector.shape_cast %88 : vector<1xf32> to vector<1x1x1xf32>
    %90 = vector.extract %89[0, 0, 0] : f32 from vector<1x1x1xf32>
    %cst_24 = arith.constant 2.44140625E-4 : f32
    %91 = arith.mulf %85, %cst_24 : f32
    %cst_25 = arith.constant 2.44140625E-4 : f32
    %92 = arith.mulf %90, %cst_25 : f32
    %93 = arith.mulf %91, %91 : f32
    %94 = arith.subf %92, %93 : f32
    %cst_26 = arith.constant 9.99999993E-9 : f32
    %95 = arith.addf %94, %cst_26 : f32
    %96 = math.rsqrt %95 : f32
    %97 = vector.broadcast %96 : f32 to vector<32x1xf32>
    %98 = arith.mulf %5, %97 : vector<32x1xf32>
    %99 = vector.broadcast %98 : vector<32x1xf32> to vector<32x128xf32>
    %100 = arith.mulf %81, %99 : vector<32x128xf32>
    %101 = vector.broadcast %91 : f32 to vector<32x1xf32>
    %102 = arith.mulf %101, %98 : vector<32x1xf32>
    %103 = arith.subf %6, %102 : vector<32x1xf32>
    %104 = vector.broadcast %103 : vector<32x1xf32> to vector<32x128xf32>
    %105 = arith.addf %100, %104 : vector<32x128xf32>
    %c0_27 = arith.constant 0 : index
    %106 = arith.index_cast %32 : i32 to index
    %107 = vector.load %arg8[%c0_27, %106] : memref<32x1024xf32, #tpu.memory_space<vmem>>, vector<32x128xf32>
    tpu.vector_store %arg8[%c0_27, %106], %105 {strides = array<i32>} : memref<32x1024xf32, #tpu.memory_space<vmem>>, vector<32x128xf32>,
    %c1_i32 = arith.constant 1 : i32
    %c128_i32_28 = arith.constant 128 : i32
    %108 = arith.muli %c1_i32, %c128_i32_28 : i32
    %109 = tpu.assume_multiple %108, 128 : i32
    %c0_29 = arith.constant 0 : index
    %110 = arith.index_cast %109 : i32 to index
    %111 = vector.load %arg8[%c0_29, %110] : memref<32x1024xf32, #tpu.memory_space<vmem>>, vector<32x128xf32>
    %112 = vector.shape_cast %111 : vector<32x128xf32> to vector<1x32x128xf32>
    %cst_30 = arith.constant dense<0.000000e+00> : vector<1xf32>
    %113 = vector.multi_reduction <add>, %112, %cst_30 [1, 2] : vector<1x32x128xf32> to vector<1xf32>
    %114 = vector.shape_cast %113 : vector<1xf32> to vector<1x1x1xf32>
    %115 = vector.extract %114[0, 0, 0] : f32 from vector<1x1x1xf32>
    %116 = arith.mulf %111, %111 : vector<32x128xf32>
    %117 = vector.shape_cast %116 : vector<32x128xf32> to vector<1x32x128xf32>
    %cst_31 = arith.constant dense<0.000000e+00> : vector<1xf32>
    %118 = vector.multi_reduction <add>, %117, %cst_31 [1, 2] : vector<1x32x128xf32> to vector<1xf32>
    %119 = vector.shape_cast %118 : vector<1xf32> to vector<1x1x1xf32>
    %120 = vector.extract %119[0, 0, 0] : f32 from vector<1x1x1xf32>
    %cst_32 = arith.constant 2.44140625E-4 : f32
    %121 = arith.mulf %115, %cst_32 : f32
    %cst_33 = arith.constant 2.44140625E-4 : f32
    %122 = arith.mulf %120, %cst_33 : f32
    %123 = arith.mulf %121, %121 : f32
    %124 = arith.subf %122, %123 : f32
    %cst_34 = arith.constant 9.99999993E-9 : f32
    %125 = arith.addf %124, %cst_34 : f32
    %126 = math.rsqrt %125 : f32
    %127 = vector.broadcast %126 : f32 to vector<32x1xf32>
    %128 = arith.mulf %3, %127 : vector<32x1xf32>
    %129 = vector.broadcast %128 : vector<32x1xf32> to vector<32x128xf32>
    %130 = arith.mulf %111, %129 : vector<32x128xf32>
    %131 = vector.broadcast %121 : f32 to vector<32x1xf32>
    %132 = arith.mulf %131, %128 : vector<32x1xf32>
    %133 = arith.subf %4, %132 : vector<32x1xf32>
    %134 = vector.broadcast %133 : vector<32x1xf32> to vector<32x128xf32>
    %135 = arith.addf %130, %134 : vector<32x128xf32>
    %c2_i32_35 = arith.constant 2 : i32
    %136 = tpu.dynamic_rotate %135 by %c2_i32_35 dim 1 : vector<32x128xf32>, i32 -> vector<32x128xf32>
    %cst_36 = arith.constant 0.000000e+00 : f32
    %137 = vector.shape_cast %14 : vector<1x128xi1> to vector<1x128xi1>
    %138 = vector.broadcast %137 : vector<1x128xi1> to vector<32x128xi1>
    %139 = vector.broadcast %cst_36 : f32 to vector<32x128xf32>
    %140 = arith.select %138, %136, %139 : vector<32x128xi1>, vector<32x128xf32>
    %141 = vector.broadcast %20 : vector<32x1xf32> to vector<32x128xf32>
    %142 = arith.mulf %141, %140 : vector<32x128xf32>
    %143 = vector.broadcast %21 : vector<32x1xf32> to vector<32x128xf32>
    %144 = arith.mulf %143, %135 : vector<32x128xf32>
    %145 = arith.addf %142, %144 : vector<32x128xf32>
    %c126_i32_37 = arith.constant 126 : i32
    %146 = tpu.dynamic_rotate %135 by %c126_i32_37 dim 1 : vector<32x128xf32>, i32 -> vector<32x128xf32>
    %cst_38 = arith.constant 0.000000e+00 : f32
    %147 = vector.shape_cast %19 : vector<1x128xi1> to vector<1x128xi1>
    %148 = vector.broadcast %147 : vector<1x128xi1> to vector<32x128xi1>
    %149 = vector.broadcast %cst_38 : f32 to vector<32x128xf32>
    %150 = arith.select %148, %146, %149 : vector<32x128xi1>, vector<32x128xf32>
    %151 = vector.broadcast %22 : vector<32x1xf32> to vector<32x128xf32>
    %152 = arith.mulf %151, %150 : vector<32x128xf32>
    %153 = arith.addf %145, %152 : vector<32x128xf32>
    %cst_39 = arith.constant 0.000000e+00 : f32
    %154 = vector.broadcast %cst_39 : f32 to vector<32x128xf32>
    %155 = arith.cmpf ogt, %153, %154 : vector<32x128xf32>
    %156 = vector.broadcast %8 : f32 to vector<32x128xf32>
    %157 = arith.mulf %156, %153 : vector<32x128xf32>
    %158 = arith.select %155, %153, %157 : vector<32x128xi1>, vector<32x128xf32>
    %159 = vector.shape_cast %158 : vector<32x128xf32> to vector<1x32x128xf32>
    %cst_40 = arith.constant dense<0.000000e+00> : vector<1xf32>
    %160 = vector.multi_reduction <add>, %159, %cst_40 [1, 2] : vector<1x32x128xf32> to vector<1xf32>
    %161 = vector.shape_cast %160 : vector<1xf32> to vector<1x1x1xf32>
    %162 = vector.extract %161[0, 0, 0] : f32 from vector<1x1x1xf32>
    %163 = arith.mulf %158, %158 : vector<32x128xf32>
    %164 = vector.shape_cast %163 : vector<32x128xf32> to vector<1x32x128xf32>
    %cst_41 = arith.constant dense<0.000000e+00> : vector<1xf32>
    %165 = vector.multi_reduction <add>, %164, %cst_41 [1, 2] : vector<1x32x128xf32> to vector<1xf32>
    %166 = vector.shape_cast %165 : vector<1xf32> to vector<1x1x1xf32>
    %167 = vector.extract %166[0, 0, 0] : f32 from vector<1x1x1xf32>
    %cst_42 = arith.constant 2.44140625E-4 : f32
    %168 = arith.mulf %162, %cst_42 : f32
    %cst_43 = arith.constant 2.44140625E-4 : f32
    %169 = arith.mulf %167, %cst_43 : f32
    %170 = arith.mulf %168, %168 : f32
    %171 = arith.subf %169, %170 : f32
    %cst_44 = arith.constant 9.99999993E-9 : f32
    %172 = arith.addf %171, %cst_44 : f32
    %173 = math.rsqrt %172 : f32
    %174 = vector.broadcast %173 : f32 to vector<32x1xf32>
    %175 = arith.mulf %5, %174 : vector<32x1xf32>
    %176 = vector.broadcast %175 : vector<32x1xf32> to vector<32x128xf32>
    %177 = arith.mulf %158, %176 : vector<32x128xf32>
    %178 = vector.broadcast %168 : f32 to vector<32x1xf32>
    %179 = arith.mulf %178, %175 : vector<32x1xf32>
    %180 = arith.subf %6, %179 : vector<32x1xf32>
    %181 = vector.broadcast %180 : vector<32x1xf32> to vector<32x128xf32>
    %182 = arith.addf %177, %181 : vector<32x128xf32>
    %c0_45 = arith.constant 0 : index
    %183 = arith.index_cast %109 : i32 to index
    %184 = vector.load %arg8[%c0_45, %183] : memref<32x1024xf32, #tpu.memory_space<vmem>>, vector<32x128xf32>
    tpu.vector_store %arg8[%c0_45, %183], %182 {strides = array<i32>} : memref<32x1024xf32, #tpu.memory_space<vmem>>, vector<32x128xf32>,
    %c2_i32_46 = arith.constant 2 : i32
    %c128_i32_47 = arith.constant 128 : i32
    %185 = arith.muli %c2_i32_46, %c128_i32_47 : i32
    %186 = tpu.assume_multiple %185, 128 : i32
    %c0_48 = arith.constant 0 : index
    %187 = arith.index_cast %186 : i32 to index
    %188 = vector.load %arg8[%c0_48, %187] : memref<32x1024xf32, #tpu.memory_space<vmem>>, vector<32x128xf32>
    %189 = vector.shape_cast %188 : vector<32x128xf32> to vector<1x32x128xf32>
    %cst_49 = arith.constant dense<0.000000e+00> : vector<1xf32>
    %190 = vector.multi_reduction <add>, %189, %cst_49 [1, 2] : vector<1x32x128xf32> to vector<1xf32>
    %191 = vector.shape_cast %190 : vector<1xf32> to vector<1x1x1xf32>
    %192 = vector.extract %191[0, 0, 0] : f32 from vector<1x1x1xf32>
    %193 = arith.mulf %188, %188 : vector<32x128xf32>
    %194 = vector.shape_cast %193 : vector<32x128xf32> to vector<1x32x128xf32>
    %cst_50 = arith.constant dense<0.000000e+00> : vector<1xf32>
    %195 = vector.multi_reduction <add>, %194, %cst_50 [1, 2] : vector<1x32x128xf32> to vector<1xf32>
    %196 = vector.shape_cast %195 : vector<1xf32> to vector<1x1x1xf32>
    %197 = vector.extract %196[0, 0, 0] : f32 from vector<1x1x1xf32>
    %cst_51 = arith.constant 2.44140625E-4 : f32
    %198 = arith.mulf %192, %cst_51 : f32
    %cst_52 = arith.constant 2.44140625E-4 : f32
    %199 = arith.mulf %197, %cst_52 : f32
    %200 = arith.mulf %198, %198 : f32
    %201 = arith.subf %199, %200 : f32
    %cst_53 = arith.constant 9.99999993E-9 : f32
    %202 = arith.addf %201, %cst_53 : f32
    %203 = math.rsqrt %202 : f32
    %204 = vector.broadcast %203 : f32 to vector<32x1xf32>
    %205 = arith.mulf %3, %204 : vector<32x1xf32>
    %206 = vector.broadcast %205 : vector<32x1xf32> to vector<32x128xf32>
    %207 = arith.mulf %188, %206 : vector<32x128xf32>
    %208 = vector.broadcast %198 : f32 to vector<32x1xf32>
    %209 = arith.mulf %208, %205 : vector<32x1xf32>
    %210 = arith.subf %4, %209 : vector<32x1xf32>
    %211 = vector.broadcast %210 : vector<32x1xf32> to vector<32x128xf32>
    %212 = arith.addf %207, %211 : vector<32x128xf32>
    %c2_i32_54 = arith.constant 2 : i32
    %213 = tpu.dynamic_rotate %212 by %c2_i32_54 dim 1 : vector<32x128xf32>, i32 -> vector<32x128xf32>
    %cst_55 = arith.constant 0.000000e+00 : f32
    %214 = vector.shape_cast %14 : vector<1x128xi1> to vector<1x128xi1>
    %215 = vector.broadcast %214 : vector<1x128xi1> to vector<32x128xi1>
    %216 = vector.broadcast %cst_55 : f32 to vector<32x128xf32>
    %217 = arith.select %215, %213, %216 : vector<32x128xi1>, vector<32x128xf32>
    %218 = vector.broadcast %20 : vector<32x1xf32> to vector<32x128xf32>
    %219 = arith.mulf %218, %217 : vector<32x128xf32>
    %220 = vector.broadcast %21 : vector<32x1xf32> to vector<32x128xf32>
    %221 = arith.mulf %220, %212 : vector<32x128xf32>
    %222 = arith.addf %219, %221 : vector<32x128xf32>
    %c126_i32_56 = arith.constant 126 : i32
    %223 = tpu.dynamic_rotate %212 by %c126_i32_56 dim 1 : vector<32x128xf32>, i32 -> vector<32x128xf32>
    %cst_57 = arith.constant 0.000000e+00 : f32
    %224 = vector.shape_cast %19 : vector<1x128xi1> to vector<1x128xi1>
    %225 = vector.broadcast %224 : vector<1x128xi1> to vector<32x128xi1>
    %226 = vector.broadcast %cst_57 : f32 to vector<32x128xf32>
    %227 = arith.select %225, %223, %226 : vector<32x128xi1>, vector<32x128xf32>
    %228 = vector.broadcast %22 : vector<32x1xf32> to vector<32x128xf32>
    %229 = arith.mulf %228, %227 : vector<32x128xf32>
    %230 = arith.addf %222, %229 : vector<32x128xf32>
    %cst_58 = arith.constant 0.000000e+00 : f32
    %231 = vector.broadcast %cst_58 : f32 to vector<32x128xf32>
    %232 = arith.cmpf ogt, %230, %231 : vector<32x128xf32>
    %233 = vector.broadcast %8 : f32 to vector<32x128xf32>
    %234 = arith.mulf %233, %230 : vector<32x128xf32>
    %235 = arith.select %232, %230, %234 : vector<32x128xi1>, vector<32x128xf32>
    %236 = vector.shape_cast %235 : vector<32x128xf32> to vector<1x32x128xf32>
    %cst_59 = arith.constant dense<0.000000e+00> : vector<1xf32>
    %237 = vector.multi_reduction <add>, %236, %cst_59 [1, 2] : vector<1x32x128xf32> to vector<1xf32>
    %238 = vector.shape_cast %237 : vector<1xf32> to vector<1x1x1xf32>
    %239 = vector.extract %238[0, 0, 0] : f32 from vector<1x1x1xf32>
    %240 = arith.mulf %235, %235 : vector<32x128xf32>
    %241 = vector.shape_cast %240 : vector<32x128xf32> to vector<1x32x128xf32>
    %cst_60 = arith.constant dense<0.000000e+00> : vector<1xf32>
    %242 = vector.multi_reduction <add>, %241, %cst_60 [1, 2] : vector<1x32x128xf32> to vector<1xf32>
    %243 = vector.shape_cast %242 : vector<1xf32> to vector<1x1x1xf32>
    %244 = vector.extract %243[0, 0, 0] : f32 from vector<1x1x1xf32>
    %cst_61 = arith.constant 2.44140625E-4 : f32
    %245 = arith.mulf %239, %cst_61 : f32
    %cst_62 = arith.constant 2.44140625E-4 : f32
    %246 = arith.mulf %244, %cst_62 : f32
    %247 = arith.mulf %245, %245 : f32
    %248 = arith.subf %246, %247 : f32
    %cst_63 = arith.constant 9.99999993E-9 : f32
    %249 = arith.addf %248, %cst_63 : f32
    %250 = math.rsqrt %249 : f32
    %251 = vector.broadcast %250 : f32 to vector<32x1xf32>
    %252 = arith.mulf %5, %251 : vector<32x1xf32>
    %253 = vector.broadcast %252 : vector<32x1xf32> to vector<32x128xf32>
    %254 = arith.mulf %235, %253 : vector<32x128xf32>
    %255 = vector.broadcast %245 : f32 to vector<32x1xf32>
    %256 = arith.mulf %255, %252 : vector<32x1xf32>
    %257 = arith.subf %6, %256 : vector<32x1xf32>
    %258 = vector.broadcast %257 : vector<32x1xf32> to vector<32x128xf32>
    %259 = arith.addf %254, %258 : vector<32x128xf32>
    %c0_64 = arith.constant 0 : index
    %260 = arith.index_cast %186 : i32 to index
    %261 = vector.load %arg8[%c0_64, %260] : memref<32x1024xf32, #tpu.memory_space<vmem>>, vector<32x128xf32>
    tpu.vector_store %arg8[%c0_64, %260], %259 {strides = array<i32>} : memref<32x1024xf32, #tpu.memory_space<vmem>>, vector<32x128xf32>,
    %c3_i32 = arith.constant 3 : i32
    %c128_i32_65 = arith.constant 128 : i32
    %262 = arith.muli %c3_i32, %c128_i32_65 : i32
    %263 = tpu.assume_multiple %262, 128 : i32
    %c0_66 = arith.constant 0 : index
    %264 = arith.index_cast %263 : i32 to index
    %265 = vector.load %arg8[%c0_66, %264] : memref<32x1024xf32, #tpu.memory_space<vmem>>, vector<32x128xf32>
    %266 = vector.shape_cast %265 : vector<32x128xf32> to vector<1x32x128xf32>
    %cst_67 = arith.constant dense<0.000000e+00> : vector<1xf32>
    %267 = vector.multi_reduction <add>, %266, %cst_67 [1, 2] : vector<1x32x128xf32> to vector<1xf32>
    %268 = vector.shape_cast %267 : vector<1xf32> to vector<1x1x1xf32>
    %269 = vector.extract %268[0, 0, 0] : f32 from vector<1x1x1xf32>
    %270 = arith.mulf %265, %265 : vector<32x128xf32>
    %271 = vector.shape_cast %270 : vector<32x128xf32> to vector<1x32x128xf32>
    %cst_68 = arith.constant dense<0.000000e+00> : vector<1xf32>
    %272 = vector.multi_reduction <add>, %271, %cst_68 [1, 2] : vector<1x32x128xf32> to vector<1xf32>
    %273 = vector.shape_cast %272 : vector<1xf32> to vector<1x1x1xf32>
    %274 = vector.extract %273[0, 0, 0] : f32 from vector<1x1x1xf32>
    %cst_69 = arith.constant 2.44140625E-4 : f32
    %275 = arith.mulf %269, %cst_69 : f32
    %cst_70 = arith.constant 2.44140625E-4 : f32
    %276 = arith.mulf %274, %cst_70 : f32
    %277 = arith.mulf %275, %275 : f32
    %278 = arith.subf %276, %277 : f32
    %cst_71 = arith.constant 9.99999993E-9 : f32
    %279 = arith.addf %278, %cst_71 : f32
    %280 = math.rsqrt %279 : f32
    %281 = vector.broadcast %280 : f32 to vector<32x1xf32>
    %282 = arith.mulf %3, %281 : vector<32x1xf32>
    %283 = vector.broadcast %282 : vector<32x1xf32> to vector<32x128xf32>
    %284 = arith.mulf %265, %283 : vector<32x128xf32>
    %285 = vector.broadcast %275 : f32 to vector<32x1xf32>
    %286 = arith.mulf %285, %282 : vector<32x1xf32>
    %287 = arith.subf %4, %286 : vector<32x1xf32>
    %288 = vector.broadcast %287 : vector<32x1xf32> to vector<32x128xf32>
    %289 = arith.addf %284, %288 : vector<32x128xf32>
    %c2_i32_72 = arith.constant 2 : i32
    %290 = tpu.dynamic_rotate %289 by %c2_i32_72 dim 1 : vector<32x128xf32>, i32 -> vector<32x128xf32>
    %cst_73 = arith.constant 0.000000e+00 : f32
    %291 = vector.shape_cast %14 : vector<1x128xi1> to vector<1x128xi1>
    %292 = vector.broadcast %291 : vector<1x128xi1> to vector<32x128xi1>
    %293 = vector.broadcast %cst_73 : f32 to vector<32x128xf32>
    %294 = arith.select %292, %290, %293 : vector<32x128xi1>, vector<32x128xf32>
    %295 = vector.broadcast %20 : vector<32x1xf32> to vector<32x128xf32>
    %296 = arith.mulf %295, %294 : vector<32x128xf32>
    %297 = vector.broadcast %21 : vector<32x1xf32> to vector<32x128xf32>
    %298 = arith.mulf %297, %289 : vector<32x128xf32>
    %299 = arith.addf %296, %298 : vector<32x128xf32>
    %c126_i32_74 = arith.constant 126 : i32
    %300 = tpu.dynamic_rotate %289 by %c126_i32_74 dim 1 : vector<32x128xf32>, i32 -> vector<32x128xf32>
    %cst_75 = arith.constant 0.000000e+00 : f32
    %301 = vector.shape_cast %19 : vector<1x128xi1> to vector<1x128xi1>
    %302 = vector.broadcast %301 : vector<1x128xi1> to vector<32x128xi1>
    %303 = vector.broadcast %cst_75 : f32 to vector<32x128xf32>
    %304 = arith.select %302, %300, %303 : vector<32x128xi1>, vector<32x128xf32>
    %305 = vector.broadcast %22 : vector<32x1xf32> to vector<32x128xf32>
    %306 = arith.mulf %305, %304 : vector<32x128xf32>
    %307 = arith.addf %299, %306 : vector<32x128xf32>
    %cst_76 = arith.constant 0.000000e+00 : f32
    %308 = vector.broadcast %cst_76 : f32 to vector<32x128xf32>
    %309 = arith.cmpf ogt, %307, %308 : vector<32x128xf32>
    %310 = vector.broadcast %8 : f32 to vector<32x128xf32>
    %311 = arith.mulf %310, %307 : vector<32x128xf32>
    %312 = arith.select %309, %307, %311 : vector<32x128xi1>, vector<32x128xf32>
    %313 = vector.shape_cast %312 : vector<32x128xf32> to vector<1x32x128xf32>
    %cst_77 = arith.constant dense<0.000000e+00> : vector<1xf32>
    %314 = vector.multi_reduction <add>, %313, %cst_77 [1, 2] : vector<1x32x128xf32> to vector<1xf32>
    %315 = vector.shape_cast %314 : vector<1xf32> to vector<1x1x1xf32>
    %316 = vector.extract %315[0, 0, 0] : f32 from vector<1x1x1xf32>
    %317 = arith.mulf %312, %312 : vector<32x128xf32>
    %318 = vector.shape_cast %317 : vector<32x128xf32> to vector<1x32x128xf32>
    %cst_78 = arith.constant dense<0.000000e+00> : vector<1xf32>
    %319 = vector.multi_reduction <add>, %318, %cst_78 [1, 2] : vector<1x32x128xf32> to vector<1xf32>
    %320 = vector.shape_cast %319 : vector<1xf32> to vector<1x1x1xf32>
    %321 = vector.extract %320[0, 0, 0] : f32 from vector<1x1x1xf32>
    %cst_79 = arith.constant 2.44140625E-4 : f32
    %322 = arith.mulf %316, %cst_79 : f32
    %cst_80 = arith.constant 2.44140625E-4 : f32
    %323 = arith.mulf %321, %cst_80 : f32
    %324 = arith.mulf %322, %322 : f32
    %325 = arith.subf %323, %324 : f32
    %cst_81 = arith.constant 9.99999993E-9 : f32
    %326 = arith.addf %325, %cst_81 : f32
    %327 = math.rsqrt %326 : f32
    %328 = vector.broadcast %327 : f32 to vector<32x1xf32>
    %329 = arith.mulf %5, %328 : vector<32x1xf32>
    %330 = vector.broadcast %329 : vector<32x1xf32> to vector<32x128xf32>
    %331 = arith.mulf %312, %330 : vector<32x128xf32>
    %332 = vector.broadcast %322 : f32 to vector<32x1xf32>
    %333 = arith.mulf %332, %329 : vector<32x1xf32>
    %334 = arith.subf %6, %333 : vector<32x1xf32>
    %335 = vector.broadcast %334 : vector<32x1xf32> to vector<32x128xf32>
    %336 = arith.addf %331, %335 : vector<32x128xf32>
    %c0_82 = arith.constant 0 : index
    %337 = arith.index_cast %263 : i32 to index
    %338 = vector.load %arg8[%c0_82, %337] : memref<32x1024xf32, #tpu.memory_space<vmem>>, vector<32x128xf32>
    tpu.vector_store %arg8[%c0_82, %337], %336 {strides = array<i32>} : memref<32x1024xf32, #tpu.memory_space<vmem>>, vector<32x128xf32>,
    %c4_i32 = arith.constant 4 : i32
    %c128_i32_83 = arith.constant 128 : i32
    %339 = arith.muli %c4_i32, %c128_i32_83 : i32
    %340 = tpu.assume_multiple %339, 128 : i32
    %c0_84 = arith.constant 0 : index
    %341 = arith.index_cast %340 : i32 to index
    %342 = vector.load %arg8[%c0_84, %341] : memref<32x1024xf32, #tpu.memory_space<vmem>>, vector<32x128xf32>
    %343 = vector.shape_cast %342 : vector<32x128xf32> to vector<1x32x128xf32>
    %cst_85 = arith.constant dense<0.000000e+00> : vector<1xf32>
    %344 = vector.multi_reduction <add>, %343, %cst_85 [1, 2] : vector<1x32x128xf32> to vector<1xf32>
    %345 = vector.shape_cast %344 : vector<1xf32> to vector<1x1x1xf32>
    %346 = vector.extract %345[0, 0, 0] : f32 from vector<1x1x1xf32>
    %347 = arith.mulf %342, %342 : vector<32x128xf32>
    %348 = vector.shape_cast %347 : vector<32x128xf32> to vector<1x32x128xf32>
    %cst_86 = arith.constant dense<0.000000e+00> : vector<1xf32>
    %349 = vector.multi_reduction <add>, %348, %cst_86 [1, 2] : vector<1x32x128xf32> to vector<1xf32>
    %350 = vector.shape_cast %349 : vector<1xf32> to vector<1x1x1xf32>
    %351 = vector.extract %350[0, 0, 0] : f32 from vector<1x1x1xf32>
    %cst_87 = arith.constant 2.44140625E-4 : f32
    %352 = arith.mulf %346, %cst_87 : f32
    %cst_88 = arith.constant 2.44140625E-4 : f32
    %353 = arith.mulf %351, %cst_88 : f32
    %354 = arith.mulf %352, %352 : f32
    %355 = arith.subf %353, %354 : f32
    %cst_89 = arith.constant 9.99999993E-9 : f32
    %356 = arith.addf %355, %cst_89 : f32
    %357 = math.rsqrt %356 : f32
    %358 = vector.broadcast %357 : f32 to vector<32x1xf32>
    %359 = arith.mulf %3, %358 : vector<32x1xf32>
    %360 = vector.broadcast %359 : vector<32x1xf32> to vector<32x128xf32>
    %361 = arith.mulf %342, %360 : vector<32x128xf32>
    %362 = vector.broadcast %352 : f32 to vector<32x1xf32>
    %363 = arith.mulf %362, %359 : vector<32x1xf32>
    %364 = arith.subf %4, %363 : vector<32x1xf32>
    %365 = vector.broadcast %364 : vector<32x1xf32> to vector<32x128xf32>
    %366 = arith.addf %361, %365 : vector<32x128xf32>
    %c2_i32_90 = arith.constant 2 : i32
    %367 = tpu.dynamic_rotate %366 by %c2_i32_90 dim 1 : vector<32x128xf32>, i32 -> vector<32x128xf32>
    %cst_91 = arith.constant 0.000000e+00 : f32
    %368 = vector.shape_cast %14 : vector<1x128xi1> to vector<1x128xi1>
    %369 = vector.broadcast %368 : vector<1x128xi1> to vector<32x128xi1>
    %370 = vector.broadcast %cst_91 : f32 to vector<32x128xf32>
    %371 = arith.select %369, %367, %370 : vector<32x128xi1>, vector<32x128xf32>
    %372 = vector.broadcast %20 : vector<32x1xf32> to vector<32x128xf32>
    %373 = arith.mulf %372, %371 : vector<32x128xf32>
    %374 = vector.broadcast %21 : vector<32x1xf32> to vector<32x128xf32>
    %375 = arith.mulf %374, %366 : vector<32x128xf32>
    %376 = arith.addf %373, %375 : vector<32x128xf32>
    %c126_i32_92 = arith.constant 126 : i32
    %377 = tpu.dynamic_rotate %366 by %c126_i32_92 dim 1 : vector<32x128xf32>, i32 -> vector<32x128xf32>
    %cst_93 = arith.constant 0.000000e+00 : f32
    %378 = vector.shape_cast %19 : vector<1x128xi1> to vector<1x128xi1>
    %379 = vector.broadcast %378 : vector<1x128xi1> to vector<32x128xi1>
    %380 = vector.broadcast %cst_93 : f32 to vector<32x128xf32>
    %381 = arith.select %379, %377, %380 : vector<32x128xi1>, vector<32x128xf32>
    %382 = vector.broadcast %22 : vector<32x1xf32> to vector<32x128xf32>
    %383 = arith.mulf %382, %381 : vector<32x128xf32>
    %384 = arith.addf %376, %383 : vector<32x128xf32>
    %cst_94 = arith.constant 0.000000e+00 : f32
    %385 = vector.broadcast %cst_94 : f32 to vector<32x128xf32>
    %386 = arith.cmpf ogt, %384, %385 : vector<32x128xf32>
    %387 = vector.broadcast %8 : f32 to vector<32x128xf32>
    %388 = arith.mulf %387, %384 : vector<32x128xf32>
    %389 = arith.select %386, %384, %388 : vector<32x128xi1>, vector<32x128xf32>
    %390 = vector.shape_cast %389 : vector<32x128xf32> to vector<1x32x128xf32>
    %cst_95 = arith.constant dense<0.000000e+00> : vector<1xf32>
    %391 = vector.multi_reduction <add>, %390, %cst_95 [1, 2] : vector<1x32x128xf32> to vector<1xf32>
    %392 = vector.shape_cast %391 : vector<1xf32> to vector<1x1x1xf32>
    %393 = vector.extract %392[0, 0, 0] : f32 from vector<1x1x1xf32>
    %394 = arith.mulf %389, %389 : vector<32x128xf32>
    %395 = vector.shape_cast %394 : vector<32x128xf32> to vector<1x32x128xf32>
    %cst_96 = arith.constant dense<0.000000e+00> : vector<1xf32>
    %396 = vector.multi_reduction <add>, %395, %cst_96 [1, 2] : vector<1x32x128xf32> to vector<1xf32>
    %397 = vector.shape_cast %396 : vector<1xf32> to vector<1x1x1xf32>
    %398 = vector.extract %397[0, 0, 0] : f32 from vector<1x1x1xf32>
    %cst_97 = arith.constant 2.44140625E-4 : f32
    %399 = arith.mulf %393, %cst_97 : f32
    %cst_98 = arith.constant 2.44140625E-4 : f32
    %400 = arith.mulf %398, %cst_98 : f32
    %401 = arith.mulf %399, %399 : f32
    %402 = arith.subf %400, %401 : f32
    %cst_99 = arith.constant 9.99999993E-9 : f32
    %403 = arith.addf %402, %cst_99 : f32
    %404 = math.rsqrt %403 : f32
    %405 = vector.broadcast %404 : f32 to vector<32x1xf32>
    %406 = arith.mulf %5, %405 : vector<32x1xf32>
    %407 = vector.broadcast %406 : vector<32x1xf32> to vector<32x128xf32>
    %408 = arith.mulf %389, %407 : vector<32x128xf32>
    %409 = vector.broadcast %399 : f32 to vector<32x1xf32>
    %410 = arith.mulf %409, %406 : vector<32x1xf32>
    %411 = arith.subf %6, %410 : vector<32x1xf32>
    %412 = vector.broadcast %411 : vector<32x1xf32> to vector<32x128xf32>
    %413 = arith.addf %408, %412 : vector<32x128xf32>
    %c0_100 = arith.constant 0 : index
    %414 = arith.index_cast %340 : i32 to index
    %415 = vector.load %arg8[%c0_100, %414] : memref<32x1024xf32, #tpu.memory_space<vmem>>, vector<32x128xf32>
    tpu.vector_store %arg8[%c0_100, %414], %413 {strides = array<i32>} : memref<32x1024xf32, #tpu.memory_space<vmem>>, vector<32x128xf32>,
    %c5_i32 = arith.constant 5 : i32
    %c128_i32_101 = arith.constant 128 : i32
    %416 = arith.muli %c5_i32, %c128_i32_101 : i32
    %417 = tpu.assume_multiple %416, 128 : i32
    %c0_102 = arith.constant 0 : index
    %418 = arith.index_cast %417 : i32 to index
    %419 = vector.load %arg8[%c0_102, %418] : memref<32x1024xf32, #tpu.memory_space<vmem>>, vector<32x128xf32>
    %420 = vector.shape_cast %419 : vector<32x128xf32> to vector<1x32x128xf32>
    %cst_103 = arith.constant dense<0.000000e+00> : vector<1xf32>
    %421 = vector.multi_reduction <add>, %420, %cst_103 [1, 2] : vector<1x32x128xf32> to vector<1xf32>
    %422 = vector.shape_cast %421 : vector<1xf32> to vector<1x1x1xf32>
    %423 = vector.extract %422[0, 0, 0] : f32 from vector<1x1x1xf32>
    %424 = arith.mulf %419, %419 : vector<32x128xf32>
    %425 = vector.shape_cast %424 : vector<32x128xf32> to vector<1x32x128xf32>
    %cst_104 = arith.constant dense<0.000000e+00> : vector<1xf32>
    %426 = vector.multi_reduction <add>, %425, %cst_104 [1, 2] : vector<1x32x128xf32> to vector<1xf32>
    %427 = vector.shape_cast %426 : vector<1xf32> to vector<1x1x1xf32>
    %428 = vector.extract %427[0, 0, 0] : f32 from vector<1x1x1xf32>
    %cst_105 = arith.constant 2.44140625E-4 : f32
    %429 = arith.mulf %423, %cst_105 : f32
    %cst_106 = arith.constant 2.44140625E-4 : f32
    %430 = arith.mulf %428, %cst_106 : f32
    %431 = arith.mulf %429, %429 : f32
    %432 = arith.subf %430, %431 : f32
    %cst_107 = arith.constant 9.99999993E-9 : f32
    %433 = arith.addf %432, %cst_107 : f32
    %434 = math.rsqrt %433 : f32
    %435 = vector.broadcast %434 : f32 to vector<32x1xf32>
    %436 = arith.mulf %3, %435 : vector<32x1xf32>
    %437 = vector.broadcast %436 : vector<32x1xf32> to vector<32x128xf32>
    %438 = arith.mulf %419, %437 : vector<32x128xf32>
    %439 = vector.broadcast %429 : f32 to vector<32x1xf32>
    %440 = arith.mulf %439, %436 : vector<32x1xf32>
    %441 = arith.subf %4, %440 : vector<32x1xf32>
    %442 = vector.broadcast %441 : vector<32x1xf32> to vector<32x128xf32>
    %443 = arith.addf %438, %442 : vector<32x128xf32>
    %c2_i32_108 = arith.constant 2 : i32
    %444 = tpu.dynamic_rotate %443 by %c2_i32_108 dim 1 : vector<32x128xf32>, i32 -> vector<32x128xf32>
    %cst_109 = arith.constant 0.000000e+00 : f32
    %445 = vector.shape_cast %14 : vector<1x128xi1> to vector<1x128xi1>
    %446 = vector.broadcast %445 : vector<1x128xi1> to vector<32x128xi1>
    %447 = vector.broadcast %cst_109 : f32 to vector<32x128xf32>
    %448 = arith.select %446, %444, %447 : vector<32x128xi1>, vector<32x128xf32>
    %449 = vector.broadcast %20 : vector<32x1xf32> to vector<32x128xf32>
    %450 = arith.mulf %449, %448 : vector<32x128xf32>
    %451 = vector.broadcast %21 : vector<32x1xf32> to vector<32x128xf32>
    %452 = arith.mulf %451, %443 : vector<32x128xf32>
    %453 = arith.addf %450, %452 : vector<32x128xf32>
    %c126_i32_110 = arith.constant 126 : i32
    %454 = tpu.dynamic_rotate %443 by %c126_i32_110 dim 1 : vector<32x128xf32>, i32 -> vector<32x128xf32>
    %cst_111 = arith.constant 0.000000e+00 : f32
    %455 = vector.shape_cast %19 : vector<1x128xi1> to vector<1x128xi1>
    %456 = vector.broadcast %455 : vector<1x128xi1> to vector<32x128xi1>
    %457 = vector.broadcast %cst_111 : f32 to vector<32x128xf32>
    %458 = arith.select %456, %454, %457 : vector<32x128xi1>, vector<32x128xf32>
    %459 = vector.broadcast %22 : vector<32x1xf32> to vector<32x128xf32>
    %460 = arith.mulf %459, %458 : vector<32x128xf32>
    %461 = arith.addf %453, %460 : vector<32x128xf32>
    %cst_112 = arith.constant 0.000000e+00 : f32
    %462 = vector.broadcast %cst_112 : f32 to vector<32x128xf32>
    %463 = arith.cmpf ogt, %461, %462 : vector<32x128xf32>
    %464 = vector.broadcast %8 : f32 to vector<32x128xf32>
    %465 = arith.mulf %464, %461 : vector<32x128xf32>
    %466 = arith.select %463, %461, %465 : vector<32x128xi1>, vector<32x128xf32>
    %467 = vector.shape_cast %466 : vector<32x128xf32> to vector<1x32x128xf32>
    %cst_113 = arith.constant dense<0.000000e+00> : vector<1xf32>
    %468 = vector.multi_reduction <add>, %467, %cst_113 [1, 2] : vector<1x32x128xf32> to vector<1xf32>
    %469 = vector.shape_cast %468 : vector<1xf32> to vector<1x1x1xf32>
    %470 = vector.extract %469[0, 0, 0] : f32 from vector<1x1x1xf32>
    %471 = arith.mulf %466, %466 : vector<32x128xf32>
    %472 = vector.shape_cast %471 : vector<32x128xf32> to vector<1x32x128xf32>
    %cst_114 = arith.constant dense<0.000000e+00> : vector<1xf32>
    %473 = vector.multi_reduction <add>, %472, %cst_114 [1, 2] : vector<1x32x128xf32> to vector<1xf32>
    %474 = vector.shape_cast %473 : vector<1xf32> to vector<1x1x1xf32>
    %475 = vector.extract %474[0, 0, 0] : f32 from vector<1x1x1xf32>
    %cst_115 = arith.constant 2.44140625E-4 : f32
    %476 = arith.mulf %470, %cst_115 : f32
    %cst_116 = arith.constant 2.44140625E-4 : f32
    %477 = arith.mulf %475, %cst_116 : f32
    %478 = arith.mulf %476, %476 : f32
    %479 = arith.subf %477, %478 : f32
    %cst_117 = arith.constant 9.99999993E-9 : f32
    %480 = arith.addf %479, %cst_117 : f32
    %481 = math.rsqrt %480 : f32
    %482 = vector.broadcast %481 : f32 to vector<32x1xf32>
    %483 = arith.mulf %5, %482 : vector<32x1xf32>
    %484 = vector.broadcast %483 : vector<32x1xf32> to vector<32x128xf32>
    %485 = arith.mulf %466, %484 : vector<32x128xf32>
    %486 = vector.broadcast %476 : f32 to vector<32x1xf32>
    %487 = arith.mulf %486, %483 : vector<32x1xf32>
    %488 = arith.subf %6, %487 : vector<32x1xf32>
    %489 = vector.broadcast %488 : vector<32x1xf32> to vector<32x128xf32>
    %490 = arith.addf %485, %489 : vector<32x128xf32>
    %c0_118 = arith.constant 0 : index
    %491 = arith.index_cast %417 : i32 to index
    %492 = vector.load %arg8[%c0_118, %491] : memref<32x1024xf32, #tpu.memory_space<vmem>>, vector<32x128xf32>
    tpu.vector_store %arg8[%c0_118, %491], %490 {strides = array<i32>} : memref<32x1024xf32, #tpu.memory_space<vmem>>, vector<32x128xf32>,
    %c6_i32 = arith.constant 6 : i32
    %c128_i32_119 = arith.constant 128 : i32
    %493 = arith.muli %c6_i32, %c128_i32_119 : i32
    %494 = tpu.assume_multiple %493, 128 : i32
    %c0_120 = arith.constant 0 : index
    %495 = arith.index_cast %494 : i32 to index
    %496 = vector.load %arg8[%c0_120, %495] : memref<32x1024xf32, #tpu.memory_space<vmem>>, vector<32x128xf32>
    %497 = vector.shape_cast %496 : vector<32x128xf32> to vector<1x32x128xf32>
    %cst_121 = arith.constant dense<0.000000e+00> : vector<1xf32>
    %498 = vector.multi_reduction <add>, %497, %cst_121 [1, 2] : vector<1x32x128xf32> to vector<1xf32>
    %499 = vector.shape_cast %498 : vector<1xf32> to vector<1x1x1xf32>
    %500 = vector.extract %499[0, 0, 0] : f32 from vector<1x1x1xf32>
    %501 = arith.mulf %496, %496 : vector<32x128xf32>
    %502 = vector.shape_cast %501 : vector<32x128xf32> to vector<1x32x128xf32>
    %cst_122 = arith.constant dense<0.000000e+00> : vector<1xf32>
    %503 = vector.multi_reduction <add>, %502, %cst_122 [1, 2] : vector<1x32x128xf32> to vector<1xf32>
    %504 = vector.shape_cast %503 : vector<1xf32> to vector<1x1x1xf32>
    %505 = vector.extract %504[0, 0, 0] : f32 from vector<1x1x1xf32>
    %cst_123 = arith.constant 2.44140625E-4 : f32
    %506 = arith.mulf %500, %cst_123 : f32
    %cst_124 = arith.constant 2.44140625E-4 : f32
    %507 = arith.mulf %505, %cst_124 : f32
    %508 = arith.mulf %506, %506 : f32
    %509 = arith.subf %507, %508 : f32
    %cst_125 = arith.constant 9.99999993E-9 : f32
    %510 = arith.addf %509, %cst_125 : f32
    %511 = math.rsqrt %510 : f32
    %512 = vector.broadcast %511 : f32 to vector<32x1xf32>
    %513 = arith.mulf %3, %512 : vector<32x1xf32>
    %514 = vector.broadcast %513 : vector<32x1xf32> to vector<32x128xf32>
    %515 = arith.mulf %496, %514 : vector<32x128xf32>
    %516 = vector.broadcast %506 : f32 to vector<32x1xf32>
    %517 = arith.mulf %516, %513 : vector<32x1xf32>
    %518 = arith.subf %4, %517 : vector<32x1xf32>
    %519 = vector.broadcast %518 : vector<32x1xf32> to vector<32x128xf32>
    %520 = arith.addf %515, %519 : vector<32x128xf32>
    %c2_i32_126 = arith.constant 2 : i32
    %521 = tpu.dynamic_rotate %520 by %c2_i32_126 dim 1 : vector<32x128xf32>, i32 -> vector<32x128xf32>
    %cst_127 = arith.constant 0.000000e+00 : f32
    %522 = vector.shape_cast %14 : vector<1x128xi1> to vector<1x128xi1>
    %523 = vector.broadcast %522 : vector<1x128xi1> to vector<32x128xi1>
    %524 = vector.broadcast %cst_127 : f32 to vector<32x128xf32>
    %525 = arith.select %523, %521, %524 : vector<32x128xi1>, vector<32x128xf32>
    %526 = vector.broadcast %20 : vector<32x1xf32> to vector<32x128xf32>
    %527 = arith.mulf %526, %525 : vector<32x128xf32>
    %528 = vector.broadcast %21 : vector<32x1xf32> to vector<32x128xf32>
    %529 = arith.mulf %528, %520 : vector<32x128xf32>
    %530 = arith.addf %527, %529 : vector<32x128xf32>
    %c126_i32_128 = arith.constant 126 : i32
    %531 = tpu.dynamic_rotate %520 by %c126_i32_128 dim 1 : vector<32x128xf32>, i32 -> vector<32x128xf32>
    %cst_129 = arith.constant 0.000000e+00 : f32
    %532 = vector.shape_cast %19 : vector<1x128xi1> to vector<1x128xi1>
    %533 = vector.broadcast %532 : vector<1x128xi1> to vector<32x128xi1>
    %534 = vector.broadcast %cst_129 : f32 to vector<32x128xf32>
    %535 = arith.select %533, %531, %534 : vector<32x128xi1>, vector<32x128xf32>
    %536 = vector.broadcast %22 : vector<32x1xf32> to vector<32x128xf32>
    %537 = arith.mulf %536, %535 : vector<32x128xf32>
    %538 = arith.addf %530, %537 : vector<32x128xf32>
    %cst_130 = arith.constant 0.000000e+00 : f32
    %539 = vector.broadcast %cst_130 : f32 to vector<32x128xf32>
    %540 = arith.cmpf ogt, %538, %539 : vector<32x128xf32>
    %541 = vector.broadcast %8 : f32 to vector<32x128xf32>
    %542 = arith.mulf %541, %538 : vector<32x128xf32>
    %543 = arith.select %540, %538, %542 : vector<32x128xi1>, vector<32x128xf32>
    %544 = vector.shape_cast %543 : vector<32x128xf32> to vector<1x32x128xf32>
    %cst_131 = arith.constant dense<0.000000e+00> : vector<1xf32>
    %545 = vector.multi_reduction <add>, %544, %cst_131 [1, 2] : vector<1x32x128xf32> to vector<1xf32>
    %546 = vector.shape_cast %545 : vector<1xf32> to vector<1x1x1xf32>
    %547 = vector.extract %546[0, 0, 0] : f32 from vector<1x1x1xf32>
    %548 = arith.mulf %543, %543 : vector<32x128xf32>
    %549 = vector.shape_cast %548 : vector<32x128xf32> to vector<1x32x128xf32>
    %cst_132 = arith.constant dense<0.000000e+00> : vector<1xf32>
    %550 = vector.multi_reduction <add>, %549, %cst_132 [1, 2] : vector<1x32x128xf32> to vector<1xf32>
    %551 = vector.shape_cast %550 : vector<1xf32> to vector<1x1x1xf32>
    %552 = vector.extract %551[0, 0, 0] : f32 from vector<1x1x1xf32>
    %cst_133 = arith.constant 2.44140625E-4 : f32
    %553 = arith.mulf %547, %cst_133 : f32
    %cst_134 = arith.constant 2.44140625E-4 : f32
    %554 = arith.mulf %552, %cst_134 : f32
    %555 = arith.mulf %553, %553 : f32
    %556 = arith.subf %554, %555 : f32
    %cst_135 = arith.constant 9.99999993E-9 : f32
    %557 = arith.addf %556, %cst_135 : f32
    %558 = math.rsqrt %557 : f32
    %559 = vector.broadcast %558 : f32 to vector<32x1xf32>
    %560 = arith.mulf %5, %559 : vector<32x1xf32>
    %561 = vector.broadcast %560 : vector<32x1xf32> to vector<32x128xf32>
    %562 = arith.mulf %543, %561 : vector<32x128xf32>
    %563 = vector.broadcast %553 : f32 to vector<32x1xf32>
    %564 = arith.mulf %563, %560 : vector<32x1xf32>
    %565 = arith.subf %6, %564 : vector<32x1xf32>
    %566 = vector.broadcast %565 : vector<32x1xf32> to vector<32x128xf32>
    %567 = arith.addf %562, %566 : vector<32x128xf32>
    %c0_136 = arith.constant 0 : index
    %568 = arith.index_cast %494 : i32 to index
    %569 = vector.load %arg8[%c0_136, %568] : memref<32x1024xf32, #tpu.memory_space<vmem>>, vector<32x128xf32>
    tpu.vector_store %arg8[%c0_136, %568], %567 {strides = array<i32>} : memref<32x1024xf32, #tpu.memory_space<vmem>>, vector<32x128xf32>,
    %c7_i32 = arith.constant 7 : i32
    %c128_i32_137 = arith.constant 128 : i32
    %570 = arith.muli %c7_i32, %c128_i32_137 : i32
    %571 = tpu.assume_multiple %570, 128 : i32
    %c0_138 = arith.constant 0 : index
    %572 = arith.index_cast %571 : i32 to index
    %573 = vector.load %arg8[%c0_138, %572] : memref<32x1024xf32, #tpu.memory_space<vmem>>, vector<32x128xf32>
    %574 = vector.shape_cast %573 : vector<32x128xf32> to vector<1x32x128xf32>
    %cst_139 = arith.constant dense<0.000000e+00> : vector<1xf32>
    %575 = vector.multi_reduction <add>, %574, %cst_139 [1, 2] : vector<1x32x128xf32> to vector<1xf32>
    %576 = vector.shape_cast %575 : vector<1xf32> to vector<1x1x1xf32>
    %577 = vector.extract %576[0, 0, 0] : f32 from vector<1x1x1xf32>
    %578 = arith.mulf %573, %573 : vector<32x128xf32>
    %579 = vector.shape_cast %578 : vector<32x128xf32> to vector<1x32x128xf32>
    %cst_140 = arith.constant dense<0.000000e+00> : vector<1xf32>
    %580 = vector.multi_reduction <add>, %579, %cst_140 [1, 2] : vector<1x32x128xf32> to vector<1xf32>
    %581 = vector.shape_cast %580 : vector<1xf32> to vector<1x1x1xf32>
    %582 = vector.extract %581[0, 0, 0] : f32 from vector<1x1x1xf32>
    %cst_141 = arith.constant 2.44140625E-4 : f32
    %583 = arith.mulf %577, %cst_141 : f32
    %cst_142 = arith.constant 2.44140625E-4 : f32
    %584 = arith.mulf %582, %cst_142 : f32
    %585 = arith.mulf %583, %583 : f32
    %586 = arith.subf %584, %585 : f32
    %cst_143 = arith.constant 9.99999993E-9 : f32
    %587 = arith.addf %586, %cst_143 : f32
    %588 = math.rsqrt %587 : f32
    %589 = vector.broadcast %588 : f32 to vector<32x1xf32>
    %590 = arith.mulf %3, %589 : vector<32x1xf32>
    %591 = vector.broadcast %590 : vector<32x1xf32> to vector<32x128xf32>
    %592 = arith.mulf %573, %591 : vector<32x128xf32>
    %593 = vector.broadcast %583 : f32 to vector<32x1xf32>
    %594 = arith.mulf %593, %590 : vector<32x1xf32>
    %595 = arith.subf %4, %594 : vector<32x1xf32>
    %596 = vector.broadcast %595 : vector<32x1xf32> to vector<32x128xf32>
    %597 = arith.addf %592, %596 : vector<32x128xf32>
    %c2_i32_144 = arith.constant 2 : i32
    %598 = tpu.dynamic_rotate %597 by %c2_i32_144 dim 1 : vector<32x128xf32>, i32 -> vector<32x128xf32>
    %cst_145 = arith.constant 0.000000e+00 : f32
    %599 = vector.shape_cast %14 : vector<1x128xi1> to vector<1x128xi1>
    %600 = vector.broadcast %599 : vector<1x128xi1> to vector<32x128xi1>
    %601 = vector.broadcast %cst_145 : f32 to vector<32x128xf32>
    %602 = arith.select %600, %598, %601 : vector<32x128xi1>, vector<32x128xf32>
    %603 = vector.broadcast %20 : vector<32x1xf32> to vector<32x128xf32>
    %604 = arith.mulf %603, %602 : vector<32x128xf32>
    %605 = vector.broadcast %21 : vector<32x1xf32> to vector<32x128xf32>
    %606 = arith.mulf %605, %597 : vector<32x128xf32>
    %607 = arith.addf %604, %606 : vector<32x128xf32>
    %c126_i32_146 = arith.constant 126 : i32
    %608 = tpu.dynamic_rotate %597 by %c126_i32_146 dim 1 : vector<32x128xf32>, i32 -> vector<32x128xf32>
    %cst_147 = arith.constant 0.000000e+00 : f32
    %609 = vector.shape_cast %19 : vector<1x128xi1> to vector<1x128xi1>
    %610 = vector.broadcast %609 : vector<1x128xi1> to vector<32x128xi1>
    %611 = vector.broadcast %cst_147 : f32 to vector<32x128xf32>
    %612 = arith.select %610, %608, %611 : vector<32x128xi1>, vector<32x128xf32>
    %613 = vector.broadcast %22 : vector<32x1xf32> to vector<32x128xf32>
    %614 = arith.mulf %613, %612 : vector<32x128xf32>
    %615 = arith.addf %607, %614 : vector<32x128xf32>
    %cst_148 = arith.constant 0.000000e+00 : f32
    %616 = vector.broadcast %cst_148 : f32 to vector<32x128xf32>
    %617 = arith.cmpf ogt, %615, %616 : vector<32x128xf32>
    %618 = vector.broadcast %8 : f32 to vector<32x128xf32>
    %619 = arith.mulf %618, %615 : vector<32x128xf32>
    %620 = arith.select %617, %615, %619 : vector<32x128xi1>, vector<32x128xf32>
    %621 = vector.shape_cast %620 : vector<32x128xf32> to vector<1x32x128xf32>
    %cst_149 = arith.constant dense<0.000000e+00> : vector<1xf32>
    %622 = vector.multi_reduction <add>, %621, %cst_149 [1, 2] : vector<1x32x128xf32> to vector<1xf32>
    %623 = vector.shape_cast %622 : vector<1xf32> to vector<1x1x1xf32>
    %624 = vector.extract %623[0, 0, 0] : f32 from vector<1x1x1xf32>
    %625 = arith.mulf %620, %620 : vector<32x128xf32>
    %626 = vector.shape_cast %625 : vector<32x128xf32> to vector<1x32x128xf32>
    %cst_150 = arith.constant dense<0.000000e+00> : vector<1xf32>
    %627 = vector.multi_reduction <add>, %626, %cst_150 [1, 2] : vector<1x32x128xf32> to vector<1xf32>
    %628 = vector.shape_cast %627 : vector<1xf32> to vector<1x1x1xf32>
    %629 = vector.extract %628[0, 0, 0] : f32 from vector<1x1x1xf32>
    %cst_151 = arith.constant 2.44140625E-4 : f32
    %630 = arith.mulf %624, %cst_151 : f32
    %cst_152 = arith.constant 2.44140625E-4 : f32
    %631 = arith.mulf %629, %cst_152 : f32
    %632 = arith.mulf %630, %630 : f32
    %633 = arith.subf %631, %632 : f32
    %cst_153 = arith.constant 9.99999993E-9 : f32
    %634 = arith.addf %633, %cst_153 : f32
    %635 = math.rsqrt %634 : f32
    %636 = vector.broadcast %635 : f32 to vector<32x1xf32>
    %637 = arith.mulf %5, %636 : vector<32x1xf32>
    %638 = vector.broadcast %637 : vector<32x1xf32> to vector<32x128xf32>
    %639 = arith.mulf %620, %638 : vector<32x128xf32>
    %640 = vector.broadcast %630 : f32 to vector<32x1xf32>
    %641 = arith.mulf %640, %637 : vector<32x1xf32>
    %642 = arith.subf %6, %641 : vector<32x1xf32>
    %643 = vector.broadcast %642 : vector<32x1xf32> to vector<32x128xf32>
    %644 = arith.addf %639, %643 : vector<32x128xf32>
    %c0_154 = arith.constant 0 : index
    %645 = arith.index_cast %571 : i32 to index
    %646 = vector.load %arg8[%c0_154, %645] : memref<32x1024xf32, #tpu.memory_space<vmem>>, vector<32x128xf32>
    tpu.vector_store %arg8[%c0_154, %645], %644 {strides = array<i32>} : memref<32x1024xf32, #tpu.memory_space<vmem>>, vector<32x128xf32>,
    %c8_i32 = arith.constant 8 : i32
    %c0_155 = arith.constant 0 : index
    %c0_156 = arith.constant 0 : index
    %647 = vector.load %arg4[%c0_155, %c0_156] : memref<16x32xf32, #tpu.memory_space<vmem>>, vector<16x32xf32>
    %c0_157 = arith.constant 0 : index
    %c0_158 = arith.constant 0 : index
    %648 = vector.load %arg8[%c0_157, %c0_158] : memref<32x1024xf32, #tpu.memory_space<vmem>>, vector<32x1024xf32>
    %cst_159 = arith.constant dense<0.000000e+00> : vector<16x1024xf32>
    %649 = tpu.matmul %647, %648, %cst_159 {dimension_numbers = #tpu.dot_dimension_numbers<[1], [0], [0], [1], [0, 0, 1, 1], [], []>} : vector<16x32xf32>, vector<32x1024xf32>, vector<16x1024xf32> -> vector<16x1024xf32>
    %c0_160 = arith.constant 0 : index
    %c0_161 = arith.constant 0 : index
    %650 = vector.load %arg1[%c0_160, %c0_161] : memref<16x1024xf32, #tpu.memory_space<vmem>>, vector<16x1024xf32>
    %651 = arith.addf %649, %650 : vector<16x1024xf32>
    %c0_162 = arith.constant 0 : index
    %c0_163 = arith.constant 0 : index
    %652 = vector.load %arg7[%c0_162, %c0_163] : memref<16x1024xf32, #tpu.memory_space<vmem>>, vector<16x1024xf32>
    tpu.vector_store %arg7[%c0_162, %c0_163], %651 {strides = array<i32>} : memref<16x1024xf32, #tpu.memory_space<vmem>>, vector<16x1024xf32>,
    return
  }
  func.func @transform_0(%arg0: i32) -> (i32, i32) {
    %c0_i32 = arith.constant 0 : i32
    %c0_i32_0 = arith.constant 0 : i32
    return %c0_i32, %arg0 : i32, i32
  }
  func.func @transform_1(%arg0: i32) -> (i32, i32) {
    %c0_i32 = arith.constant 0 : i32
    %c0_i32_0 = arith.constant 0 : i32
    %c0_i32_1 = arith.constant 0 : i32
    return %c0_i32, %c0_i32_0 : i32, i32
  }
  func.func @transform_2(%arg0: i32) -> (i32, i32) {
    %c0_i32 = arith.constant 0 : i32
    %c0_i32_0 = arith.constant 0 : i32
    %c0_i32_1 = arith.constant 0 : i32
    return %c0_i32, %c0_i32_0 : i32, i32
  }
  func.func @transform_3(%arg0: i32) -> (i32, i32) {
    %c0_i32 = arith.constant 0 : i32
    %c0_i32_0 = arith.constant 0 : i32
    %c0_i32_1 = arith.constant 0 : i32
    return %c0_i32, %c0_i32_0 : i32, i32
  }
  func.func @transform_4(%arg0: i32) -> (i32, i32) {
    %c0_i32 = arith.constant 0 : i32
    %c0_i32_0 = arith.constant 0 : i32
    %c0_i32_1 = arith.constant 0 : i32
    return %c0_i32, %c0_i32_0 : i32, i32
  }
  func.func @transform_5(%arg0: i32) -> i32 {
    %c0_i32 = arith.constant 0 : i32
    %c0_i32_0 = arith.constant 0 : i32
    return %c0_i32 : i32
  }
  func.func @transform_6(%arg0: i32) -> (i32, i32) {
    %c0_i32 = arith.constant 0 : i32
    %c0_i32_0 = arith.constant 0 : i32
    return %c0_i32, %arg0 : i32, i32
  }
}

</mosaic_0001>

<bundles_post_ra>
// kernel: tpu_custom_call.1
= control target key start
LH: loop header
LB: loop body
LE: loop exit
PB: predicated region body
PF: predicated region fallthrough
CT: control target
= control target key end

     0   :  { %s6151_s0 = inlined_call_operand.hbm [shape: f32[16,2048], index: 0, kind: input, shape index: {}]   ;;  %s6152_s1 = inlined_call_operand.vmem [shape: f32[32,16], index: 1, kind: input, shape index: {}]   ;;  %s6153_s2 = inlined_call_operand.vmem [shape: f32[32,3], index: 2, kind: input, shape index: {}]   ;;  %s6154_s3 = inlined_call_operand.vmem [shape: f32[16,32], index: 3, kind: input, shape index: {}]   ;;  %s6155_s4 = inlined_call_operand.vmem [shape: f32[32,4], index: 4, kind: input, shape index: {}]   ;;  %s6156_s5 = inlined_call_operand.vmem [shape: f32[2], index: 5, kind: input, shape index: {}]   ;;  %s6157_s6 = inlined_call_operand.hbm [shape: f32[16,2048], index: 6, kind: output, shape index: {}]  }
   0x1   :  { %6218 = sst [smem:[#allocation56_spill]] %s6151_s0 }
   0x2   :  { %6219 = sst [smem:[#allocation57_spill]] %s6152_s1 }
   0x3   :  { %6220 = sst [smem:[#allocation58_spill]] %s6153_s2 }
   0x4   :  { %6221 = sst [smem:[#allocation59_spill]] %s6156_s5 }
   0x5   :  { %11 = vsyncpa [#allocation4], 0 }
   0x6   :  { %13 = vsyncpa [#allocation4 + $0x1], 0 }
   0x7   :  { %14 = vsyncpa [#allocation6], 0 }
   0x8   :  { %15 = vsyncpa [#allocation5], 0 }
   0x9   :  { %17 = vsyncpa [#allocation5 + $0x1], 0  ;;  %s4232_s21 = smov 0   ;;  %s4234_s22 = smov 0  }
   0xa   :  { %s4236_s23 = smov 0   ;;  %s4238_s24 = smov 0  }
   0xb LB: > { %s4253_s25 = sadd.s32 4294967295, %s4178_s24   ;;  %s3702_s26 = sadd.s32 4294967294, %s4178_s24   ;;  %s4178_s24 = sphi %s4238_s24, %s6343_s24   ;;  %s4174_s23 = sphi %s4236_s23, %s6342_s23   ;;  %s4170_s22 = sphi %s4234_s22, %s6341_s22   ;;  %s4166_s21 = sphi %s4232_s21, %s6340_s21  }
   0xc   : > { %s4257_s27 = sadd.s32 1, %s4178_s24   ;;  %s30_s28 = sadd.s32 1, %s4174_s23 }
   0xd   : > { %s27_s29 = ssub.s32 %s4178_s24, %s4257_s27  ;;  %p37_p0 = scmp.ne.s32.totalorder %s4174_s23, %s4170_s22 }
   0xe   : > { %p28_p1 = scmp.eq.s32.totalorder %s27_s29, 0  ;;  %p38_p2 = scmp.eq.s32.totalorder %s4178_s24, 0 }
   0xf   : > { %p43_p3 = scmp.ne.s32.totalorder %s4170_s22, %s4166_s21  ;;  %p6159_p4 = scmp.eq.s32.totalorder %s4253_s25, 0 }
  0x10   : > { %s4269_s30 = scalar_select %p28_p1, %s4174_s23, %s30_s28  }
  0x11   : > { %p4271_p5 = por %p38_p2, %p37_p0  ;;  %p4277_p6 = por %p6159_p4, %p43_p3 }
  0x12   : > { %p172_p7 = scmp.eq.s32.totalorder %s4253_s25, 1  ;;  %p178_p8 = scmp.eq.s32.totalorder %s3702_s26, 1 }
  0x13   : > { %s6223_s8 = scalar_select %p4277_p6, 1, 0 }
  0x14   : > { %p3703_p9 = scmp.ge.s32.totalorder %s4178_s24, 1  ;;  %p185_p10 = scmp.lt.s32.totalorder %s4178_s24, 3 }
  0x15   : > { %p4284_p11 = por %p172_p7, %p37_p0  ;;  %p4288_p12 = por %p178_p8, %p43_p3 }
  0x16   : > { %p4292_p13 = pnand %p3703_p9, %p185_p10  ;;  %s6227_s5 = sld [smem:[#allocation59_spill]] }
  0x17   : > { %s6224_s9 = scalar_select %p4284_p11, 1, 0 }
  0x18   : > { %s6225_s10 = scalar_select %p4288_p12, 1, 0 }
  0x19   : > { %p3897_p1 = pneg %p4292_p13  ;;  %p3910_p2 = scmp.lt.s32.totalorder %s4178_s24, 2 }
  0x1a   : > { %s221_s16 = sand.u32 1, %s4174_s23  }
  0x1b   : > { %p4305_p7 = pnand %p3897_p1, %p6159_p4  ;;  %p4312_p3 = pnand %p3910_p2, %p4271_p5 }
  0x1c   : > { %s210_s14 = sshll.u32 %s6227_s5, 4  ;;  %s3706_s18 = sshll.u32 %s221_s16, 7  ;;  %s211_s14 = int_to_ptr.vmem [resolvable:$true] %s210_s14 }
  0x1d   : > { %s4063_s19 = scalar_lea.vmem %s211_s14, 16  ;;  %p4065_p9 = pneg %p4305_p7 }
  0x1e   : > { %p4064_p8 = scmp.ne.s32.totalorder %s211_s14, %s4063_s19  ;;  %p4071_p12 = scmp.lt.s32.totalorder %s211_s14, %s211_s14 }
  0x1f   : > { %p4072_p11 = scmp.lt.s32.totalorder %s4063_s19, %s4063_s19 }
  0x20   : > { %p4066_p10 = pnand %p4065_p9, %p4064_p8 }
  0x21   : > { %p4073_p1 = por %p4072_p11, %p4071_p12 }
  0x22   : > { %p4067_p0 = pneg %p4066_p10 }
  0x24   : > { %p4074_p4 = pnand %p4073_p1, %p4067_p0 }
  0x26   : > { %4077 = shalt.err (!%p4074_p4)
}
  0x27   : > { %s4180_s20 = smov [#allocation7]   ;;  %s3743_s26 = sshll.u32 %s4178_s24, 10 }
  0x28   : > { %3900 = dma.vmem_to_smem (!%p4305_p7), %s211_s14, 16, %s4180_s20, [#allocation6]  }
  0x29   : > { %s225_s28 = scalar_lea.vmem [#allocation3], %s3706_s18  ;;  %s6230_s0 = sld [smem:[#allocation56_spill]] }
  0x2a   : > { %s232_s29 = sshll.u32 %s225_s28, 4  ;;  %s4328_s19 = scalar_lea.sflag [#allocation4], %s221_s16  ;;  %s4326_s29 = int_to_ptr.vmem [resolvable:$true] %s232_s29 }
  0x2b   : > { %p4080_p5 = pneg %p4312_p3 }
  0x2f   : > { %s4324_s13 = scalar_lea.hbm %s6230_s0, %s3743_s26  ;;  %s4083_s20 = scalar_lea.hbm %s6230_s0, 4096 }
  0x30   : > { %s4078_s15 = scalar_lea.hbm %s4324_s13, 2048  ;;  %p4084_p0 = scmp.lt.u32.totalorder %s4324_s13, %s6230_s0 }
  0x31   : > { %p4079_p4 = scmp.ne.s32.totalorder %s4324_s13, %s4078_s15  ;;  %p4085_p2 = scmp.lt.u32.totalorder %s4083_s20, %s4078_s15 }
  0x32   : > { %p4087_p8 = scmp.lt.u32.totalorder %s4078_s15, %s4324_s13 }
  0x33   : > { %p4081_p11 = pnand %p4080_p5, %p4079_p4  ;;  %p4086_p7 = por %p4085_p2, %p4084_p0 }
  0x35   : > { %p4082_p12 = pneg %p4081_p11  ;;  %p4088_p9 = por %p4087_p8, %p4086_p7 }
  0x37   : > { %p4089_p10 = pnand %p4088_p9, %p4082_p12 }
  0x39   : > { %4092 = shalt.err (!%p4089_p10)
}
  0x3a   : > { %s4093_s16 = scalar_lea.vmem %s4326_s29, 2048  ;;  %s4181_s7 = smov [#allocation3]  }
  0x3b   : > { %p4094_p1 = scmp.ne.s32.totalorder %s4326_s29, %s4093_s16  ;;  %s4098_s12 = sshll.u32 %s4181_s7, 4  ;;  %s4099_s12 = int_to_ptr.vmem [resolvable:$false] %s4098_s12 }
  0x3c   : > { %s4100_s14 = scalar_lea.vmem %s4099_s12, 4096  ;;  %p4101_p6 = scmp.lt.s32.totalorder %s4326_s29, %s4099_s12 }
  0x3d   : > { %p4096_p4 = pnand %p4094_p1, %p4080_p5  ;;  %p4102_p0 = scmp.lt.s32.totalorder %s4100_s14, %s4093_s16 }
  0x3f   : > { %p4097_p11 = pneg %p4096_p4  ;;  %p4103_p2 = por %p4102_p0, %p4101_p6 }
  0x41   : > { %p4104_p7 = pnand %p4103_p2, %p4097_p11 }
  0x43   : > { %4107 = shalt.err (!%p4104_p7)
}
  0x44   : > { %s4182_s15 = smov 2048   ;;  %s4183_s18 = smov 1024  }
  0x45   : > { %s4184_s20 = smov 64   ;;  %244 = sbr.rel (%p4292_p13) target bundleno = 7413 (0x1cf5), region = 44 }
  0x46   : > { %3904 = dma.hbm_to_vmem [thread:$0]  (!%p4312_p3), %s4324_s13, 2048, %s4326_s29, %s4328_s19, %s4182_s15, %s4183_s18, %s4184_s20  }
  0x4c   : > { %s4359_s26 = sand.u32 1, %s4170_s22   ;;  %p6231_p6 = scmp.ne.s32.totalorder %s6223_s8, 0 }
  0x4d   : > { %s6161_s28 = sshll.u32 %s4359_s26, 7  ;;  %s247_s16 = scalar_lea.sflag [#allocation4], %s4359_s26 }
  0x4e   : > { %s4365_s7 = scalar_lea.vmem [#allocation3], %s6161_s28 }
  0x4f   : > { %4153 = dma.done.wait (%p6231_p6), %s247_s16, 2048  }
  0x50   : > { %4155 = vsyncadd (%p6231_p6), %s247_s16, 4294965248  ;;  %p6232_p3 = scmp.eq.s32.totalorder %s4253_s25, 0 }
  0x52   : > { %4157 = dma.done.wait (%p6232_p3), [#allocation6], 16   ;;  %p6233_p13 = pmov %p6232_p3 }
  0x54   : > { %4159 = vsyncadd (%p6233_p13), [#allocation6], 4294967280 }
  0x55   : > { %259 = sfence }
  0x56   : > { %v309_v0 = vld [vmem:[%s4365_s7 + $0x8] sm:$0xff]  ;;  %v308_v2 = vld [vmem:[%s4365_s7] sm:$0xff]  ;;  %v6170_v5 = vmov 0.0   ;;  %s6234_s1 = sld [smem:[#allocation57_spill]]  ;;  %vm324_vm0 = vcmask 130048   ;;  %s298_s15 = sld [smem:[#allocation7]] }
  0x57   : > { %v317_v1 = vld [vmem:[%s4365_s7 + $0x48] sm:$0xff]  ;;  %v316_v4 = vld [vmem:[%s4365_s7 + $0x40] sm:$0xff]  ;;  %401 = vmatprep.mubr.f32.mxu0 %v6170_v5  ;;  %490 = vmatprep.mubr.f32.mxu1 %v6170_v5  ;;  %v6172_v51 = vmov 0   ;;  %v4452_v55 = vld [vmem:[%s6155_s4 + $0x10] sm:$0xff]  ;;  %s6235_s2 = sld [smem:[#allocation58_spill]]  ;;  %p6337_p12 = scmp.ne.s32.totalorder %s6224_s9, 0 }
  0x58   : > { %v3745_v3 = vpack.c.bf16 %v317_v1, %v309_v0  ;;  %v3747_v6 = vpack.c.bf16 %v316_v4, %v308_v2  ;;  %3961 = vset.pattern.permute.xlu0 %v6172_v51  ;;  %3960 = vset.pattern.permute.xlu1 %v6172_v51  ;;  %v4457_v56 = vld [vmem:[%s6155_s4] sm:$0xff]  ;;  %v4462_v57 = vld [vmem:[%s6155_s4 + $0x8] sm:$0xff]  ;;  %v4470_v1 = vld [vmem:[%s6155_s4 + $0x18] sm:$0xff] }
  0x5a   : > { %3746 = vmatprep.subr.bf16.mxu0 %v3745_v3 }
  0x5b   : > { %3748 = vmatpush1.bf16.msra.mxu0 %v3747_v6 }
  0x5c   : > { %v4384_v7 = vld [vmem:[%s6234_s1] sm:$0xff]  ;;  %v4392_v8 = vld [vmem:[%s6234_s1 + $0x8] sm:$0xff]  ;;  %v4400_v9 = vld [vmem:[%s6234_s1 + $0x10] sm:$0xff]  ;;  %v4415_v13 = vstv %s298_s15 }
  0x5d   : > { %v4408_v10 = vld [vmem:[%s6234_s1 + $0x18] sm:$0xff]  ;;  %v290_v6 = vld [vmem:[%s6235_s2] sm:$0xff] }
  0x5e   : > { %3714 = vmatmul.mubr.msk.f32.vlgmr.msra.gmra.mrb[0].mxu0 %vm324_vm0, %v4384_v7 }
  0x5f   : > { %407 = vmatprep.mubr.f32.mxu0 %v6170_v5 }
  0x62   : > { %3715 = vmatmul.mubr.msk.f32.gmra.mrb[2].mxu0 %vm324_vm0, %v4392_v8 }
  0x63   : > { %413 = vmatprep.mubr.f32.mxu0 %v6170_v5 }
  0x66   : > { %3716 = vmatmul.mubr.msk.f32.gmra.mrb[4].mxu0 %vm324_vm0, %v4400_v9 }
  0x67   : > { %419 = vmatprep.mubr.f32.mxu0 %v6170_v5 }
  0x6a   : > { %3717 = vmatmul.mubr.msk.f32.gmra.mrb[6].mxu0 %vm324_vm0, %v4408_v10 }
  0x6b   : > { %579 = vmatprep.mubr.f32.mxu0 %v6170_v5 }
 0x131   : > { %v403_v11 = vpop.f32.mrb[0].mxu0 }
 0x132   : > { %v4413_v12 = vpop.f32.mrb[1].mxu0  ;;  %v726_v17 = vmul.f32 %v4415_v13, %v403_v11  ;;  %vm693_vm2 = vcmp.gt.f32.partialorder %v403_v11, 0.0 }
 0x133   : > { %vm694_vm10 = vcmp.gt.f32.partialorder %v4413_v12, 0.0 }
 0x134   : > { %v4426_v22 = vsel %vm693_vm2, %v403_v11, %v726_v17  ;;  %v6174_v11 = vmov 1   ;;  %v6168_v17 = vmov 2  }
 0x135   : > { %v409_v14 = vpop.f32.mrb[2].mxu0  ;;  %v838_v29 = vmul.f32 %v4426_v22, %v4426_v22 }
 0x136   : > { %v734_v15 = vmul.f32 %v4415_v13, %v409_v14  ;;  %v4418_v16 = vpop.f32.mrb[3].mxu0  ;;  %vm701_vm1 = vcmp.gt.f32.partialorder %v409_v14, 0.0 }
 0x137   : > { %vm702_vm9 = vcmp.gt.f32.partialorder %v4418_v16, 0.0 }
 0x138   : > { %v4421_v19 = vsel %vm701_vm1, %v409_v14, %v734_v15  ;;  %v292_v14 = vld [vmem:[%s6235_s2 + $0x10] sm:$0xff]  ;;  %v291_v15 = vld [vmem:[%s6235_s2 + $0x8] sm:$0xff] }
 0x139   : > { %v415_v18 = vpop.f32.mrb[4].mxu0  ;;  %v839_v24 = vmul.f32 %v4421_v19, %v4421_v19  ;;  %v826_v26 = vadd.f32 %v4421_v19, %v4426_v22 }
 0x13a   : > { %vm709_vm3 = vcmp.gt.f32.partialorder %v415_v18, 0.0  ;;  %v742_v20 = vmul.f32 %v4415_v13, %v415_v18  ;;  %v4424_v21 = vpop.f32.mrb[5].mxu0 }
 0x13b   : > { %v842_v35 = vadd.f32 %v839_v24, %v838_v29  ;;  %vm710_vm13 = vcmp.gt.f32.partialorder %v4424_v21, 0.0 }
 0x13c   : > { %v4428_v23 = vsel %vm709_vm3, %v415_v18, %v742_v20 }
 0x13d   : > { %v421_v25 = vpop.f32.mrb[6].mxu0  ;;  %v827_v30 = vadd.f32 %v826_v26, %v4428_v23  ;;  %v840_v31 = vmul.f32 %v4428_v23, %v4428_v23 }
 0x13e   : > { %vm717_vm4 = vcmp.gt.f32.partialorder %v421_v25, 0.0  ;;  %v750_v27 = vmul.f32 %v4415_v13, %v421_v25  ;;  %v4435_v28 = vpop.f32.mrb[7].mxu0 }
 0x13f   : > { %v843_v36 = vadd.f32 %v842_v35, %v840_v31  ;;  %v293_v31 = vld [vmem:[%s6235_s2 + $0x18] sm:$0xff]  ;;  %vm718_vm14 = vcmp.gt.f32.partialorder %v4435_v28, 0.0 }
 0x140   : > { %v4442_v32 = vsel %vm717_vm4, %v421_v25, %v750_v27 }
 0x141   : > { %v828_v33 = vadd.f32 %v827_v30, %v4442_v32  ;;  %v841_v34 = vmul.f32 %v4442_v32, %v4442_v32 }
 0x143   : > { %829 = vadd.xlane.f32.xlu0 %v828_v33  ;;  %v844_v37 = vadd.f32 %v843_v36, %v841_v34 }
 0x147   : > { %845 = vadd.xlane.f32.xlu0 %v844_v37 }
 0x1d0   : > { %v830_v38 = vpop.xlane.xlu0 %829 }
 0x1d1   : > { %v831_v39 = vrot.slane %v830_v38, 4 }
 0x1d3   : > { %v832_v40 = vadd.f32 %v831_v39, %v830_v38 }
 0x1d4   : > { %v846_v41 = vpop.xlane.xlu0 %845 }
 0x1d5   : > { %v847_v42 = vrot.slane %v846_v41, 4  ;;  %v833_v43 = vrot.slane %v832_v40, 2 }
 0x1d7   : > { %v848_v44 = vadd.f32 %v847_v42, %v846_v41  ;;  %v834_v45 = vadd.f32 %v833_v43, %v832_v40 }
 0x1d9   : > { %v835_v46 = vrot.slane %v834_v45, 1  ;;  %v849_v47 = vrot.slane %v848_v44, 2 }
 0x1db   : > { %v836_v48 = vadd.f32 %v835_v46, %v834_v45  ;;  %v850_v49 = vadd.f32 %v849_v47, %v848_v44 }
 0x1dd   : > { %3793 = vpush %v836_v48  ;;  %v851_v50 = vrot.slane %v850_v49, 1 }
 0x1df   : > { %v852_v52 = vadd.f32 %v851_v50, %v850_v49 }
 0x1e1   : > { %3795 = vpush %v852_v52 }
 0x20e   : > { %s3794_s18 = spop %3793 }
 0x20f   : > { %s854_s20 = smul.f32 0.00024414063, %s3794_s18  ;;  %s6162_s18 = smov 126  }
 0x211   : > { %s856_s16 = smul.f32 %s854_s20, %s854_s20  ;;  %v891_v61 = vstv %s854_s20 }
 0x212   : > { %s3796_s8 = spop %3795 }
 0x213   : > { %s855_s11 = smul.f32 0.00024414063, %s3796_s8 }
 0x215   : > { %s857_s17 = ssub.f32 %s855_s11, %s856_s16  ;;  %s6166_s11 = smov 1  }
 0x216   : > { %s3713_s16 = sld [smem:[#allocation7 + $0x1]] }
 0x217   : > { %s858_s29 = sadd.f32 1e-08, %s857_s17 }
 0x219   : > { %v859_v53 = vstv %s858_s29 }
 0x21a   : > { %4015 = vrsqrt.f32 %v859_v53 }
 0x224   : > { %v4016_v54 = vpop.eup %4015 }
 0x225   : > { %3797 = vpush %v4016_v54 }
 0x256   : > { %s3798_s15 = spop %3797 }
 0x257   : > { %v862_v58 = vstv %s3798_s15  ;;  %s6164_s15 = smov 2  }
 0x258   : > { %v865_v59 = vmul.f32 %v862_v58, %v4452_v55  ;;  %v863_v60 = vmul.f32 %v862_v58, %v4457_v56  ;;  %v864_v62 = vmul.f32 %v862_v58, %v4462_v57  ;;  %v866_v2 = vmul.f32 %v862_v58, %v4470_v1 }
 0x259   : > { %v300_v58 = vlaneseq }
 0x25a   : > { %v894_v63 = vmul.f32 %v891_v61, %v865_v59  ;;  %v892_v0 = vmul.f32 %v891_v61, %v863_v60  ;;  %v893_v3 = vmul.f32 %v891_v61, %v864_v62  ;;  %v895_v4 = vmul.f32 %v891_v61, %v866_v2 }
 0x25b   : > { %v4539_v61 = vand.u32 127, %v300_v58 }
 0x25c   : > { %904 = vrot.lane.b32.xlu0 %v894_v63, %s6166_s11  ;;  %900 = vrot.lane.b32.xlu1 %v892_v0, %s6166_s11 }
 0x25d   : > { %vm302_vm5 = vcmp.ge.s32.totalorder %v4539_v61, 2  ;;  %vm306_vm6 = vcmp.lt.s32.totalorder %v4539_v61, 126 }
 0x260   : > { %884 = vperm.xlu0 %3961, %v866_v2   ;;  %902 = vrot.lane.b32.xlu1 %v893_v3, %s6166_s11 }
 0x264   : > { %906 = vrot.lane.b32.xlu1 %v895_v4, %s6166_s11  ;;  %3964 = vset.pattern.permute.xlu0 %v6174_v11 }
 0x265   : > { %979 = vperm.xlu0 %3964, %v290_v6  }
 0x268   : > { %869 = vperm.xlu1 %3960, %v863_v60  }
 0x269   : > { %987 = vperm.xlu0 %3964, %v292_v14  }
 0x26c   : > { %874 = vperm.xlu1 %3960, %v864_v62  }
 0x26d   : > { %3968 = vset.pattern.permute.xlu0 %v6168_v17 }
 0x26e   : > { %1021 = vperm.xlu0 %3968, %v291_v15  }
 0x270   : > { %879 = vperm.xlu1 %3960, %v865_v59  }
 0x272   : > { %1025 = vperm.xlu0 %3968, %v292_v14  }
 0x274   : > { %3962 = vset.pattern.permute.xlu1 %v6174_v11 }
 0x276   : > { %3971 = vset.pattern.permute.xlu0 %v6172_v51 }
 0x277   : > { %956 = vperm.xlu0 %3971, %v290_v6  }
 0x2ce   : > { %v901_v18 = vpop.permute.xlu1 %900  ;;  %v905_v26 = vpop.permute.xlu0 %904 }
 0x2cf   : > { %v912_v20 = vsub.f32 %v4457_v56, %v901_v18  ;;  %v914_v27 = vsub.f32 %v4452_v55, %v905_v26 }
 0x2d1   : > { %918 = vperm.xlu1 %3962, %v912_v20  }
 0x2d2   : > { %v903_v24 = vpop.permute.xlu1 %902 }
 0x2d3   : > { %v913_v25 = vsub.f32 %v4462_v57, %v903_v24 }
 0x2d5   : > { %923 = vperm.xlu1 %3962, %v913_v25  }
 0x2d6   : > { %v907_v29 = vpop.permute.xlu1 %906 }
 0x2d7   : > { %v915_v30 = vsub.f32 %v4470_v1, %v907_v29 }
 0x2d9   : > { %928 = vperm.xlu1 %3962, %v914_v27  }
 0x2dd   : > { %933 = vperm.xlu1 %3962, %v915_v30  }
 0x2df   : > { %v885_v43 = vpop.permute.xlu0 %884 }
 0x2e1   : > { %3963 = vset.pattern.permute.xlu1 %v6172_v51 }
 0x2e2   : > { %961 = vperm.xlu1 %3963, %v291_v15  }
 0x2e6   : > { %3965 = vset.pattern.permute.xlu1 %v6174_v11 }
 0x2e7   : > { %983 = vperm.xlu1 %3965, %v291_v15   ;;  %v870_v33 = vpop.permute.xlu1 %869 }
 0x2e8   : > { %v887_v36 = vmul.f32 %v870_v33, %v4426_v22  ;;  %v890_v22 = vmul.f32 %v885_v43, %v4442_v32  ;;  %v4525_v32 = vpop.permute.xlu0 %979  ;;  %v4558_v33 = vstv %s3713_s16 }
 0x2eb   : > { %3966 = vset.pattern.permute.xlu1 %v6172_v51  ;;  %v875_v34 = vpop.permute.xlu1 %874 }
 0x2ec   : > { %966 = vperm.xlu1 %3966, %v292_v14   ;;  %v888_v39 = vmul.f32 %v875_v34, %v4421_v19  ;;  %v4527_v50 = vpop.permute.xlu0 %987 }
 0x2ef   : > { %v880_v35 = vpop.permute.xlu1 %879 }
 0x2f0   : > { %3967 = vset.pattern.permute.xlu1 %v6168_v17  ;;  %v889_v42 = vmul.f32 %v880_v35, %v4428_v23  ;;  %v4531_v53 = vpop.permute.xlu0 %1021 }
 0x2f1   : > { %1017 = vperm.xlu1 %3967, %v290_v6  }
 0x2f4   : > { %v4535_v59 = vpop.permute.xlu0 %1025 }
 0x2f5   : > { %3969 = vset.pattern.permute.xlu1 %v6172_v51 }
 0x2f6   : > { %971 = vperm.xlu1 %3969, %v293_v31  }
 0x2f8   : > { %v4541_v62 = vpop.permute.xlu0 %956 }
 0x2fa   : > { %3970 = vset.pattern.permute.xlu1 %v6174_v11 }
 0x2fb   : > { %991 = vperm.xlu1 %3970, %v293_v31  }
 0x2ff   : > { %3972 = vset.pattern.permute.xlu1 %v6168_v17 }
 0x300   : > { %1029 = vperm.xlu1 %3972, %v293_v31  }
 0x304   : > { %3973 = vset.pattern.permute.xlu1 %v6172_v51 }
 0x350   : > { %v919_v37 = vpop.permute.xlu1 %918 }
 0x351   : > { %v936_v38 = vadd.f32 %v919_v37, %v887_v36 }
 0x353   : > { %940 = vrot.lane.b32.xlu1 %v936_v38, %s6164_s15  ;;  %v994_v15 = vmul.f32 %v4525_v32, %v936_v38 }
 0x354   : > { %v924_v40 = vpop.permute.xlu1 %923 }
 0x355   : > { %v937_v41 = vadd.f32 %v924_v40, %v888_v39 }
 0x357   : > { %1002 = vrot.lane.b32.xlu1 %v936_v38, %s6162_s18  ;;  %942 = vrot.lane.b32.xlu0 %v937_v41, %s6164_s15 }
 0x358   : > { %v929_v44 = vpop.permute.xlu1 %928 }
 0x359   : > { %v938_v45 = vadd.f32 %v929_v44, %v889_v42 }
 0x35b   : > { %944 = vrot.lane.b32.xlu0 %v938_v45, %s6164_s15  ;;  %v996_v40 = vmul.f32 %v4527_v50, %v938_v45 }
 0x35c   : > { %v934_v19 = vpop.permute.xlu1 %933 }
 0x35d   : > { %v939_v46 = vadd.f32 %v934_v19, %v890_v22 }
 0x35f   : > { %1004 = vrot.lane.b32.xlu0 %v937_v41, %s6162_s18  ;;  %946 = vrot.lane.b32.xlu1 %v939_v46, %s6164_s15 }
 0x361   : > { %v4517_v23 = vpop.permute.xlu1 %961 }
 0x363   : > { %1006 = vrot.lane.b32.xlu0 %v938_v45, %s6162_s18  ;;  %1008 = vrot.lane.b32.xlu1 %v939_v46, %s6162_s18 }
 0x366   : > { %v4519_v47 = vpop.permute.xlu1 %983 }
 0x367   : > { %v995_v27 = vmul.f32 %v4519_v47, %v937_v41 }
 0x36b   : > { %v4521_v48 = vpop.permute.xlu1 %966 }
 0x370   : > { %v4523_v49 = vpop.permute.xlu1 %1017 }
 0x375   : > { %v4529_v52 = vpop.permute.xlu1 %971 }
 0x37a   : > { %v4533_v54 = vpop.permute.xlu1 %991 }
 0x37b   : > { %v997_v41 = vmul.f32 %v4533_v54, %v939_v46 }
 0x37f   : > { %v4537_v60 = vpop.permute.xlu1 %1029 }
 0x3c5   : > { %v941_v63 = vpop.permute.xlu1 %940 }
 0x3c6   : > { %v950_v0 = vsel %vm302_vm5, %v941_v63, 0.0 }
 0x3c7   : > { %v974_v6 = vmul.f32 %v4541_v62, %v950_v0 }
 0x3c9   : > { %v943_v2 = vpop.permute.xlu0 %942  ;;  %v1003_v3 = vpop.permute.xlu1 %1002  ;;  %v998_v24 = vadd.f32 %v994_v15, %v974_v6 }
 0x3ca   : > { %v1012_v4 = vsel %vm306_vm6, %v1003_v3, 0.0  ;;  %v951_v14 = vsel %vm302_vm5, %v943_v2, 0.0  ;;  %v735_v3 = vmul.f32 %v4415_v13, %v4418_v16 }
 0x3cb   : > { %v1032_v18 = vmul.f32 %v4523_v49, %v1012_v4  ;;  %v975_v25 = vmul.f32 %v4517_v23, %v951_v14 }
 0x3cd   : > { %v945_v20 = vpop.permute.xlu0 %944  ;;  %v1036_v29 = vadd.f32 %v1032_v18, %v998_v24  ;;  %v999_v37 = vadd.f32 %v995_v27, %v975_v25  ;;  %v727_v18 = vmul.f32 %v4415_v13, %v4413_v12  ;;  %v4595_v27 = vsel %vm702_vm9, %v4418_v16, %v735_v3 }
 0x3ce   : > { %v952_v26 = vsel %vm302_vm5, %v945_v20, 0.0  ;;  %v743_v20 = vmul.f32 %v4415_v13, %v4424_v21 }
 0x3cf   : > { %v976_v34 = vmul.f32 %v4521_v48, %v952_v26  ;;  %vm1040_vm7 = vcmp.gt.f32.partialorder %v1036_v29, 0.0  ;;  %v1045_v42 = vmul.f32 %v4558_v33, %v1036_v29 }
 0x3d1   : > { %v1005_v30 = vpop.permute.xlu0 %1004  ;;  %v947_v31 = vpop.permute.xlu1 %946  ;;  %v1000_v19 = vadd.f32 %v996_v40, %v976_v34  ;;  %v4581_v14 = vsel %vm1040_vm7, %v1036_v29, %v1045_v42  ;;  %v4620_v40 = vsel %vm710_vm13, %v4424_v21, %v743_v20 }
 0x3d2   : > { %v1013_v35 = vsel %vm306_vm6, %v1005_v30, 0.0  ;;  %v953_v36 = vsel %vm302_vm5, %v947_v31, 0.0  ;;  %6236 = vst [vmem:[#allocation12_spill] sm:$0xff] %v4581_v14  ;;  %v1065_v30 = vmul.f32 %v4581_v14, %v4581_v14  ;;  %v751_v31 = vmul.f32 %v4415_v13, %v4435_v28 }
 0x3d3   : > { %v1033_v38 = vmul.f32 %v4531_v53, %v1013_v35  ;;  %v977_v39 = vmul.f32 %v4529_v52, %v953_v36 }
 0x3d5   : > { %v1037_v43 = vadd.f32 %v1033_v38, %v999_v37  ;;  %v1007_v44 = vpop.permute.xlu0 %1006  ;;  %v1009_v22 = vpop.permute.xlu1 %1008  ;;  %v1001_v58 = vadd.f32 %v997_v41, %v977_v39  ;;  %v4615_v38 = vsel %vm694_vm10, %v4413_v12, %v727_v18  ;;  %v1189_v39 = vmul.f32 %v4595_v27, %v4595_v27 }
 0x3d6   : > { %v1014_v63 = vsel %vm306_vm6, %v1007_v44, 0.0  ;;  %v1015_v0 = vsel %vm306_vm6, %v1009_v22, 0.0  ;;  %v1176_v44 = vadd.f32 %v4595_v27, %v4615_v38  ;;  %v4628_v22 = vsel %vm718_vm14, %v4435_v28, %v751_v31 }
 0x3d7   : > { %vm1041_vm8 = vcmp.gt.f32.partialorder %v1037_v43, 0.0  ;;  %v1046_v2 = vmul.f32 %v4558_v33, %v1037_v43  ;;  %v1034_v45 = vmul.f32 %v4535_v59, %v1014_v63  ;;  %v1035_v46 = vmul.f32 %v4537_v60, %v1015_v0 }
 0x3d8   : > { %v1188_v12 = vmul.f32 %v4615_v38, %v4615_v38  ;;  %v1177_v21 = vadd.f32 %v1176_v44, %v4620_v40  ;;  %v1191_v0 = vmul.f32 %v4628_v22, %v4628_v22 }
 0x3d9   : > { %v1038_v4 = vadd.f32 %v1034_v45, %v1000_v19  ;;  %v1039_v6 = vadd.f32 %v1035_v46, %v1001_v58  ;;  %v4583_v15 = vsel %vm1041_vm8, %v1037_v43, %v1046_v2  ;;  %v1190_v58 = vmul.f32 %v4620_v40, %v4620_v40 }
 0x3da   : > { %6237 = vst [vmem:[#allocation13_spill] sm:$0xff] %v4583_v15  ;;  %v1066_v24 = vmul.f32 %v4583_v15, %v4583_v15  ;;  %v1053_v29 = vadd.f32 %v4583_v15, %v4581_v14  ;;  %v1178_v63 = vadd.f32 %v1177_v21, %v4628_v22  ;;  %v1192_v2 = vadd.f32 %v1189_v39, %v1188_v12 }
 0x3db   : > { %v1047_v25 = vmul.f32 %v4558_v33, %v1038_v4  ;;  %vm1042_vm11 = vcmp.gt.f32.partialorder %v1038_v4, 0.0  ;;  %vm1043_vm12 = vcmp.gt.f32.partialorder %v1039_v6, 0.0  ;;  %v1048_v26 = vmul.f32 %v4558_v33, %v1039_v6 }
 0x3dc   : > { %v1069_v37 = vadd.f32 %v1066_v24, %v1065_v30  ;;  %v1193_v28 = vadd.f32 %v1192_v2, %v1190_v58 }
 0x3dd   : > { %v4604_v34 = vsel %vm1042_vm11, %v1038_v4, %v1047_v25  ;;  %v4606_v35 = vsel %vm1043_vm12, %v1039_v6, %v1048_v26 }
 0x3de   : > { %6238 = vst [vmem:[#allocation14_spill] sm:$0xff] %v4604_v34  ;;  %6239 = vst [vmem:[#allocation15_spill] sm:$0xff] %v4606_v35  ;;  %v1054_v16 = vadd.f32 %v1053_v29, %v4604_v34  ;;  %v1067_v36 = vmul.f32 %v4604_v34, %v4604_v34  ;;  %v1068_v42 = vmul.f32 %v4606_v35, %v4606_v35 }
 0x3df   : > { %v1194_v45 = vadd.f32 %v1193_v28, %v1191_v0 }
 0x3e0   : > { %v1055_v41 = vadd.f32 %v1054_v16, %v4606_v35  ;;  %v1070_v43 = vadd.f32 %v1069_v37, %v1067_v36 }
 0x3e2   : > { %1056 = vadd.xlane.f32.xlu0 %v1055_v41  ;;  %v1071_v19 = vadd.f32 %v1070_v43, %v1068_v42 }
 0x3e4   : > { %1072 = vadd.xlane.f32.xlu1 %v1071_v19 }
 0x3e6   : > { %1179 = vadd.xlane.f32.xlu0 %v1178_v63 }
 0x3ea   : > { %1195 = vadd.xlane.f32.xlu0 %v1194_v45 }
 0x46f   : > { %v1057_v46 = vpop.xlane.xlu0 %1056 }
 0x470   : > { %v1058_v3 = vrot.slane %v1057_v46, 4 }
 0x471   : > { %v1073_v4 = vpop.xlane.xlu1 %1072 }
 0x472   : > { %v1059_v6 = vadd.f32 %v1058_v3, %v1057_v46  ;;  %v1074_v18 = vrot.slane %v1073_v4, 4 }
 0x473   : > { %v1180_v37 = vpop.xlane.xlu0 %1179 }
 0x474   : > { %v1075_v20 = vadd.f32 %v1074_v18, %v1073_v4  ;;  %v1060_v24 = vrot.slane %v1059_v6, 2  ;;  %v1181_v41 = vrot.slane %v1180_v37, 4 }
 0x476   : > { %v1061_v25 = vadd.f32 %v1060_v24, %v1059_v6  ;;  %v1076_v26 = vrot.slane %v1075_v20, 2  ;;  %v1182_v43 = vadd.f32 %v1181_v41, %v1180_v37  ;;  %v319_v37 = vld [vmem:[%s4365_s7 + $0x58] sm:$0xff] }
 0x477   : > { %v1196_v39 = vpop.xlane.xlu0 %1195 }
 0x478   : > { %v1062_v29 = vrot.slane %v1061_v25, 1  ;;  %v1077_v30 = vadd.f32 %v1076_v26, %v1075_v20  ;;  %v1197_v42 = vrot.slane %v1196_v39, 4  ;;  %v1183_v12 = vrot.slane %v1182_v43, 2 }
 0x47a   : > { %v1063_v31 = vadd.f32 %v1062_v29, %v1061_v25  ;;  %v1078_v16 = vrot.slane %v1077_v30, 1  ;;  %v1198_v44 = vadd.f32 %v1197_v42, %v1196_v39  ;;  %v1184_v58 = vadd.f32 %v1183_v12, %v1182_v43  ;;  %v310_v39 = vld [vmem:[%s4365_s7 + $0x10] sm:$0xff] }
 0x47b   : > { %v318_v42 = vld [vmem:[%s4365_s7 + $0x50] sm:$0xff] }
 0x47c   : > { %3799 = vpush %v1063_v31  ;;  %v1079_v36 = vadd.f32 %v1078_v16, %v1077_v30  ;;  %v1199_v21 = vrot.slane %v1198_v44, 2  ;;  %v1185_v0 = vrot.slane %v1184_v58, 1  ;;  %v3751_v43 = vpack.c.bf16 %v318_v42, %v310_v39 }
 0x47e   : > { %3801 = vpush %v1079_v36  ;;  %v1200_v63 = vadd.f32 %v1199_v21, %v1198_v44  ;;  %v1186_v45 = vadd.f32 %v1185_v0, %v1184_v58  ;;  %v311_v36 = vld [vmem:[%s4365_s7 + $0x18] sm:$0xff] }
 0x47f   : > { %v3749_v41 = vpack.c.bf16 %v319_v37, %v311_v36 }
 0x480   : > { %v1201_v2 = vrot.slane %v1200_v63, 1 }
 0x481   : > { %3750 = vmatprep.subr.bf16.mxu1 %v3749_v41 }
 0x482   : > { %v1202_v46 = vadd.f32 %v1201_v2, %v1200_v63  ;;  %3752 = vmatpush1.bf16.msra.mxu1 %v3751_v43 }
 0x485   : > { %3718 = vmatmul.mubr.msk.f32.vlgmr.msra.gmra.mrb[0].mxu1 %vm324_vm0, %v4384_v7 }
 0x486   : > { %496 = vmatprep.mubr.f32.mxu1 %v6170_v5 }
 0x489   : > { %3719 = vmatmul.mubr.msk.f32.gmra.mrb[2].mxu1 %vm324_vm0, %v4392_v8 }
 0x48a   : > { %502 = vmatprep.mubr.f32.mxu1 %v6170_v5 }
 0x48d   : > { %3720 = vmatmul.mubr.msk.f32.gmra.mrb[4].mxu1 %vm324_vm0, %v4400_v9 }
 0x48e   : > { %508 = vmatprep.mubr.f32.mxu1 %v6170_v5 }
 0x491   : > { %3721 = vmatmul.mubr.msk.f32.gmra.mrb[6].mxu1 %vm324_vm0, %v4408_v10 }
 0x492   : > { %668 = vmatprep.mubr.f32.mxu1 %v6170_v5 }
 0x4ad   : > { %s3800_s8 = spop %3799 }
 0x4ae   : > { %s4638_s28 = smul.f32 0.00024414063, %s3800_s8 }
 0x4af   : > { %s3802_s20 = spop %3801 }
 0x4b0   : > { %s1083_s17 = smul.f32 %s4638_s28, %s4638_s28 }
 0x4b1   : > { %s1082_s29 = smul.f32 0.00024414063, %s3802_s20 }
 0x4b3   : > { %s1084_s13 = ssub.f32 %s1082_s29, %s1083_s17 }
 0x4b5   : > { %s1085_s19 = sadd.f32 1e-08, %s1084_s13 }
 0x4b7   : > { %v1086_v19 = vstv %s1085_s19 }
 0x4b8   : > { %4017 = vrsqrt.f32 %v1086_v19 }
 0x4c2   : > { %v4018_v28 = vpop.eup %4017 }
 0x4c3   : > { %3803 = vpush %v4018_v28 }
 0x4c4   : > { %3805 = vpush %v1186_v45 }
 0x4c5   : > { %3807 = vpush %v1202_v46 }
 0x4f4   : > { %s4642_s12 = spop %3803 }
 0x4f5   : > { %s3806_s14 = spop %3805 }
 0x4f6   : > { %s1204_s16 = smul.f32 0.00024414063, %s3806_s14  ;;  %s3808_s8 = spop %3807 }
 0x4f7   : > { %s1205_s20 = smul.f32 0.00024414063, %s3808_s8 }
 0x4f8   : > { %s1206_s17 = smul.f32 %s1204_s16, %s1204_s16  ;;  %v1241_v24 = vstv %s1204_s16 }
 0x4fa   : > { %s1207_s29 = ssub.f32 %s1205_s20, %s1206_s17 }
 0x4fc   : > { %s1208_s13 = sadd.f32 1e-08, %s1207_s29 }
 0x4fe   : > { %v1209_v3 = vstv %s1208_s13 }
 0x4ff   : > { %4019 = vrsqrt.f32 %v1209_v3 }
 0x509   : > { %v4020_v4 = vpop.eup %4019 }
 0x50a   : > { %3809 = vpush %v4020_v4 }
 0x53b   : > { %s3810_s19 = spop %3809 }
 0x53c   : > { %v1212_v6 = vstv %s3810_s19 }
 0x53d   : > { %v1213_v18 = vmul.f32 %v1212_v6, %v4457_v56  ;;  %v1214_v20 = vmul.f32 %v1212_v6, %v4462_v57  ;;  %v1215_v25 = vmul.f32 %v1212_v6, %v4452_v55  ;;  %v1216_v30 = vmul.f32 %v1212_v6, %v4470_v1 }
 0x53f   : > { %v1243_v26 = vmul.f32 %v1241_v24, %v1214_v20  ;;  %v1242_v29 = vmul.f32 %v1241_v24, %v1213_v18  ;;  %v1244_v31 = vmul.f32 %v1241_v24, %v1215_v25  ;;  %v1245_v16 = vmul.f32 %v1241_v24, %v1216_v30 }
 0x541   : > { %1252 = vrot.lane.b32.xlu0 %v1243_v26, %s6166_s11  ;;  %1250 = vrot.lane.b32.xlu1 %v1242_v29, %s6166_s11 }
 0x545   : > { %1219 = vperm.xlu0 %3971, %v1213_v18   ;;  %1254 = vrot.lane.b32.xlu1 %v1244_v31, %s6166_s11 }
 0x549   : > { %1256 = vrot.lane.b32.xlu1 %v1245_v16, %s6166_s11  ;;  %3974 = vset.pattern.permute.xlu0 %v6174_v11 }
 0x54d   : > { %1224 = vperm.xlu1 %3973, %v1214_v20  }
 0x551   : > { %1229 = vperm.xlu1 %3973, %v1215_v25  }
 0x555   : > { %1234 = vperm.xlu1 %3973, %v1216_v30  }
 0x559   : > { %3975 = vset.pattern.permute.xlu1 %v6174_v11 }
 0x5b3   : > { %v1253_v44 = vpop.permute.xlu0 %1252  ;;  %v1251_v12 = vpop.permute.xlu1 %1250 }
 0x5b4   : > { %v1263_v7 = vsub.f32 %v4462_v57, %v1253_v44  ;;  %v1262_v19 = vsub.f32 %v4457_v56, %v1251_v12 }
 0x5b6   : > { %1273 = vperm.xlu1 %3975, %v1263_v7   ;;  %1268 = vperm.xlu0 %3974, %v1262_v19  }
 0x5b7   : > { %v1255_v8 = vpop.permute.xlu1 %1254 }
 0x5b8   : > { %v1264_v21 = vsub.f32 %v4452_v55, %v1255_v8 }
 0x5ba   : > { %1278 = vperm.xlu0 %3974, %v1264_v21  }
 0x5bb   : > { %v1257_v9 = vpop.permute.xlu1 %1256 }
 0x5bc   : > { %v1265_v58 = vsub.f32 %v4470_v1, %v1257_v9 }
 0x5be   : > { %1283 = vperm.xlu1 %3975, %v1265_v58   ;;  %3976 = vset.pattern.permute.xlu0 %v6172_v51 }
 0x5c2   : > { %3977 = vset.pattern.permute.xlu1 %v6172_v51 }
 0x5c4   : > { %v1220_v0 = vpop.permute.xlu0 %1219 }
 0x5c5   : > { %v1237_v28 = vmul.f32 %v1220_v0, %v4615_v38 }
 0x5cc   : > { %v1225_v10 = vpop.permute.xlu1 %1224 }
 0x5cd   : > { %v1238_v45 = vmul.f32 %v1225_v10, %v4595_v27 }
 0x5d0   : > { %v1230_v63 = vpop.permute.xlu1 %1229 }
 0x5d1   : > { %v1239_v18 = vmul.f32 %v1230_v63, %v4620_v40  ;;  %v492_v40 = vpop.f32.mrb[0].mxu1 }
 0x5d2   : > { %v4688_v26 = vpop.f32.mrb[1].mxu1  ;;  %v728_v63 = vmul.f32 %v4415_v13, %v492_v40  ;;  %vm695_vm15 = vcmp.gt.f32.partialorder %v492_v40, 0.0 }
 0x5d3   : > { %v498_v29 = vpop.f32.mrb[2].mxu1  ;;  %vm696_vm10 = vcmp.gt.f32.partialorder %v4688_v26, 0.0 }
 0x5d4   : > { %v1235_v2 = vpop.permute.xlu1 %1234  ;;  %v4690_v30 = vpop.f32.mrb[3].mxu1  ;;  %v736_v0 = vmul.f32 %v4415_v13, %v498_v29  ;;  %vm703_vm1 = vcmp.gt.f32.partialorder %v498_v29, 0.0 }
 0x5d5   : > { %v1240_v25 = vmul.f32 %v1235_v2, %v4628_v22  ;;  %v504_v22 = vpop.f32.mrb[4].mxu1  ;;  %vm704_vm11 = vcmp.gt.f32.partialorder %v4690_v30, 0.0 }
 0x5d6   : > { %v4692_v31 = vpop.f32.mrb[5].mxu1  ;;  %vm711_vm2 = vcmp.gt.f32.partialorder %v504_v22, 0.0 }
 0x5d7   : > { %v4694_v16 = vpop.f32.mrb[6].mxu1  ;;  %vm712_vm14 = vcmp.gt.f32.partialorder %v4692_v31, 0.0 }
 0x5d8   : > { %v4696_v36 = vpop.f32.mrb[7].mxu1  ;;  %vm719_vm9 = vcmp.gt.f32.partialorder %v4694_v16, 0.0 }
 0x635   : > { %v1269_v46 = vpop.permute.xlu0 %1268  ;;  %v1274_v3 = vpop.permute.xlu1 %1273 }
 0x636   : > { %v1286_v4 = vadd.f32 %v1269_v46, %v1237_v28  ;;  %v1287_v6 = vadd.f32 %v1274_v3, %v1238_v45 }
 0x638   : > { %1290 = vrot.lane.b32.xlu0 %v1286_v4, %s6164_s15  ;;  %1292 = vrot.lane.b32.xlu1 %v1287_v6, %s6164_s15  ;;  %v1306_v44 = vmul.f32 %v1286_v4, %v4525_v32  ;;  %v1307_v10 = vmul.f32 %v1287_v6, %v4519_v47 }
 0x639   : > { %v1279_v20 = vpop.permute.xlu0 %1278 }
 0x63a   : > { %v1288_v24 = vadd.f32 %v1279_v20, %v1239_v18 }
 0x63c   : > { %1294 = vrot.lane.b32.xlu0 %v1288_v24, %s6164_s15  ;;  %1314 = vrot.lane.b32.xlu1 %v1286_v4, %s6162_s18  ;;  %v1308_v18 = vmul.f32 %v1288_v24, %v4527_v50 }
 0x63d   : > { %v1284_v38 = vpop.permute.xlu1 %1283 }
 0x63e   : > { %v1289_v27 = vadd.f32 %v1284_v38, %v1240_v25 }
 0x640   : > { %1316 = vrot.lane.b32.xlu0 %v1287_v6, %s6162_s18  ;;  %1296 = vrot.lane.b32.xlu1 %v1289_v27, %s6164_s15  ;;  %v1309_v38 = vmul.f32 %v1289_v27, %v4533_v54 }
 0x644   : > { %1318 = vrot.lane.b32.xlu0 %v1288_v24, %s6162_s18  ;;  %1320 = vrot.lane.b32.xlu1 %v1289_v27, %s6162_s18  ;;  %v744_v24 = vmul.f32 %v4415_v13, %v504_v22 }
 0x6aa   : > { %v1291_v37 = vpop.permute.xlu0 %1290  ;;  %v1293_v39 = vpop.permute.xlu1 %1292 }
 0x6ab   : > { %v1298_v41 = vsel %vm302_vm5, %v1291_v37, 0.0  ;;  %v1299_v43 = vsel %vm302_vm5, %v1293_v39, 0.0  ;;  %v4722_v37 = vsel %vm695_vm15, %v492_v40, %v728_v63  ;;  %v4724_v39 = vsel %vm703_vm1, %v498_v29, %v736_v0 }
 0x6ac   : > { %v1302_v42 = vmul.f32 %v1298_v41, %v4541_v62  ;;  %v1303_v9 = vmul.f32 %v1299_v43, %v4517_v23 }
 0x6ae   : > { %v1295_v12 = vpop.permute.xlu0 %1294  ;;  %v1315_v7 = vpop.permute.xlu1 %1314  ;;  %v1310_v21 = vadd.f32 %v1306_v44, %v1302_v42  ;;  %v1311_v6 = vadd.f32 %v1307_v10, %v1303_v9  ;;  %v1482_v9 = vmul.f32 %v4724_v39, %v4724_v39 }
 0x6af   : > { %v1300_v19 = vsel %vm302_vm5, %v1295_v12, 0.0  ;;  %v1322_v8 = vsel %vm306_vm6, %v1315_v7, 0.0 }
 0x6b0   : > { %v1326_v58 = vmul.f32 %v1322_v8, %v4523_v49  ;;  %v1304_v2 = vmul.f32 %v1300_v19, %v4521_v48 }
 0x6b2   : > { %v1330_v28 = vadd.f32 %v1326_v58, %v1310_v21  ;;  %v1317_v45 = vpop.permute.xlu0 %1316  ;;  %v1297_v46 = vpop.permute.xlu1 %1296  ;;  %v1312_v41 = vadd.f32 %v1308_v18, %v1304_v2  ;;  %v1481_v21 = vmul.f32 %v4722_v37, %v4722_v37 }
 0x6b3   : > { %v1323_v3 = vsel %vm306_vm6, %v1317_v45, 0.0  ;;  %v1301_v4 = vsel %vm302_vm5, %v1297_v46, 0.0  ;;  %v4746_v45 = vsel %vm711_vm2, %v504_v22, %v744_v24  ;;  %v752_v46 = vmul.f32 %v4415_v13, %v4694_v16 }
 0x6b4   : > { %v1327_v20 = vmul.f32 %v1323_v3, %v4531_v53  ;;  %v1305_v25 = vmul.f32 %v1301_v4, %v4529_v52  ;;  %v1338_v42 = vmul.f32 %v1330_v28, %v4558_v33  ;;  %vm1334_vm3 = vcmp.gt.f32.partialorder %v1330_v28, 0.0 }
 0x6b5   : > { %v1469_v3 = vadd.f32 %v4724_v39, %v4722_v37  ;;  %vm720_vm2 = vcmp.gt.f32.partialorder %v4696_v36, 0.0 }
 0x6b6   : > { %v1331_v43 = vadd.f32 %v1327_v20, %v1311_v6  ;;  %v1319_v44 = vpop.permute.xlu0 %1318  ;;  %v1321_v12 = vpop.permute.xlu1 %1320  ;;  %v1313_v7 = vadd.f32 %v1309_v38, %v1305_v25  ;;  %v4739_v63 = vsel %vm1334_vm3, %v1330_v28, %v1338_v42  ;;  %v1483_v25 = vmul.f32 %v4746_v45, %v4746_v45 }
 0x6b7   : > { %v1324_v19 = vsel %vm306_vm6, %v1319_v44, 0.0  ;;  %v1325_v27 = vsel %vm306_vm6, %v1321_v12, 0.0  ;;  %6240 = vst [vmem:[#allocation16_spill] sm:$0xff] %v4739_v63  ;;  %v1358_v6 = vmul.f32 %v4739_v63, %v4739_v63  ;;  %v1485_v38 = vadd.f32 %v1482_v9, %v1481_v21 }
 0x6b8   : > { %vm1335_vm4 = vcmp.gt.f32.partialorder %v1331_v43, 0.0  ;;  %v1339_v40 = vmul.f32 %v1331_v43, %v4558_v33  ;;  %v1328_v29 = vmul.f32 %v1324_v19, %v4535_v59  ;;  %v1329_v8 = vmul.f32 %v1325_v27, %v4537_v60 }
 0x6b9   : > { %v1470_v44 = vadd.f32 %v1469_v3, %v4746_v45  ;;  %v4770_v12 = vsel %vm719_vm9, %v4694_v16, %v752_v46 }
 0x6ba   : > { %v1332_v58 = vadd.f32 %v1328_v29, %v1312_v41  ;;  %v1333_v10 = vadd.f32 %v1329_v8, %v1313_v7  ;;  %v4741_v0 = vsel %vm1335_vm4, %v1331_v43, %v1339_v40  ;;  %v1484_v29 = vmul.f32 %v4770_v12, %v4770_v12 }
 0x6bb   : > { %6241 = vst [vmem:[#allocation17_spill] sm:$0xff] %v4741_v0  ;;  %v1359_v2 = vmul.f32 %v4741_v0, %v4741_v0  ;;  %v1346_v18 = vadd.f32 %v4741_v0, %v4739_v63  ;;  %v1471_v40 = vadd.f32 %v1470_v44, %v4770_v12  ;;  %v1486_v8 = vadd.f32 %v1485_v38, %v1483_v25 }
 0x6bc   : > { %v1340_v4 = vmul.f32 %v1332_v58, %v4558_v33  ;;  %vm1336_vm7 = vcmp.gt.f32.partialorder %v1332_v58, 0.0  ;;  %vm1337_vm8 = vcmp.gt.f32.partialorder %v1333_v10, 0.0  ;;  %v1341_v28 = vmul.f32 %v1333_v10, %v4558_v33 }
 0x6bd   : > { %v1362_v43 = vadd.f32 %v1359_v2, %v1358_v6  ;;  %v1487_v21 = vadd.f32 %v1486_v8, %v1484_v29 }
 0x6be   : > { %v4759_v22 = vsel %vm1336_vm7, %v1332_v58, %v1340_v4  ;;  %v4761_v20 = vsel %vm1337_vm8, %v1333_v10, %v1341_v28 }
 0x6bf   : > { %6242 = vst [vmem:[#allocation18_spill] sm:$0xff] %v4759_v22  ;;  %6243 = vst [vmem:[#allocation19_spill] sm:$0xff] %v4761_v20  ;;  %v1347_v41 = vadd.f32 %v1346_v18, %v4759_v22  ;;  %v1360_v42 = vmul.f32 %v4759_v22, %v4759_v22  ;;  %v1361_v7 = vmul.f32 %v4761_v20, %v4761_v20 }
 0x6c1   : > { %v1348_v24 = vadd.f32 %v1347_v41, %v4761_v20  ;;  %v1363_v19 = vadd.f32 %v1362_v43, %v1360_v42 }
 0x6c3   : > { %1349 = vadd.xlane.f32.xlu0 %v1348_v24  ;;  %v1364_v27 = vadd.f32 %v1363_v19, %v1361_v7 }
 0x6c5   : > { %1365 = vadd.xlane.f32.xlu1 %v1364_v27 }
 0x6c7   : > { %1472 = vadd.xlane.f32.xlu0 %v1471_v40 }
 0x6cb   : > { %1488 = vadd.xlane.f32.xlu0 %v1487_v21 }
 0x750   : > { %v1350_v16 = vpop.xlane.xlu0 %1349 }
 0x751   : > { %v1351_v9 = vrot.slane %v1350_v16, 4 }
 0x752   : > { %v1366_v58 = vpop.xlane.xlu1 %1365 }
 0x753   : > { %v1352_v10 = vadd.f32 %v1351_v9, %v1350_v16  ;;  %v1367_v2 = vrot.slane %v1366_v58, 4 }
 0x754   : > { %v1473_v25 = vpop.xlane.xlu0 %1472 }
 0x755   : > { %v1368_v46 = vadd.f32 %v1367_v2, %v1366_v58  ;;  %v1353_v3 = vrot.slane %v1352_v10, 2  ;;  %v1474_v44 = vrot.slane %v1473_v25, 4 }
 0x757   : > { %v1354_v4 = vadd.f32 %v1353_v3, %v1352_v10  ;;  %v1369_v28 = vrot.slane %v1368_v46, 2  ;;  %v1475_v7 = vadd.f32 %v1474_v44, %v1473_v25 }
 0x758   : > { %v1489_v38 = vpop.xlane.xlu0 %1488 }
 0x759   : > { %v1355_v18 = vrot.slane %v1354_v4, 1  ;;  %v1370_v6 = vadd.f32 %v1369_v28, %v1368_v46  ;;  %v1490_v24 = vrot.slane %v1489_v38, 4  ;;  %v1476_v27 = vrot.slane %v1475_v7, 2 }
 0x75b   : > { %v1356_v41 = vadd.f32 %v1355_v18, %v1354_v4  ;;  %v1371_v42 = vrot.slane %v1370_v6, 1  ;;  %v1491_v19 = vadd.f32 %v1490_v24, %v1489_v38  ;;  %v1477_v8 = vadd.f32 %v1476_v27, %v1475_v7 }
 0x75d   : > { %3811 = vpush %v1356_v41  ;;  %v1372_v43 = vadd.f32 %v1371_v42, %v1370_v6  ;;  %v1492_v29 = vrot.slane %v1491_v19, 2  ;;  %v1478_v16 = vrot.slane %v1477_v8, 1 }
 0x75f   : > { %3813 = vpush %v1372_v43  ;;  %v1493_v21 = vadd.f32 %v1492_v29, %v1491_v19  ;;  %v1479_v10 = vadd.f32 %v1478_v16, %v1477_v8 }
 0x761   : > { %v1494_v9 = vrot.slane %v1493_v21, 1 }
 0x763   : > { %v1495_v2 = vadd.f32 %v1494_v9, %v1493_v21 }
 0x78e   : > { %s3812_s14 = spop %3811 }
 0x78f   : > { %s4778_s16 = smul.f32 0.00024414063, %s3812_s14 }
 0x790   : > { %s3814_s8 = spop %3813 }
 0x791   : > { %s1376_s20 = smul.f32 %s4778_s16, %s4778_s16 }
 0x792   : > { %s1375_s17 = smul.f32 0.00024414063, %s3814_s8 }
 0x794   : > { %s1377_s29 = ssub.f32 %s1375_s17, %s1376_s20 }
 0x796   : > { %s1378_s13 = sadd.f32 1e-08, %s1377_s29 }
 0x798   : > { %v1379_v40 = vstv %s1378_s13 }
 0x799   : > { %4021 = vrsqrt.f32 %v1379_v40 }
 0x7a3   : > { %v4022_v58 = vpop.eup %4021 }
 0x7a4   : > { %3815 = vpush %v4022_v58 }
 0x7a5   : > { %3817 = vpush %v1479_v10 }
 0x7a6   : > { %3819 = vpush %v1495_v2 }
 0x7d5   : > { %s4782_s19 = spop %3815 }
 0x7d6   : > { %s3818_s14 = spop %3817 }
 0x7d7   : > { %s1497_s8 = smul.f32 0.00024414063, %s3818_s14  ;;  %s3820_s20 = spop %3819 }
 0x7d8   : > { %s1498_s17 = smul.f32 0.00024414063, %s3820_s20 }
 0x7d9   : > { %s1499_s29 = smul.f32 %s1497_s8, %s1497_s8  ;;  %v1534_v6 = vstv %s1497_s8 }
 0x7db   : > { %s1500_s13 = ssub.f32 %s1498_s17, %s1499_s29 }
 0x7dd   : > { %s1501_s18 = sadd.f32 1e-08, %s1500_s13 }
 0x7df   : > { %v1502_v46 = vstv %s1501_s18  ;;  %s6245_s18 = smov 126  }
 0x7e0   : > { %4023 = vrsqrt.f32 %v1502_v46 }
 0x7ea   : > { %v4024_v3 = vpop.eup %4023 }
 0x7eb   : > { %3821 = vpush %v4024_v3 }
 0x81c   : > { %s3822_s15 = spop %3821 }
 0x81d   : > { %v1505_v4 = vstv %s3822_s15  ;;  %s6244_s15 = smov 2  }
 0x81e   : > { %v1506_v28 = vmul.f32 %v1505_v4, %v4457_v56  ;;  %v1507_v18 = vmul.f32 %v1505_v4, %v4462_v57  ;;  %v1508_v41 = vmul.f32 %v1505_v4, %v4452_v55  ;;  %v1509_v25 = vmul.f32 %v1505_v4, %v4470_v1 }
 0x820   : > { %v1536_v42 = vmul.f32 %v1534_v6, %v1507_v18  ;;  %v1535_v43 = vmul.f32 %v1534_v6, %v1506_v28  ;;  %v1537_v38 = vmul.f32 %v1534_v6, %v1508_v41  ;;  %v1538_v44 = vmul.f32 %v1534_v6, %v1509_v25 }
 0x822   : > { %1545 = vrot.lane.b32.xlu0 %v1536_v42, %s6166_s11  ;;  %1543 = vrot.lane.b32.xlu1 %v1535_v43, %s6166_s11 }
 0x826   : > { %1512 = vperm.xlu0 %3976, %v1506_v28   ;;  %1547 = vrot.lane.b32.xlu1 %v1537_v38, %s6166_s11 }
 0x82a   : > { %1549 = vrot.lane.b32.xlu1 %v1538_v44, %s6166_s11  ;;  %3978 = vset.pattern.permute.xlu0 %v6174_v11 }
 0x82e   : > { %1517 = vperm.xlu1 %3977, %v1507_v18  }
 0x832   : > { %1522 = vperm.xlu1 %3977, %v1508_v41  }
 0x836   : > { %1527 = vperm.xlu1 %3977, %v1509_v25  }
 0x83a   : > { %3979 = vset.pattern.permute.xlu1 %v6174_v11 }
 0x894   : > { %v1546_v24 = vpop.permute.xlu0 %1545  ;;  %v1544_v7 = vpop.permute.xlu1 %1543 }
 0x895   : > { %v1556_v19 = vsub.f32 %v4462_v57, %v1546_v24  ;;  %v1555_v27 = vsub.f32 %v4457_v56, %v1544_v7 }
 0x897   : > { %1566 = vperm.xlu1 %3979, %v1556_v19   ;;  %1561 = vperm.xlu0 %3978, %v1555_v27  }
 0x898   : > { %v1548_v40 = vpop.permute.xlu1 %1547 }
 0x899   : > { %v1557_v29 = vsub.f32 %v4452_v55, %v1548_v40  ;;  %v729_v40 = vmul.f32 %v4415_v13, %v4688_v26 }
 0x89b   : > { %1571 = vperm.xlu0 %3978, %v1557_v29   ;;  %v737_v29 = vmul.f32 %v4415_v13, %v4690_v30 }
 0x89c   : > { %v1550_v8 = vpop.permute.xlu1 %1549 }
 0x89d   : > { %v1558_v21 = vsub.f32 %v4470_v1, %v1550_v8 }
 0x89f   : > { %1576 = vperm.xlu1 %3979, %v1558_v21   ;;  %3980 = vset.pattern.permute.xlu0 %v6172_v51 }
 0x8a3   : > { %3981 = vset.pattern.permute.xlu1 %v6172_v51 }
 0x8a5   : > { %v1513_v58 = vpop.permute.xlu0 %1512 }
 0x8a6   : > { %v1530_v56 = vmul.f32 %v1513_v58, %v4722_v37 }
 0x8ad   : > { %v1518_v16 = vpop.permute.xlu1 %1517 }
 0x8ae   : > { %v1531_v10 = vmul.f32 %v1518_v16, %v4724_v39 }
 0x8b1   : > { %v1523_v9 = vpop.permute.xlu1 %1522 }
 0x8b2   : > { %v1532_v4 = vmul.f32 %v1523_v9, %v4746_v45 }
 0x8b5   : > { %v1528_v57 = vpop.permute.xlu1 %1527 }
 0x8b6   : > { %v1533_v18 = vmul.f32 %v1528_v57, %v4770_v12 }
 0x916   : > { %v1562_v2 = vpop.permute.xlu0 %1561  ;;  %v1567_v46 = vpop.permute.xlu1 %1566 }
 0x917   : > { %v1579_v55 = vadd.f32 %v1562_v2, %v1530_v56  ;;  %v1580_v3 = vadd.f32 %v1567_v46, %v1531_v10 }
 0x919   : > { %1583 = vrot.lane.b32.xlu0 %v1579_v55, %s6244_s15  ;;  %1585 = vrot.lane.b32.xlu1 %v1580_v3, %s6244_s15  ;;  %v1599_v43 = vmul.f32 %v1579_v55, %v4525_v32  ;;  %v1600_v8 = vmul.f32 %v1580_v3, %v4519_v47 }
 0x91a   : > { %v1572_v1 = vpop.permute.xlu0 %1571 }
 0x91b   : > { %v1581_v28 = vadd.f32 %v1572_v1, %v1532_v4  ;;  %v4844_v1 = vsel %vm704_vm11, %v4690_v30, %v737_v29 }
 0x91d   : > { %1587 = vrot.lane.b32.xlu0 %v1581_v28, %s6244_s15  ;;  %1607 = vrot.lane.b32.xlu1 %v1579_v55, %s6245_s18  ;;  %v1601_v10 = vmul.f32 %v1581_v28, %v4527_v50 }
 0x91e   : > { %v1577_v37 = vpop.permute.xlu1 %1576 }
 0x91f   : > { %v1582_v39 = vadd.f32 %v1577_v37, %v1533_v18 }
 0x921   : > { %1609 = vrot.lane.b32.xlu0 %v1580_v3, %s6245_s18  ;;  %1589 = vrot.lane.b32.xlu1 %v1582_v39, %s6244_s15  ;;  %v4840_v3 = vsel %vm696_vm10, %v4688_v26, %v729_v40  ;;  %v1602_v4 = vmul.f32 %v1582_v39, %v4533_v54 }
 0x925   : > { %1611 = vrot.lane.b32.xlu0 %v1581_v28, %s6245_s18  ;;  %1613 = vrot.lane.b32.xlu1 %v1582_v39, %s6245_s18 }
 0x98b   : > { %v1584_v45 = vpop.permute.xlu0 %1583  ;;  %v1586_v6 = vpop.permute.xlu1 %1585 }
 0x98c   : > { %v1591_v41 = vsel %vm302_vm5, %v1584_v45, 0.0  ;;  %v1592_v42 = vsel %vm302_vm5, %v1586_v6, 0.0 }
 0x98d   : > { %v1595_v12 = vmul.f32 %v1591_v41, %v4541_v62  ;;  %v1596_v19 = vmul.f32 %v1592_v42, %v4517_v23 }
 0x98f   : > { %v1588_v25 = vpop.permute.xlu0 %1587  ;;  %v1608_v38 = vpop.permute.xlu1 %1607  ;;  %v1603_v7 = vadd.f32 %v1599_v43, %v1595_v12  ;;  %v1604_v2 = vadd.f32 %v1600_v8, %v1596_v19  ;;  %v745_v43 = vmul.f32 %v4415_v13, %v4692_v31  ;;  %v1775_v8 = vmul.f32 %v4844_v1, %v4844_v1 }
 0x990   : > { %v1593_v44 = vsel %vm302_vm5, %v1588_v25, 0.0  ;;  %v1615_v24 = vsel %vm306_vm6, %v1608_v38, 0.0 }
 0x991   : > { %v1619_v27 = vmul.f32 %v1615_v24, %v4523_v49  ;;  %v1597_v21 = vmul.f32 %v1593_v44, %v4521_v48 }
 0x993   : > { %v1623_v16 = vadd.f32 %v1619_v27, %v1603_v7  ;;  %v1610_v9 = vpop.permute.xlu0 %1609  ;;  %v1590_v58 = vpop.permute.xlu1 %1589  ;;  %v1605_v18 = vadd.f32 %v1601_v10, %v1597_v21  ;;  %v1774_v7 = vmul.f32 %v4840_v3, %v4840_v3  ;;  %v1762_v27 = vadd.f32 %v4844_v1, %v4840_v3 }
 0x994   : > { %v1616_v57 = vsel %vm306_vm6, %v1610_v9, 0.0  ;;  %v1594_v56 = vsel %vm302_vm5, %v1590_v58, 0.0  ;;  %v4872_v21 = vsel %vm712_vm14, %v4692_v31, %v745_v43  ;;  %v753_v58 = vmul.f32 %v4415_v13, %v4696_v36 }
 0x995   : > { %v1620_v46 = vmul.f32 %v1616_v57, %v4531_v53  ;;  %v1598_v55 = vmul.f32 %v1594_v56, %v4529_v52  ;;  %v1631_v37 = vmul.f32 %v1623_v16, %v4558_v33  ;;  %vm1627_vm12 = vcmp.gt.f32.partialorder %v1623_v16, 0.0 }
 0x997   : > { %v1624_v45 = vadd.f32 %v1620_v46, %v1604_v2  ;;  %v1612_v6 = vpop.permute.xlu0 %1611  ;;  %v1614_v41 = vpop.permute.xlu1 %1613  ;;  %v1606_v28 = vadd.f32 %v1602_v4, %v1598_v55  ;;  %v4857_v44 = vsel %vm1627_vm12, %v1623_v16, %v1631_v37  ;;  %v1763_v46 = vadd.f32 %v1762_v27, %v4872_v21 }
 0x998   : > { %v1617_v12 = vsel %vm306_vm6, %v1612_v6, 0.0  ;;  %v1618_v26 = vsel %vm306_vm6, %v1614_v41, 0.0  ;;  %6246 = vst [vmem:[#allocation20_spill] sm:$0xff] %v4857_v44  ;;  %v1651_v9 = vmul.f32 %v4857_v44, %v4857_v44  ;;  %v1776_v55 = vmul.f32 %v4872_v21, %v4872_v21 }
 0x999   : > { %vm1628_vm13 = vcmp.gt.f32.partialorder %v1624_v45, 0.0  ;;  %v1632_v39 = vmul.f32 %v1624_v45, %v4558_v33  ;;  %v1621_v30 = vmul.f32 %v1617_v12, %v4535_v59  ;;  %v1622_v42 = vmul.f32 %v1618_v26, %v4537_v60 }
 0x99a   : > { %v4895_v6 = vsel %vm720_vm2, %v4696_v36, %v753_v58 }
 0x99b   : > { %v1625_v25 = vadd.f32 %v1621_v30, %v1605_v18  ;;  %v1626_v38 = vadd.f32 %v1622_v42, %v1606_v28  ;;  %v4859_v24 = vsel %vm1628_vm13, %v1624_v45, %v1632_v39  ;;  %v1778_v45 = vadd.f32 %v1775_v8, %v1774_v7 }
 0x99c   : > { %6247 = vst [vmem:[#allocation21_spill] sm:$0xff] %v4859_v24  ;;  %v1652_v19 = vmul.f32 %v4859_v24, %v4859_v24  ;;  %v1639_v16 = vadd.f32 %v4859_v24, %v4857_v44  ;;  %v1764_v28 = vadd.f32 %v1763_v46, %v4895_v6  ;;  %v1777_v12 = vmul.f32 %v4895_v6, %v4895_v6 }
 0x99d   : > { %v1633_v40 = vmul.f32 %v1625_v25, %v4558_v33  ;;  %vm1629_vm15 = vcmp.gt.f32.partialorder %v1625_v25, 0.0  ;;  %vm1630_vm1 = vcmp.gt.f32.partialorder %v1626_v38, 0.0  ;;  %v1634_v29 = vmul.f32 %v1626_v38, %v4558_v33 }
 0x99e   : > { %v1655_v2 = vadd.f32 %v1652_v19, %v1651_v9  ;;  %v1779_v26 = vadd.f32 %v1778_v45, %v1776_v55 }
 0x99f   : > { %v4880_v57 = vsel %vm1629_vm15, %v1625_v25, %v1633_v40  ;;  %v4882_v56 = vsel %vm1630_vm1, %v1626_v38, %v1634_v29 }
 0x9a0   : > { %6248 = vst [vmem:[#allocation22_spill] sm:$0xff] %v4880_v57  ;;  %6249 = vst [vmem:[#allocation23_spill] sm:$0xff] %v4882_v56  ;;  %v1640_v10 = vadd.f32 %v1639_v16, %v4880_v57  ;;  %v1653_v31 = vmul.f32 %v4880_v57, %v4880_v57  ;;  %v1654_v18 = vmul.f32 %v4882_v56, %v4882_v56 }
 0x9a1   : > { %v1780_v39 = vadd.f32 %v1779_v26, %v1777_v12 }
 0x9a2   : > { %v1641_v4 = vadd.f32 %v1640_v10, %v4882_v56  ;;  %v1656_v37 = vadd.f32 %v1655_v2, %v1653_v31 }
 0x9a4   : > { %1642 = vadd.xlane.f32.xlu0 %v1641_v4  ;;  %v1657_v41 = vadd.f32 %v1656_v37, %v1654_v18 }
 0x9a6   : > { %1658 = vadd.xlane.f32.xlu1 %v1657_v41 }
 0x9a8   : > { %1765 = vadd.xlane.f32.xlu0 %v1764_v28 }
 0x9ac   : > { %1781 = vadd.xlane.f32.xlu0 %v1780_v39 }
 0xa31   : > { %v1643_v30 = vpop.xlane.xlu0 %1642 }
 0xa32   : > { %v1644_v42 = vrot.slane %v1643_v30, 4 }
 0xa33   : > { %v1659_v43 = vpop.xlane.xlu1 %1658 }
 0xa34   : > { %v1645_v25 = vadd.f32 %v1644_v42, %v1643_v30  ;;  %v1660_v38 = vrot.slane %v1659_v43, 4 }
 0xa35   : > { %v1766_v58 = vpop.xlane.xlu0 %1765 }
 0xa36   : > { %v1661_v7 = vadd.f32 %v1660_v38, %v1659_v43  ;;  %v1646_v36 = vrot.slane %v1645_v25, 2  ;;  %v1767_v31 = vrot.slane %v1766_v58, 4  ;;  %v4907_v43 = vld [vmem:[%s6155_s4] sm:$0xff]  ;;  %v4915_v38 = vld [vmem:[%s6155_s4 + $0x8] sm:$0xff] }
 0xa38   : > { %v1647_v19 = vadd.f32 %v1646_v36, %v1645_v25  ;;  %v1662_v27 = vrot.slane %v1661_v7, 2  ;;  %v1768_v46 = vadd.f32 %v1767_v31, %v1766_v58  ;;  %v4923_v36 = vld [vmem:[%s6155_s4 + $0x10] sm:$0xff] }
 0xa39   : > { %v1782_v10 = vpop.xlane.xlu0 %1781 }
 0xa3a   : > { %v1648_v40 = vrot.slane %v1647_v19, 1  ;;  %v1663_v29 = vadd.f32 %v1662_v27, %v1661_v7  ;;  %v1783_v2 = vrot.slane %v1782_v10, 4  ;;  %v1769_v4 = vrot.slane %v1768_v46, 2  ;;  %v4931_v27 = vld [vmem:[%s6155_s4 + $0x18] sm:$0xff] }
 0xa3c   : > { %v1649_v8 = vadd.f32 %v1648_v40, %v1647_v19  ;;  %v1664_v16 = vrot.slane %v1663_v29, 1  ;;  %v1784_v55 = vadd.f32 %v1783_v2, %v1782_v10  ;;  %v1770_v45 = vadd.f32 %v1769_v4, %v1768_v46 }
 0xa3e   : > { %3823 = vpush %v1649_v8  ;;  %v1665_v9 = vadd.f32 %v1664_v16, %v1663_v29  ;;  %v1785_v37 = vrot.slane %v1784_v55, 2  ;;  %v1771_v28 = vrot.slane %v1770_v45, 1 }
 0xa40   : > { %3825 = vpush %v1665_v9  ;;  %v1786_v41 = vadd.f32 %v1785_v37, %v1784_v55  ;;  %v1772_v39 = vadd.f32 %v1771_v28, %v1770_v45 }
 0xa42   : > { %v1787_v12 = vrot.slane %v1786_v41, 1 }
 0xa44   : > { %v1788_v30 = vadd.f32 %v1787_v12, %v1786_v41 }
 0xa6f   : > { %s3824_s14 = spop %3823 }
 0xa70   : > { %s4900_s8 = smul.f32 0.00024414063, %s3824_s14 }
 0xa71   : > { %s3826_s20 = spop %3825 }
 0xa72   : > { %s1669_s17 = smul.f32 %s4900_s8, %s4900_s8  ;;  %v1704_v29 = vstv %s4900_s8 }
 0xa73   : > { %s1668_s29 = smul.f32 0.00024414063, %s3826_s20 }
 0xa75   : > { %s1670_s13 = ssub.f32 %s1668_s29, %s1669_s17 }
 0xa77   : > { %s1671_s11 = sadd.f32 1e-08, %s1670_s13 }
 0xa79   : > { %v1672_v18 = vstv %s1671_s11 }
 0xa7a   : > { %4025 = vrsqrt.f32 %v1672_v18 }
 0xa84   : > { %v4026_v26 = vpop.eup %4025 }
 0xa85   : > { %3827 = vpush %v4026_v26  ;;  %v313_v26 = vld [vmem:[%s4365_s7 + $0x28] sm:$0xff] }
 0xa86   : > { %3829 = vpush %v1772_v39  ;;  %v321_v39 = vld [vmem:[%s4365_s7 + $0x68] sm:$0xff] }
 0xa87   : > { %3831 = vpush %v1788_v30  ;;  %v312_v30 = vld [vmem:[%s4365_s7 + $0x20] sm:$0xff] }
 0xab6   : > { %s3828_s14 = spop %3827 }
 0xab7   : > { %v1675_v42 = vstv %s3828_s14  ;;  %s3830_s20 = spop %3829 }
 0xab8   : > { %v4910_v25 = vmul.f32 %v4907_v43, %v1675_v42  ;;  %v4918_v7 = vmul.f32 %v4915_v38, %v1675_v42  ;;  %v4926_v19 = vmul.f32 %v4923_v36, %v1675_v42  ;;  %v4934_v40 = vmul.f32 %v4931_v27, %v1675_v42  ;;  %s1790_s29 = smul.f32 0.00024414063, %s3830_s20  ;;  %s3832_s11 = spop %3831 }
 0xab9   : > { %s1791_s13 = smul.f32 0.00024414063, %s3832_s11  ;;  %s6251_s20 = smov 1   ;;  %v3753_v42 = vpack.c.bf16 %v321_v39, %v313_v26 }
 0xaba   : > { %v4938_v8 = vmul.f32 %v1704_v29, %v4910_v25  ;;  %v4941_v16 = vmul.f32 %v1704_v29, %v4918_v7  ;;  %v4944_v9 = vmul.f32 %v1704_v29, %v4926_v19  ;;  %v4947_v58 = vmul.f32 %v1704_v29, %v4934_v40  ;;  %s1792_s0 = smul.f32 %s1790_s29, %s1790_s29  ;;  %v320_v29 = vld [vmem:[%s4365_s7 + $0x60] sm:$0xff] }
 0xabb   : > { %v1827_v4 = vstv %s1790_s29  ;;  %3754 = vmatprep.subr.bf16.mxu0 %v3753_v42 }
 0xabc   : > { %6250 = vst [vmem:[#allocation24_spill] sm:$0xff] %v4944_v9  ;;  %s1793_s2 = ssub.f32 %s1791_s13, %s1792_s0 }
 0xabe   : > { %s1794_s14 = sadd.f32 1e-08, %s1793_s2 }
 0xac0   : > { %v1795_v10 = vstv %s1794_s14 }
 0xac1   : > { %4027 = vrsqrt.f32 %v1795_v10  ;;  %v3755_v10 = vpack.c.bf16 %v320_v29, %v312_v30 }
 0xac3   : > { %3756 = vmatpush1.bf16.msra.mxu0 %v3755_v10 }
 0xacb   : > { %v4028_v31 = vpop.eup %4027 }
 0xacc   : > { %3833 = vpush %v4028_v31  ;;  %v4966_v31 = vld [vmem:[%s6234_s1] sm:$0xff] }
 0xacd   : > { %3722 = vmatmul.mubr.msk.f32.vlgmr.msra.gmra.mrb[8].mxu0 %vm324_vm0, %v4966_v31 }
 0xace   : > { %585 = vmatprep.mubr.f32.mxu0 %v6170_v5 }
 0xafd   : > { %s3834_s8 = spop %3833 }
 0xafe   : > { %v1798_v2 = vstv %s3834_s8 }
 0xaff   : > { %v1799_v46 = vmul.f32 %v4907_v43, %v1798_v2  ;;  %v1800_v55 = vmul.f32 %v4915_v38, %v1798_v2  ;;  %v1801_v18 = vmul.f32 %v4923_v36, %v1798_v2  ;;  %v1802_v41 = vmul.f32 %v4931_v27, %v1798_v2  ;;  %v4974_v2 = vld [vmem:[%s6234_s1 + $0x8] sm:$0xff] }
 0xb00   : > { %3723 = vmatmul.mubr.msk.f32.gmra.mrb[10].mxu0 %vm324_vm0, %v4974_v2 }
 0xb01   : > { %v1829_v37 = vmul.f32 %v1827_v4, %v1800_v55  ;;  %v1828_v45 = vmul.f32 %v1827_v4, %v1799_v46  ;;  %v1830_v28 = vmul.f32 %v1827_v4, %v1801_v18  ;;  %v1831_v12 = vmul.f32 %v1827_v4, %v1802_v41  ;;  %591 = vmatprep.mubr.f32.mxu0 %v6170_v5 }
 0xb03   : > { %1838 = vrot.lane.b32.xlu0 %v1829_v37, %s6251_s20  ;;  %1836 = vrot.lane.b32.xlu1 %v1828_v45, %s6251_s20 }
 0xb07   : > { %1805 = vperm.xlu0 %3980, %v1799_v46   ;;  %1840 = vrot.lane.b32.xlu1 %v1830_v28, %s6251_s20  ;;  %v4982_v46 = vld [vmem:[%s6234_s1 + $0x10] sm:$0xff] }
 0xb08   : > { %3724 = vmatmul.mubr.msk.f32.gmra.mrb[12].mxu0 %vm324_vm0, %v4982_v46 }
 0xb09   : > { %597 = vmatprep.mubr.f32.mxu0 %v6170_v5 }
 0xb0b   : > { %1842 = vrot.lane.b32.xlu1 %v1831_v12, %s6251_s20  ;;  %3982 = vset.pattern.permute.xlu0 %v6174_v11 }
 0xb0f   : > { %1810 = vperm.xlu1 %3981, %v1800_v55   ;;  %v4990_v55 = vld [vmem:[%s6234_s1 + $0x18] sm:$0xff] }
 0xb10   : > { %3725 = vmatmul.mubr.msk.f32.gmra.mrb[14].mxu0 %vm324_vm0, %v4990_v55 }
 0xb11   : > { %3343 = vmatprep.mubr.f32.mxu0 %v6170_v5 }
 0xb13   : > { %1815 = vperm.xlu1 %3981, %v1801_v18  }
 0xb17   : > { %1820 = vperm.xlu1 %3981, %v1802_v41  }
 0xb1b   : > { %3983 = vset.pattern.permute.xlu1 %v6174_v11 }
 0xb75   : > { %v1839_v4 = vpop.permute.xlu0 %1838  ;;  %v1837_v18 = vpop.permute.xlu1 %1836 }
 0xb76   : > { %v1849_v37 = vsub.f32 %v4915_v38, %v1839_v4  ;;  %v1848_v45 = vsub.f32 %v4907_v43, %v1837_v18 }
 0xb78   : > { %1859 = vperm.xlu1 %3983, %v1849_v37   ;;  %1854 = vperm.xlu0 %3982, %v1848_v45  }
 0xb79   : > { %v1841_v41 = vpop.permute.xlu1 %1840 }
 0xb7a   : > { %v1850_v28 = vsub.f32 %v4923_v36, %v1841_v41 }
 0xb7c   : > { %1864 = vperm.xlu0 %3982, %v1850_v28  }
 0xb7d   : > { %v1843_v12 = vpop.permute.xlu1 %1842 }
 0xb7e   : > { %v1851_v26 = vsub.f32 %v4931_v27, %v1843_v12 }
 0xb80   : > { %1869 = vperm.xlu1 %3983, %v1851_v26   ;;  %3984 = vset.pattern.permute.xlu0 %v6172_v51 }
 0xb84   : > { %3985 = vset.pattern.permute.xlu1 %v6172_v51 }
 0xb86   : > { %v1806_v42 = vpop.permute.xlu0 %1805 }
 0xb87   : > { %v1823_v10 = vmul.f32 %v1806_v42, %v4840_v3 }
 0xb8e   : > { %v1811_v39 = vpop.permute.xlu1 %1810 }
 0xb8f   : > { %v1824_v4 = vmul.f32 %v1811_v39, %v4844_v1 }
 0xb92   : > { %v1816_v30 = vpop.permute.xlu1 %1815 }
 0xb93   : > { %v1825_v28 = vmul.f32 %v1816_v30, %v4872_v21 }
 0xb96   : > { %v1821_v29 = vpop.permute.xlu1 %1820 }
 0xb97   : > { %v1826_v17 = vmul.f32 %v1821_v29, %v4895_v6 }
 0xba0   : > { %v581_v21 = vpop.f32.mrb[8].mxu0 }
 0xba1   : > { %v5013_v39 = vpop.f32.mrb[9].mxu0  ;;  %v730_v15 = vmul.f32 %v4415_v13, %v581_v21  ;;  %vm697_vm3 = vcmp.gt.f32.partialorder %v581_v21, 0.0 }
 0xba2   : > { %vm698_vm13 = vcmp.gt.f32.partialorder %v5013_v39, 0.0 }
 0xbd3   : > { %v587_v30 = vpop.f32.mrb[10].mxu0 }
 0xbd4   : > { %v5015_v42 = vpop.f32.mrb[11].mxu0  ;;  %vm705_vm4 = vcmp.gt.f32.partialorder %v587_v30, 0.0 }
 0xbd5   : > { %vm706_vm14 = vcmp.gt.f32.partialorder %v5015_v42, 0.0 }
 0xbdb   : > { %v593_v6 = vpop.f32.mrb[12].mxu0 }
 0xbdc   : > { %v5017_v29 = vpop.f32.mrb[13].mxu0  ;;  %vm713_vm7 = vcmp.gt.f32.partialorder %v593_v6, 0.0 }
 0xbdd   : > { %vm714_vm2 = vcmp.gt.f32.partialorder %v5017_v29, 0.0 }
 0xbf7   : > { %v1855_v18 = vpop.permute.xlu0 %1854  ;;  %v1860_v37 = vpop.permute.xlu1 %1859 }
 0xbf8   : > { %v1872_v45 = vadd.f32 %v1855_v18, %v1823_v10  ;;  %v1873_v41 = vadd.f32 %v1860_v37, %v1824_v4  ;;  %v5019_v10 = vpop.f32.mrb[14].mxu0 }
 0xbf9   : > { %vm721_vm12 = vcmp.gt.f32.partialorder %v5019_v10, 0.0 }
 0xbfa   : > { %1876 = vrot.lane.b32.xlu0 %v1872_v45, %s6244_s15  ;;  %1878 = vrot.lane.b32.xlu1 %v1873_v41, %s6244_s15 }
 0xbfb   : > { %v1865_v12 = vpop.permute.xlu0 %1864 }
 0xbfc   : > { %v1874_v26 = vadd.f32 %v1865_v12, %v1825_v28 }
 0xbfe   : > { %1880 = vrot.lane.b32.xlu0 %v1874_v26, %s6244_s15  ;;  %1900 = vrot.lane.b32.xlu1 %v1872_v45, %s6245_s18 }
 0xbff   : > { %v1870_v3 = vpop.permute.xlu1 %1869 }
 0xc00   : > { %v1875_v1 = vadd.f32 %v1870_v3, %v1826_v17  ;;  %v5021_v17 = vpop.f32.mrb[15].mxu0  ;;  %v1892_v3 = vmul.f32 %v1872_v45, %v4525_v32 }
 0xc02   : > { %1902 = vrot.lane.b32.xlu0 %v1873_v41, %s6245_s18  ;;  %1882 = vrot.lane.b32.xlu1 %v1875_v1, %s6244_s15 }
 0xc06   : > { %1904 = vrot.lane.b32.xlu0 %v1874_v26, %s6245_s18  ;;  %1906 = vrot.lane.b32.xlu1 %v1875_v1, %s6245_s18 }
 0xc6c   : > { %v1877_v4 = vpop.permute.xlu0 %1876  ;;  %v1879_v18 = vpop.permute.xlu1 %1878 }
 0xc6d   : > { %v1884_v37 = vsel %vm302_vm5, %v1877_v4, 0.0  ;;  %v1885_v12 = vsel %vm302_vm5, %v1879_v18, 0.0  ;;  %v738_v18 = vmul.f32 %v4415_v13, %v587_v30 }
 0xc6e   : > { %v1888_v28 = vmul.f32 %v1884_v37, %v4541_v62  ;;  %v1889_v63 = vmul.f32 %v1885_v12, %v4517_v23  ;;  %v1893_v37 = vmul.f32 %v1873_v41, %v4519_v47 }
 0xc70   : > { %v1881_v5 = vpop.permute.xlu0 %1880  ;;  %v1901_v51 = vpop.permute.xlu1 %1900  ;;  %v1896_v0 = vadd.f32 %v1892_v3, %v1888_v28  ;;  %v1897_v41 = vadd.f32 %v1893_v37, %v1889_v63  ;;  %v5049_v3 = vsel %vm705_vm4, %v587_v30, %v738_v18 }
 0xc71   : > { %v1886_v11 = vsel %vm302_vm5, %v1881_v5, 0.0  ;;  %v1908_v24 = vsel %vm306_vm6, %v1901_v51, 0.0 }
 0xc72   : > { %v1912_v4 = vmul.f32 %v1908_v24, %v4523_v49  ;;  %v1890_v45 = vmul.f32 %v1886_v11, %v4521_v48  ;;  %v1894_v24 = vmul.f32 %v1874_v26, %v4527_v50  ;;  %v1895_v11 = vmul.f32 %v1875_v1, %v4533_v54 }
 0xc73   : > { %v746_v26 = vmul.f32 %v4415_v13, %v593_v6 }
 0xc74   : > { %v1916_v14 = vadd.f32 %v1912_v4, %v1896_v0  ;;  %v1903_v56 = vpop.permute.xlu0 %1902  ;;  %v1883_v57 = vpop.permute.xlu1 %1882  ;;  %v5047_v0 = vsel %vm697_vm3, %v581_v21, %v730_v15  ;;  %v1898_v4 = vadd.f32 %v1894_v24, %v1890_v45 }
 0xc75   : > { %v1909_v5 = vsel %vm306_vm6, %v1903_v56, 0.0  ;;  %v1887_v51 = vsel %vm302_vm5, %v1883_v57, 0.0  ;;  %v2067_v18 = vmul.f32 %v5047_v0, %v5047_v0  ;;  %v2055_v45 = vadd.f32 %v5049_v3, %v5047_v0 }
 0xc76   : > { %v1913_v28 = vmul.f32 %v1909_v5, %v4531_v53  ;;  %v1891_v12 = vmul.f32 %v1887_v51, %v4529_v52  ;;  %v1924_v56 = vmul.f32 %v1916_v14, %v4558_v33  ;;  %vm1920_vm8 = vcmp.gt.f32.partialorder %v1916_v14, 0.0 }
 0xc78   : > { %v1917_v44 = vadd.f32 %v1913_v28, %v1897_v41  ;;  %v1905_v22 = vpop.permute.xlu0 %1904  ;;  %v1907_v57 = vpop.permute.xlu1 %1906  ;;  %v1899_v63 = vadd.f32 %v1895_v11, %v1891_v12  ;;  %v5064_v24 = vsel %vm1920_vm8, %v1916_v14, %v1924_v56  ;;  %v2068_v28 = vmul.f32 %v5049_v3, %v5049_v3 }
 0xc79   : > { %v1910_v37 = vsel %vm306_vm6, %v1905_v22, 0.0  ;;  %v1911_v15 = vsel %vm306_vm6, %v1907_v57, 0.0  ;;  %6252 = vst [vmem:[#allocation25_spill] sm:$0xff] %v5064_v24  ;;  %v5073_v12 = vsel %vm713_vm7, %v593_v6, %v746_v26  ;;  %v754_v11 = vmul.f32 %v4415_v13, %v5019_v10 }
 0xc7a   : > { %vm1921_vm9 = vcmp.gt.f32.partialorder %v1917_v44, 0.0  ;;  %v1925_v1 = vmul.f32 %v1917_v44, %v4558_v33  ;;  %v1914_v21 = vmul.f32 %v1910_v37, %v4535_v59  ;;  %v1915_v30 = vmul.f32 %v1911_v15, %v4537_v60 }
 0xc7b   : > { %v2056_v26 = vadd.f32 %v2055_v45, %v5073_v12  ;;  %vm722_vm7 = vcmp.gt.f32.partialorder %v5021_v17, 0.0 }
 0xc7c   : > { %v1918_v5 = vadd.f32 %v1914_v21, %v1898_v4  ;;  %v1919_v51 = vadd.f32 %v1915_v30, %v1899_v63  ;;  %v5066_v22 = vsel %vm1921_vm9, %v1917_v44, %v1925_v1  ;;  %v1944_v4 = vmul.f32 %v5064_v24, %v5064_v24 }
 0xc7d   : > { %6253 = vst [vmem:[#allocation26_spill] sm:$0xff] %v5066_v22  ;;  %v1945_v41 = vmul.f32 %v5066_v22, %v5066_v22  ;;  %v1932_v44 = vadd.f32 %v5066_v22, %v5064_v24  ;;  %v2069_v63 = vmul.f32 %v5073_v12, %v5073_v12  ;;  %v2071_v21 = vadd.f32 %v2068_v28, %v2067_v18 }
 0xc7e   : > { %v1926_v57 = vmul.f32 %v1918_v5, %v4558_v33  ;;  %vm1922_vm10 = vcmp.gt.f32.partialorder %v1918_v5, 0.0  ;;  %vm1923_vm11 = vcmp.gt.f32.partialorder %v1919_v51, 0.0  ;;  %v1927_v14 = vmul.f32 %v1919_v51, %v4558_v33 }
 0xc7f   : > { %v1948_v1 = vadd.f32 %v1945_v41, %v1944_v4  ;;  %v5095_v30 = vsel %vm721_vm12, %v5019_v10, %v754_v11  ;;  %v2072_v22 = vadd.f32 %v2071_v21, %v2069_v63 }
 0xc80   : > { %v5084_v56 = vsel %vm1922_vm10, %v1918_v5, %v1926_v57  ;;  %v5086_v6 = vsel %vm1923_vm11, %v1919_v51, %v1927_v14  ;;  %v2057_v14 = vadd.f32 %v2056_v26, %v5095_v30 }
 0xc81   : > { %6254 = vst [vmem:[#allocation27_spill] sm:$0xff] %v5084_v56  ;;  %6255 = vst [vmem:[#allocation28_spill] sm:$0xff] %v5086_v6  ;;  %v1933_v37 = vadd.f32 %v1932_v44, %v5084_v56  ;;  %v1946_v15 = vmul.f32 %v5084_v56, %v5084_v56  ;;  %v1947_v51 = vmul.f32 %v5086_v6, %v5086_v6 }
 0xc82   : > { %v2070_v44 = vmul.f32 %v5095_v30, %v5095_v30 }
 0xc83   : > { %v1934_v5 = vadd.f32 %v1933_v37, %v5086_v6  ;;  %v1949_v57 = vadd.f32 %v1948_v1, %v1946_v15 }
 0xc84   : > { %v2073_v18 = vadd.f32 %v2072_v22, %v2070_v44 }
 0xc85   : > { %1935 = vadd.xlane.f32.xlu0 %v1934_v5  ;;  %v1950_v45 = vadd.f32 %v1949_v57, %v1947_v51 }
 0xc87   : > { %1951 = vadd.xlane.f32.xlu1 %v1950_v45 }
 0xc89   : > { %2058 = vadd.xlane.f32.xlu0 %v2057_v14 }
 0xc8d   : > { %2074 = vadd.xlane.f32.xlu0 %v2073_v18 }
 0xd12   : > { %v1936_v10 = vpop.xlane.xlu0 %1935 }
 0xd13   : > { %v1937_v41 = vrot.slane %v1936_v10, 4 }
 0xd14   : > { %v1952_v28 = vpop.xlane.xlu1 %1951 }
 0xd15   : > { %v1938_v11 = vadd.f32 %v1937_v41, %v1936_v10  ;;  %v1953_v4 = vrot.slane %v1952_v28, 4 }
 0xd16   : > { %v2059_v63 = vpop.xlane.xlu0 %2058 }
 0xd17   : > { %v1954_v37 = vadd.f32 %v1953_v4, %v1952_v28  ;;  %v1939_v56 = vrot.slane %v1938_v11, 2  ;;  %v2060_v22 = vrot.slane %v2059_v63, 4 }
 0xd19   : > { %v1940_v15 = vadd.f32 %v1939_v56, %v1938_v11  ;;  %v1955_v1 = vrot.slane %v1954_v37, 2  ;;  %v2061_v14 = vadd.f32 %v2060_v22, %v2059_v63 }
 0xd1a   : > { %v2075_v21 = vpop.xlane.xlu0 %2074 }
 0xd1b   : > { %v1941_v5 = vrot.slane %v1940_v15, 1  ;;  %v1956_v51 = vadd.f32 %v1955_v1, %v1954_v37  ;;  %v2076_v45 = vrot.slane %v2075_v21, 4  ;;  %v2062_v56 = vrot.slane %v2061_v14, 2 }
 0xd1d   : > { %v1942_v26 = vadd.f32 %v1941_v5, %v1940_v15  ;;  %v1957_v57 = vrot.slane %v1956_v51, 1  ;;  %v2077_v44 = vadd.f32 %v2076_v45, %v2075_v21  ;;  %v2063_v41 = vadd.f32 %v2062_v56, %v2061_v14 }
 0xd1f   : > { %3835 = vpush %v1942_v26  ;;  %v1958_v6 = vadd.f32 %v1957_v57, %v1956_v51  ;;  %v2078_v10 = vrot.slane %v2077_v44, 2 }
 0xd21   : > { %3837 = vpush %v1958_v6  ;;  %v2079_v28 = vadd.f32 %v2078_v10, %v2077_v44  ;;  %v2064_v6 = vrot.slane %v2063_v41, 1 }
 0xd23   : > { %v2080_v11 = vrot.slane %v2079_v28, 1  ;;  %v2065_v37 = vadd.f32 %v2064_v6, %v2063_v41 }
 0xd25   : > { %v2081_v15 = vadd.f32 %v2080_v11, %v2079_v28 }
 0xd50   : > { %s3836_s17 = spop %3835 }
 0xd51   : > { %s1960_s29 = smul.f32 0.00024414063, %s3836_s17 }
 0xd52   : > { %s3838_s11 = spop %3837 }
 0xd53   : > { %s1962_s13 = smul.f32 %s1960_s29, %s1960_s29  ;;  %v5113_v26 = vstv %s1960_s29 }
 0xd54   : > { %s1961_s0 = smul.f32 0.00024414063, %s3838_s11 }
 0xd56   : > { %s1963_s2 = ssub.f32 %s1961_s0, %s1962_s13 }
 0xd58   : > { %s1964_s14 = sadd.f32 1e-08, %s1963_s2 }
 0xd5a   : > { %v1965_v18 = vstv %s1964_s14 }
 0xd5b   : > { %4029 = vrsqrt.f32 %v1965_v18 }
 0xd65   : > { %v4030_v4 = vpop.eup %4029 }
 0xd66   : > { %3839 = vpush %v4030_v4  ;;  %v6258_v4 = vmov 1  }
 0xd67   : > { %3841 = vpush %v2065_v37 }
 0xd68   : > { %3843 = vpush %v2081_v15 }
 0xd97   : > { %s3840_s8 = spop %3839 }
 0xd98   : > { %v5103_v1 = vstv %s3840_s8  ;;  %s3842_s17 = spop %3841 }
 0xd99   : > { %v5107_v5 = vmul.f32 %v4923_v36, %v5103_v1  ;;  %v5111_v51 = vmul.f32 %v4931_v27, %v5103_v1  ;;  %s2083_s11 = smul.f32 0.00024414063, %s3842_s17  ;;  %s3844_s13 = spop %3843 }
 0xd9a   : > { %s2084_s0 = smul.f32 0.00024414063, %s3844_s13 }
 0xd9b   : > { %6256 = vst [vmem:[#allocation29_spill] sm:$0xff] %v5107_v5  ;;  %v5117_v57 = vmul.f32 %v5113_v26, %v5107_v5  ;;  %v5121_v63 = vmul.f32 %v5113_v26, %v5111_v51  ;;  %s2085_s2 = smul.f32 %s2083_s11, %s2083_s11  ;;  %v2120_v56 = vstv %s2083_s11 }
 0xd9d   : > { %6257 = vst [vmem:[#allocation30_spill] sm:$0xff] %v5117_v57  ;;  %s2086_s14 = ssub.f32 %s2084_s0, %s2085_s2 }
 0xd9f   : > { %s2087_s8 = sadd.f32 1e-08, %s2086_s14 }
 0xda1   : > { %v2088_v21 = vstv %s2087_s8 }
 0xda2   : > { %4031 = vrsqrt.f32 %v2088_v21 }
 0xdac   : > { %v4032_v22 = vpop.eup %4031 }
 0xdad   : > { %3845 = vpush %v4032_v22 }
 0xdde   : > { %s3846_s17 = spop %3845 }
 0xddf   : > { %v2091_v45 = vstv %s3846_s17 }
 0xde0   : > { %v2092_v14 = vmul.f32 %v4907_v43, %v2091_v45  ;;  %v2093_v44 = vmul.f32 %v4915_v38, %v2091_v45  ;;  %v2094_v18 = vmul.f32 %v4923_v36, %v2091_v45  ;;  %v2095_v28 = vmul.f32 %v4931_v27, %v2091_v45 }
 0xde2   : > { %v2121_v10 = vmul.f32 %v2120_v56, %v2092_v14  ;;  %v2122_v41 = vmul.f32 %v2120_v56, %v2093_v44  ;;  %v2123_v6 = vmul.f32 %v2120_v56, %v2094_v18  ;;  %v2124_v11 = vmul.f32 %v2120_v56, %v2095_v28 }
 0xde4   : > { %2131 = vrot.lane.b32.xlu0 %v2122_v41, %s6251_s20  ;;  %2129 = vrot.lane.b32.xlu1 %v2121_v10, %s6251_s20 }
 0xde8   : > { %2098 = vperm.xlu0 %3984, %v2092_v14   ;;  %2133 = vrot.lane.b32.xlu1 %v2123_v6, %s6251_s20 }
 0xdec   : > { %2135 = vrot.lane.b32.xlu1 %v2124_v11, %s6251_s20  ;;  %3986 = vset.pattern.permute.xlu0 %v6258_v4 }
 0xdf0   : > { %2103 = vperm.xlu1 %3985, %v2093_v44   ;;  %v6259_v44 = vmov 0  }
 0xdf4   : > { %2108 = vperm.xlu1 %3985, %v2094_v18  }
 0xdf8   : > { %2113 = vperm.xlu1 %3985, %v2095_v28  }
 0xdfc   : > { %3987 = vset.pattern.permute.xlu1 %v6258_v4 }
 0xe56   : > { %v2132_v37 = vpop.permute.xlu0 %2131  ;;  %v2130_v15 = vpop.permute.xlu1 %2129 }
 0xe57   : > { %v2142_v21 = vsub.f32 %v4915_v38, %v2132_v37  ;;  %v2141_v22 = vsub.f32 %v4907_v43, %v2130_v15 }
 0xe59   : > { %2152 = vperm.xlu1 %3987, %v2142_v21   ;;  %2147 = vperm.xlu0 %3986, %v2141_v22  }
 0xe5a   : > { %v2134_v45 = vpop.permute.xlu1 %2133 }
 0xe5b   : > { %v2143_v14 = vsub.f32 %v4923_v36, %v2134_v45 }
 0xe5d   : > { %2157 = vperm.xlu0 %3986, %v2143_v14  }
 0xe5e   : > { %v2136_v56 = vpop.permute.xlu1 %2135 }
 0xe5f   : > { %v2144_v10 = vsub.f32 %v4931_v27, %v2136_v56 }
 0xe61   : > { %2162 = vperm.xlu1 %3987, %v2144_v10   ;;  %3988 = vset.pattern.permute.xlu0 %v6259_v44 }
 0xe65   : > { %3989 = vset.pattern.permute.xlu1 %v6259_v44 }
 0xe67   : > { %v2099_v28 = vpop.permute.xlu0 %2098 }
 0xe68   : > { %v2116_v11 = vmul.f32 %v2099_v28, %v5047_v0 }
 0xe6f   : > { %v2104_v18 = vpop.permute.xlu1 %2103 }
 0xe70   : > { %v2117_v37 = vmul.f32 %v2104_v18, %v5049_v3 }
 0xe73   : > { %v2109_v41 = vpop.permute.xlu1 %2108 }
 0xe74   : > { %v2118_v14 = vmul.f32 %v2109_v41, %v5073_v12 }
 0xe77   : > { %v2114_v6 = vpop.permute.xlu1 %2113 }
 0xe78   : > { %v2119_v24 = vmul.f32 %v2114_v6, %v5095_v30 }
 0xed8   : > { %v2148_v15 = vpop.permute.xlu0 %2147  ;;  %v2153_v21 = vpop.permute.xlu1 %2152 }
 0xed9   : > { %v2165_v22 = vadd.f32 %v2148_v15, %v2116_v11  ;;  %v2166_v45 = vadd.f32 %v2153_v21, %v2117_v37 }
 0xedb   : > { %2169 = vrot.lane.b32.xlu0 %v2165_v22, %s6244_s15  ;;  %2171 = vrot.lane.b32.xlu1 %v2166_v45, %s6244_s15 }
 0xedc   : > { %v2158_v56 = vpop.permute.xlu0 %2157 }
 0xedd   : > { %v2167_v10 = vadd.f32 %v2158_v56, %v2118_v14 }
 0xedf   : > { %2173 = vrot.lane.b32.xlu0 %v2167_v10, %s6244_s15  ;;  %2193 = vrot.lane.b32.xlu1 %v2165_v22, %s6245_s18 }
 0xee0   : > { %v2163_v0 = vpop.permute.xlu1 %2162 }
 0xee1   : > { %v2168_v3 = vadd.f32 %v2163_v0, %v2119_v24  ;;  %v2185_v24 = vmul.f32 %v2165_v22, %v4525_v32  ;;  %v731_v0 = vmul.f32 %v4415_v13, %v5013_v39  ;;  %v739_v22 = vmul.f32 %v4415_v13, %v5015_v42 }
 0xee3   : > { %2195 = vrot.lane.b32.xlu0 %v2166_v45, %s6245_s18  ;;  %2175 = vrot.lane.b32.xlu1 %v2168_v3, %s6244_s15 }
 0xee7   : > { %2197 = vrot.lane.b32.xlu0 %v2167_v10, %s6245_s18  ;;  %2199 = vrot.lane.b32.xlu1 %v2168_v3, %s6245_s18 }
 0xf4d   : > { %v2170_v12 = vpop.permute.xlu0 %2169  ;;  %v2172_v18 = vpop.permute.xlu1 %2171 }
 0xf4e   : > { %v2177_v41 = vsel %vm302_vm5, %v2170_v12, 0.0  ;;  %v2178_v28 = vsel %vm302_vm5, %v2172_v18, 0.0  ;;  %v2186_v12 = vmul.f32 %v2166_v45, %v4519_v47 }
 0xf4f   : > { %v2181_v30 = vmul.f32 %v2177_v41, %v4541_v62  ;;  %v2182_v14 = vmul.f32 %v2178_v28, %v4517_v23 }
 0xf51   : > { %v2174_v6 = vpop.permute.xlu0 %2173  ;;  %v2194_v11 = vpop.permute.xlu1 %2193  ;;  %v2189_v21 = vadd.f32 %v2185_v24, %v2181_v30  ;;  %v2187_v24 = vmul.f32 %v2167_v10, %v4527_v50 }
 0xf52   : > { %v2179_v37 = vsel %vm302_vm5, %v2174_v6, 0.0  ;;  %v2201_v15 = vsel %vm306_vm6, %v2194_v11, 0.0 }
 0xf53   : > { %v2205_v56 = vmul.f32 %v2201_v15, %v4523_v49  ;;  %v2183_v18 = vmul.f32 %v2179_v37, %v4521_v48  ;;  %v2190_v15 = vadd.f32 %v2186_v12, %v2182_v14  ;;  %v5179_v37 = vsel %vm698_vm13, %v5013_v39, %v731_v0 }
 0xf55   : > { %v2209_v41 = vadd.f32 %v2205_v56, %v2189_v21  ;;  %v2196_v6 = vpop.permute.xlu0 %2195  ;;  %v2176_v11 = vpop.permute.xlu1 %2175  ;;  %v2188_v21 = vmul.f32 %v2168_v3, %v4533_v54  ;;  %v5183_v56 = vsel %vm706_vm14, %v5015_v42, %v739_v22  ;;  %v2191_v5 = vadd.f32 %v2187_v24, %v2183_v18 }
 0xf56   : > { %v2202_v30 = vsel %vm306_vm6, %v2196_v6, 0.0  ;;  %v2180_v28 = vsel %vm302_vm5, %v2176_v11, 0.0  ;;  %v2361_v24 = vmul.f32 %v5183_v56, %v5183_v56 }
 0xf57   : > { %v2206_v57 = vmul.f32 %v2202_v30, %v4531_v53  ;;  %v2184_v45 = vmul.f32 %v2180_v28, %v4529_v52  ;;  %v2217_v6 = vmul.f32 %v2209_v41, %v4558_v33  ;;  %vm2213_vm15 = vcmp.gt.f32.partialorder %v2209_v41, 0.0 }
 0xf58   : > { %v2348_v28 = vadd.f32 %v5183_v56, %v5179_v37 }
 0xf59   : > { %v2210_v34 = vadd.f32 %v2206_v57, %v2190_v15  ;;  %v2198_v11 = vpop.permute.xlu0 %2197  ;;  %v2200_v35 = vpop.permute.xlu1 %2199  ;;  %v2192_v10 = vadd.f32 %v2188_v21, %v2184_v45  ;;  %v747_v57 = vmul.f32 %v4415_v13, %v5017_v29  ;;  %v5196_v22 = vsel %vm2213_vm15, %v2209_v41, %v2217_v6 }
 0xf5a   : > { %v2203_v14 = vsel %vm306_vm6, %v2198_v11, 0.0  ;;  %v2204_v39 = vsel %vm306_vm6, %v2200_v35, 0.0  ;;  %6260 = vst [vmem:[#allocation31_spill] sm:$0xff] %v5196_v22  ;;  %v2360_v35 = vmul.f32 %v5179_v37, %v5179_v37  ;;  %v2237_v21 = vmul.f32 %v5196_v22, %v5196_v22 }
 0xf5b   : > { %vm2214_vm1 = vcmp.gt.f32.partialorder %v2210_v34, 0.0  ;;  %v2218_v3 = vmul.f32 %v2210_v34, %v4558_v33  ;;  %v2207_v42 = vmul.f32 %v2203_v14, %v4535_v59  ;;  %v2208_v0 = vmul.f32 %v2204_v39, %v4537_v60 }
 0xf5c   : > { %v755_v6 = vmul.f32 %v4415_v13, %v5021_v17 }
 0xf5d   : > { %v5198_v12 = vsel %vm2214_vm1, %v2210_v34, %v2218_v3  ;;  %v2211_v18 = vadd.f32 %v2207_v42, %v2191_v5  ;;  %v2212_v30 = vadd.f32 %v2208_v0, %v2192_v10  ;;  %v5211_v5 = vsel %vm714_vm2, %v5017_v29, %v747_v57 }
 0xf5e   : > { %6261 = vst [vmem:[#allocation32_spill] sm:$0xff] %v5198_v12  ;;  %v2238_v15 = vmul.f32 %v5198_v12, %v5198_v12  ;;  %v2225_v45 = vadd.f32 %v5198_v12, %v5196_v22  ;;  %v2364_v3 = vadd.f32 %v2361_v24, %v2360_v35  ;;  %v2349_v42 = vadd.f32 %v2348_v28, %v5211_v5 }
 0xf5f   : > { %vm2215_vm3 = vcmp.gt.f32.partialorder %v2211_v18, 0.0  ;;  %v2219_v41 = vmul.f32 %v2211_v18, %v4558_v33  ;;  %v2220_v34 = vmul.f32 %v2212_v30, %v4558_v33  ;;  %vm2216_vm4 = vcmp.gt.f32.partialorder %v2212_v30, 0.0 }
 0xf60   : > { %v2241_v39 = vadd.f32 %v2238_v15, %v2237_v21  ;;  %v2362_v0 = vmul.f32 %v5211_v5, %v5211_v5 }
 0xf61   : > { %v5219_v11 = vsel %vm2215_vm3, %v2211_v18, %v2219_v41  ;;  %v5221_v10 = vsel %vm2216_vm4, %v2212_v30, %v2220_v34  ;;  %v5234_v41 = vsel %vm722_vm7, %v5021_v17, %v755_v6 }
 0xf62   : > { %6262 = vst [vmem:[#allocation33_spill] sm:$0xff] %v5219_v11  ;;  %6263 = vst [vmem:[#allocation34_spill] sm:$0xff] %v5221_v10  ;;  %v2226_v14 = vadd.f32 %v2225_v45, %v5219_v11  ;;  %v2239_v29 = vmul.f32 %v5219_v11, %v5219_v11  ;;  %v2240_v18 = vmul.f32 %v5221_v10, %v5221_v10 }
 0xf63   : > { %v2363_v15 = vmul.f32 %v5234_v41, %v5234_v41  ;;  %v2350_v35 = vadd.f32 %v2349_v42, %v5234_v41  ;;  %v2365_v28 = vadd.f32 %v2364_v3, %v2362_v0 }
 0xf64   : > { %v2227_v57 = vadd.f32 %v2226_v14, %v5221_v10  ;;  %v2242_v30 = vadd.f32 %v2241_v39, %v2239_v29 }
 0xf65   : > { %v2366_v24 = vadd.f32 %v2365_v28, %v2363_v15 }
 0xf66   : > { %2228 = vadd.xlane.f32.xlu0 %v2227_v57  ;;  %v2243_v34 = vadd.f32 %v2242_v30, %v2240_v18 }
 0xf68   : > { %2244 = vadd.xlane.f32.xlu1 %v2243_v34 }
 0xf6a   : > { %2351 = vadd.xlane.f32.xlu0 %v2350_v35 }
 0xf6e   : > { %2367 = vadd.xlane.f32.xlu0 %v2366_v24 }
 0xff3   : > { %v2229_v45 = vpop.xlane.xlu0 %2228 }
 0xff4   : > { %v2230_v21 = vrot.slane %v2229_v45, 4 }
 0xff5   : > { %v2245_v14 = vpop.xlane.xlu1 %2244 }
 0xff6   : > { %v2231_v10 = vadd.f32 %v2230_v21, %v2229_v45  ;;  %v2246_v29 = vrot.slane %v2245_v14, 4 }
 0xff7   : > { %v2352_v3 = vpop.xlane.xlu0 %2351 }
 0xff8   : > { %v2247_v39 = vadd.f32 %v2246_v29, %v2245_v14  ;;  %v2232_v17 = vrot.slane %v2231_v10, 2  ;;  %v2353_v0 = vrot.slane %v2352_v3, 4 }
 0xffa   : > { %v2233_v6 = vadd.f32 %v2232_v17, %v2231_v10  ;;  %v2248_v57 = vrot.slane %v2247_v39, 2  ;;  %v2354_v35 = vadd.f32 %v2353_v0, %v2352_v3 }
 0xffb   : > { %v2368_v42 = vpop.xlane.xlu0 %2367 }
 0xffc   : > { %v2234_v18 = vrot.slane %v2233_v6, 1  ;;  %v2249_v30 = vadd.f32 %v2248_v57, %v2247_v39  ;;  %v2369_v15 = vrot.slane %v2368_v42, 4  ;;  %v2355_v10 = vrot.slane %v2354_v35, 2 }
 0xffe   : > { %v2235_v11 = vadd.f32 %v2234_v18, %v2233_v6  ;;  %v2250_v22 = vrot.slane %v2249_v30, 1  ;;  %v2370_v28 = vadd.f32 %v2369_v15, %v2368_v42 }
0x1000   : > { %3847 = vpush %v2235_v11  ;;  %v2251_v34 = vadd.f32 %v2250_v22, %v2249_v30  ;;  %v2371_v45 = vrot.slane %v2370_v28, 2  ;;  %v2356_v11 = vadd.f32 %v2355_v10, %v2354_v35 }
0x1002   : > { %3849 = vpush %v2251_v34  ;;  %v2372_v22 = vadd.f32 %v2371_v45, %v2370_v28  ;;  %v2357_v21 = vrot.slane %v2356_v11, 1 }
0x1004   : > { %v2373_v14 = vrot.slane %v2372_v22, 1  ;;  %v2358_v39 = vadd.f32 %v2357_v21, %v2356_v11 }
0x1006   : > { %v2374_v17 = vadd.f32 %v2373_v14, %v2372_v22 }
0x1031   : > { %s3848_s29 = spop %3847 }
0x1032   : > { %s2253_s11 = smul.f32 0.00024414063, %s3848_s29 }
0x1033   : > { %s3850_s13 = spop %3849 }
0x1034   : > { %s2255_s0 = smul.f32 %s2253_s11, %s2253_s11  ;;  %v5249_v30 = vstv %s2253_s11 }
0x1035   : > { %s2254_s2 = smul.f32 0.00024414063, %s3850_s13 }
0x1037   : > { %s2256_s14 = ssub.f32 %s2254_s2, %s2255_s0 }
0x1039   : > { %s2257_s8 = sadd.f32 1e-08, %s2256_s14 }
0x103b   : > { %v2258_v24 = vstv %s2257_s8 }
0x103c   : > { %4033 = vrsqrt.f32 %v2258_v24 }
0x1046   : > { %v4034_v29 = vpop.eup %4033 }
0x1047   : > { %3851 = vpush %v4034_v29  ;;  %v315_v29 = vld [vmem:[%s4365_s7 + $0x38] sm:$0xff] }
0x1048   : > { %3853 = vpush %v2358_v39  ;;  %v323_v39 = vld [vmem:[%s4365_s7 + $0x78] sm:$0xff] }
0x1049   : > { %3855 = vpush %v2374_v17  ;;  %v314_v17 = vld [vmem:[%s4365_s7 + $0x30] sm:$0xff] }
0x1078   : > { %s3852_s17 = spop %3851 }
0x1079   : > { %v5239_v6 = vstv %s3852_s17  ;;  %s3854_s29 = spop %3853 }
0x107a   : > { %v5243_v57 = vmul.f32 %v4923_v36, %v5239_v6  ;;  %v5247_v18 = vmul.f32 %v4931_v27, %v5239_v6  ;;  %s2376_s13 = smul.f32 0.00024414063, %s3854_s29  ;;  %s3856_s0 = spop %3855 }
0x107b   : > { %s2377_s2 = smul.f32 0.00024414063, %s3856_s0 }
0x107c   : > { %6264 = vst [vmem:[#allocation35_spill] sm:$0xff] %v5243_v57  ;;  %v5253_v34 = vmul.f32 %v5249_v30, %v5243_v57  ;;  %v5257_v3 = vmul.f32 %v5249_v30, %v5247_v18  ;;  %s2378_s14 = smul.f32 %s2376_s13, %s2376_s13  ;;  %v2413_v10 = vstv %s2376_s13 }
0x107e   : > { %6265 = vst [vmem:[#allocation36_spill] sm:$0xff] %v5253_v34  ;;  %s2379_s8 = ssub.f32 %s2377_s2, %s2378_s14 }
0x1080   : > { %s2380_s17 = sadd.f32 1e-08, %s2379_s8 }
0x1082   : > { %v2381_v42 = vstv %s2380_s17 }
0x1083   : > { %4035 = vrsqrt.f32 %v2381_v42  ;;  %v3757_v42 = vpack.c.bf16 %v323_v39, %v315_v29 }
0x1085   : > { %3758 = vmatprep.subr.bf16.mxu1 %v3757_v42 }
0x108d   : > { %v4036_v0 = vpop.eup %4035 }
0x108e   : > { %3857 = vpush %v4036_v0  ;;  %v322_v0 = vld [vmem:[%s4365_s7 + $0x70] sm:$0xff] }
0x10bf   : > { %s3858_s29 = spop %3857 }
0x10c0   : > { %v2384_v15 = vstv %s3858_s29 }
0x10c1   : > { %v2385_v35 = vmul.f32 %v4907_v43, %v2384_v15  ;;  %v2386_v28 = vmul.f32 %v4915_v38, %v2384_v15  ;;  %v2387_v24 = vmul.f32 %v4923_v36, %v2384_v15  ;;  %v2388_v22 = vmul.f32 %v4931_v27, %v2384_v15 }
0x10c2   : > { %v6266_v15 = vmov 0.0  }
0x10c3   : > { %v2414_v45 = vmul.f32 %v2413_v10, %v2385_v35  ;;  %v2415_v11 = vmul.f32 %v2413_v10, %v2386_v28  ;;  %v2416_v21 = vmul.f32 %v2413_v10, %v2387_v24  ;;  %v2417_v14 = vmul.f32 %v2413_v10, %v2388_v22 }
0x10c5   : > { %2424 = vrot.lane.b32.xlu0 %v2415_v11, %s6251_s20  ;;  %2422 = vrot.lane.b32.xlu1 %v2414_v45, %s6251_s20  ;;  %v3759_v45 = vpack.c.bf16 %v322_v0, %v314_v17 }
0x10c7   : > { %3760 = vmatpush1.bf16.msra.mxu1 %v3759_v45 }
0x10c9   : > { %2391 = vperm.xlu0 %3988, %v2385_v35   ;;  %2426 = vrot.lane.b32.xlu1 %v2416_v21, %s6251_s20 }
0x10ca   : > { %3726 = vmatmul.mubr.msk.f32.vlgmr.msra.gmra.mrb[8].mxu1 %vm324_vm0, %v4966_v31 }
0x10cb   : > { %674 = vmatprep.mubr.f32.mxu1 %v6266_v15 }
0x10cd   : > { %2428 = vrot.lane.b32.xlu1 %v2417_v14, %s6251_s20  ;;  %3990 = vset.pattern.permute.xlu0 %v6258_v4 }
0x10ce   : > { %3727 = vmatmul.mubr.msk.f32.gmra.mrb[10].mxu1 %vm324_vm0, %v4974_v2 }
0x10cf   : > { %680 = vmatprep.mubr.f32.mxu1 %v6266_v15 }
0x10d1   : > { %2396 = vperm.xlu1 %3989, %v2386_v28  }
0x10d2   : > { %3728 = vmatmul.mubr.msk.f32.gmra.mrb[12].mxu1 %vm324_vm0, %v4982_v46 }
0x10d3   : > { %686 = vmatprep.mubr.f32.mxu1 %v6266_v15 }
0x10d5   : > { %2401 = vperm.xlu1 %3989, %v2387_v24  }
0x10d6   : > { %3729 = vmatmul.mubr.msk.f32.gmra.mrb[14].mxu1 %vm324_vm0, %v4990_v55 }
0x10d7   : > { %3420 = vmatprep.mubr.f32.mxu1 %v6266_v15 }
0x10d9   : > { %2406 = vperm.xlu1 %3989, %v2388_v22  }
0x10dd   : > { %3991 = vset.pattern.permute.xlu1 %v6258_v4 }
0x1137   : > { %v2425_v35 = vpop.permute.xlu0 %2424  ;;  %v2423_v28 = vpop.permute.xlu1 %2422 }
0x1138   : > { %v2435_v31 = vsub.f32 %v4915_v38, %v2425_v35  ;;  %v2434_v10 = vsub.f32 %v4907_v43, %v2423_v28 }
0x113a   : > { %2445 = vperm.xlu1 %3991, %v2435_v31   ;;  %2440 = vperm.xlu0 %3990, %v2434_v10  }
0x113b   : > { %v2427_v2 = vpop.permute.xlu1 %2426 }
0x113c   : > { %v2436_v24 = vsub.f32 %v4923_v36, %v2427_v2 }
0x113e   : > { %2450 = vperm.xlu0 %3990, %v2436_v24  }
0x113f   : > { %v2429_v46 = vpop.permute.xlu1 %2428 }
0x1140   : > { %v2437_v11 = vsub.f32 %v4931_v27, %v2429_v46 }
0x1142   : > { %2455 = vperm.xlu1 %3991, %v2437_v11   ;;  %3992 = vset.pattern.permute.xlu0 %v6259_v44 }
0x1146   : > { %3993 = vset.pattern.permute.xlu1 %v6259_v44 }
0x1148   : > { %v2392_v21 = vpop.permute.xlu0 %2391 }
0x1149   : > { %v2409_v43 = vmul.f32 %v2392_v21, %v5179_v37 }
0x1150   : > { %v2397_v55 = vpop.permute.xlu1 %2396 }
0x1151   : > { %v2410_v14 = vmul.f32 %v2397_v55, %v5183_v56 }
0x1154   : > { %v2402_v22 = vpop.permute.xlu1 %2401 }
0x1155   : > { %v2411_v42 = vmul.f32 %v2402_v22, %v5211_v5 }
0x1158   : > { %v2407_v38 = vpop.permute.xlu1 %2406 }
0x1159   : > { %v2412_v45 = vmul.f32 %v2407_v38, %v5234_v41 }
0x119d   : > { %v670_v5 = vpop.f32.mrb[8].mxu1 }
0x119e   : > { %v5303_v35 = vpop.f32.mrb[9].mxu1  ;;  %vm699_vm0 = vcmp.gt.f32.partialorder %v670_v5, 0.0 }
0x119f   : > { %vm700_vm15 = vcmp.gt.f32.partialorder %v5303_v35, 0.0 }
0x11a1   : > { %v676_v28 = vpop.f32.mrb[10].mxu1 }
0x11a2   : > { %v5305_v31 = vpop.f32.mrb[11].mxu1  ;;  %vm707_vm8 = vcmp.gt.f32.partialorder %v676_v28, 0.0 }
0x11a3   : > { %vm708_vm1 = vcmp.gt.f32.partialorder %v5305_v31, 0.0 }
0x11a5   : > { %v682_v41 = vpop.f32.mrb[12].mxu1 }
0x11a6   : > { %v5307_v10 = vpop.f32.mrb[13].mxu1  ;;  %vm715_vm9 = vcmp.gt.f32.partialorder %v682_v41, 0.0 }
0x11a7   : > { %vm716_vm4 = vcmp.gt.f32.partialorder %v5307_v10, 0.0 }
0x11a9   : > { %v5309_v2 = vpop.f32.mrb[14].mxu1 }
0x11aa   : > { %v5311_v24 = vpop.f32.mrb[15].mxu1  ;;  %vm723_vm14 = vcmp.gt.f32.partialorder %v5309_v2, 0.0 }
0x11b9   : > { %v2441_v29 = vpop.permute.xlu0 %2440  ;;  %v2446_v39 = vpop.permute.xlu1 %2445 }
0x11ba   : > { %v2458_v36 = vadd.f32 %v2441_v29, %v2409_v43  ;;  %v2459_v17 = vadd.f32 %v2446_v39, %v2410_v14 }
0x11bc   : > { %2462 = vrot.lane.b32.xlu0 %v2458_v36, %s6244_s15  ;;  %2464 = vrot.lane.b32.xlu1 %v2459_v17, %s6244_s15  ;;  %v2478_v38 = vmul.f32 %v2458_v36, %v4525_v32 }
0x11bd   : > { %v2451_v27 = vpop.permute.xlu0 %2450 }
0x11be   : > { %v2460_v0 = vadd.f32 %v2451_v27, %v2411_v42 }
0x11c0   : > { %2466 = vrot.lane.b32.xlu0 %v2460_v0, %s6244_s15  ;;  %2486 = vrot.lane.b32.xlu1 %v2458_v36, %s6245_s18 }
0x11c1   : > { %v2456_v37 = vpop.permute.xlu1 %2455 }
0x11c2   : > { %v2461_v56 = vadd.f32 %v2456_v37, %v2412_v45  ;;  %v2479_v37 = vmul.f32 %v2459_v17, %v4519_v47 }
0x11c4   : > { %2488 = vrot.lane.b32.xlu0 %v2459_v17, %s6245_s18  ;;  %2468 = vrot.lane.b32.xlu1 %v2461_v56, %s6244_s15 }
0x11c8   : > { %2490 = vrot.lane.b32.xlu0 %v2460_v0, %s6245_s18  ;;  %2492 = vrot.lane.b32.xlu1 %v2461_v56, %s6245_s18 }
0x122e   : > { %v2463_v46 = vpop.permute.xlu0 %2462  ;;  %v2465_v11 = vpop.permute.xlu1 %2464 }
0x122f   : > { %v2470_v55 = vsel %vm302_vm5, %v2463_v46, 0.0  ;;  %v2471_v21 = vsel %vm302_vm5, %v2465_v11, 0.0  ;;  %v732_v46 = vmul.f32 %v4415_v13, %v670_v5  ;;  %v740_v11 = vmul.f32 %v4415_v13, %v676_v28 }
0x1230   : > { %v2474_v22 = vmul.f32 %v2470_v55, %v4541_v62  ;;  %v2475_v27 = vmul.f32 %v2471_v21, %v4517_v23 }
0x1232   : > { %v2467_v43 = vpop.permute.xlu0 %2466  ;;  %v2487_v14 = vpop.permute.xlu1 %2486  ;;  %v2482_v42 = vadd.f32 %v2478_v38, %v2474_v22  ;;  %v2480_v38 = vmul.f32 %v2460_v0, %v4527_v50  ;;  %v2483_v17 = vadd.f32 %v2479_v37, %v2475_v27  ;;  %v748_v0 = vmul.f32 %v4415_v13, %v682_v41 }
0x1233   : > { %v2472_v29 = vsel %vm302_vm5, %v2467_v43, 0.0  ;;  %v2494_v39 = vsel %vm306_vm6, %v2487_v14, 0.0 }
0x1234   : > { %v2498_v45 = vmul.f32 %v2494_v39, %v4523_v49  ;;  %v2476_v36 = vmul.f32 %v2472_v29, %v4521_v48  ;;  %v2481_v29 = vmul.f32 %v2461_v56, %v4533_v54  ;;  %v5337_v39 = vsel %vm699_vm0, %v670_v5, %v732_v46 }
0x1236   : > { %v2502_v55 = vadd.f32 %v2498_v45, %v2482_v42  ;;  %v2489_v15 = vpop.permute.xlu0 %2488  ;;  %v2469_v12 = vpop.permute.xlu1 %2468  ;;  %v5339_v42 = vsel %vm707_vm8, %v676_v28, %v740_v11  ;;  %v2484_v45 = vadd.f32 %v2480_v38, %v2476_v36  ;;  %v2653_v11 = vmul.f32 %v5337_v39, %v5337_v39 }
0x1237   : > { %v2495_v22 = vsel %vm306_vm6, %v2489_v15, 0.0  ;;  %v2473_v21 = vsel %vm302_vm5, %v2469_v12, 0.0  ;;  %v2641_v36 = vadd.f32 %v5339_v42, %v5337_v39  ;;  %vm724_vm8 = vcmp.gt.f32.partialorder %v5311_v24, 0.0 }
0x1238   : > { %v2499_v43 = vmul.f32 %v2495_v22, %v4531_v53  ;;  %v2477_v14 = vmul.f32 %v2473_v21, %v4529_v52  ;;  %v2510_v15 = vmul.f32 %v2502_v55, %v4558_v33  ;;  %vm2506_vm10 = vcmp.gt.f32.partialorder %v2502_v55, 0.0 }
0x1239   : > { %v2654_v22 = vmul.f32 %v5339_v42, %v5339_v42 }
0x123a   : > { %v2503_v34 = vadd.f32 %v2499_v43, %v2483_v17  ;;  %v2491_v57 = vpop.permute.xlu0 %2490  ;;  %v2493_v12 = vpop.permute.xlu1 %2492  ;;  %v2485_v27 = vadd.f32 %v2481_v29, %v2477_v14  ;;  %v5363_v14 = vsel %vm715_vm9, %v682_v41, %v748_v0  ;;  %v756_v29 = vmul.f32 %v4415_v13, %v5309_v2 }
0x123b   : > { %v2496_v37 = vsel %vm306_vm6, %v2491_v57, 0.0  ;;  %v2497_v56 = vsel %vm306_vm6, %v2493_v12, 0.0  ;;  %v5356_v57 = vsel %vm2506_vm10, %v2502_v55, %v2510_v15  ;;  %v2657_v15 = vadd.f32 %v2654_v22, %v2653_v11 }
0x123c   : > { %vm2507_vm11 = vcmp.gt.f32.partialorder %v2503_v34, 0.0  ;;  %v2511_v5 = vmul.f32 %v2503_v34, %v4558_v33  ;;  %v2500_v28 = vmul.f32 %v2496_v37, %v4535_v59  ;;  %v2501_v46 = vmul.f32 %v2497_v56, %v4537_v60  ;;  %6267 = vst [vmem:[#allocation37_spill] sm:$0xff] %v5356_v57 }
0x123d   : > { %v2530_v55 = vmul.f32 %v5356_v57, %v5356_v57  ;;  %v2642_v0 = vadd.f32 %v2641_v36, %v5363_v14 }
0x123e   : > { %v5358_v21 = vsel %vm2507_vm11, %v2503_v34, %v2511_v5  ;;  %v2504_v38 = vadd.f32 %v2500_v28, %v2484_v45  ;;  %v2505_v17 = vadd.f32 %v2501_v46, %v2485_v27  ;;  %v2655_v28 = vmul.f32 %v5363_v14, %v5363_v14 }
0x123f   : > { %6268 = vst [vmem:[#allocation38_spill] sm:$0xff] %v5358_v21  ;;  %v2531_v43 = vmul.f32 %v5358_v21, %v5358_v21  ;;  %v2518_v34 = vadd.f32 %v5358_v21, %v5356_v57  ;;  %v5385_v46 = vsel %vm723_vm14, %v5309_v2, %v756_v29 }
0x1240   : > { %vm2508_vm12 = vcmp.gt.f32.partialorder %v2504_v38, 0.0  ;;  %v2512_v12 = vmul.f32 %v2504_v38, %v4558_v33  ;;  %v2513_v37 = vmul.f32 %v2505_v17, %v4558_v33  ;;  %vm2509_vm13 = vcmp.gt.f32.partialorder %v2505_v17, 0.0 }
0x1241   : > { %v2534_v5 = vadd.f32 %v2531_v43, %v2530_v55  ;;  %v2656_v22 = vmul.f32 %v5385_v46, %v5385_v46  ;;  %v2658_v43 = vadd.f32 %v2657_v15, %v2655_v28 }
0x1242   : > { %v5374_v45 = vsel %vm2508_vm12, %v2504_v38, %v2512_v12  ;;  %v5376_v41 = vsel %vm2509_vm13, %v2505_v17, %v2513_v37  ;;  %v2643_v12 = vadd.f32 %v2642_v0, %v5385_v46 }
0x1243   : > { %6269 = vst [vmem:[#allocation39_spill] sm:$0xff] %v5374_v45  ;;  %6270 = vst [vmem:[#allocation40_spill] sm:$0xff] %v5376_v41  ;;  %v2519_v27 = vadd.f32 %v2518_v34, %v5374_v45  ;;  %v2532_v56 = vmul.f32 %v5374_v45, %v5374_v45  ;;  %v2533_v17 = vmul.f32 %v5376_v41, %v5376_v41 }
0x1244   : > { %v2659_v37 = vadd.f32 %v2658_v43, %v2656_v22 }
0x1245   : > { %v2520_v38 = vadd.f32 %v2519_v27, %v5376_v41  ;;  %v2535_v11 = vadd.f32 %v2534_v5, %v2532_v56 }
0x1247   : > { %2521 = vadd.xlane.f32.xlu0 %v2520_v38  ;;  %v2536_v36 = vadd.f32 %v2535_v11, %v2533_v17 }
0x1249   : > { %2537 = vadd.xlane.f32.xlu1 %v2536_v36 }
0x124b   : > { %2644 = vadd.xlane.f32.xlu0 %v2643_v12 }
0x124f   : > { %2660 = vadd.xlane.f32.xlu0 %v2659_v37 }
0x12d4   : > { %v2522_v2 = vpop.xlane.xlu0 %2521 }
0x12d5   : > { %v2523_v29 = vrot.slane %v2522_v2, 4 }
0x12d6   : > { %v2538_v34 = vpop.xlane.xlu1 %2537 }
0x12d7   : > { %v2524_v55 = vadd.f32 %v2523_v29, %v2522_v2  ;;  %v2539_v27 = vrot.slane %v2538_v34, 4 }
0x12d8   : > { %v2645_v15 = vpop.xlane.xlu0 %2644 }
0x12d9   : > { %v2540_v45 = vadd.f32 %v2539_v27, %v2538_v34  ;;  %v2525_v41 = vrot.slane %v2524_v55, 2  ;;  %v2646_v36 = vrot.slane %v2645_v15, 4 }
0x12db   : > { %v2526_v56 = vadd.f32 %v2525_v41, %v2524_v55  ;;  %v2541_v5 = vrot.slane %v2540_v45, 2  ;;  %v2647_v41 = vadd.f32 %v2646_v36, %v2645_v15 }
0x12dc   : > { %v2661_v28 = vpop.xlane.xlu0 %2660 }
0x12dd   : > { %v2527_v38 = vrot.slane %v2526_v56, 1  ;;  %v2542_v17 = vadd.f32 %v2541_v5, %v2540_v45  ;;  %v2662_v22 = vrot.slane %v2661_v28, 4  ;;  %v2648_v45 = vrot.slane %v2647_v41, 2 }
0x12df   : > { %v2528_v11 = vadd.f32 %v2527_v38, %v2526_v56  ;;  %v2543_v57 = vrot.slane %v2542_v17, 1  ;;  %v2663_v12 = vadd.f32 %v2662_v22, %v2661_v28  ;;  %v2649_v37 = vadd.f32 %v2648_v45, %v2647_v41  ;;  %v5402_v38 = vld [vmem:[%s6155_s4 + $0x10] sm:$0xff]  ;;  %v5431_v45 = vld [vmem:[%s6155_s4] sm:$0xff] }
0x12e1   : > { %3859 = vpush %v2528_v11  ;;  %v2544_v0 = vadd.f32 %v2543_v57, %v2542_v17  ;;  %v2664_v57 = vrot.slane %v2663_v12, 2  ;;  %v2650_v29 = vrot.slane %v2649_v37, 1  ;;  %v5411_v11 = vld [vmem:[%s6155_s4 + $0x18] sm:$0xff] }
0x12e3   : > { %3861 = vpush %v2544_v0  ;;  %v2665_v2 = vadd.f32 %v2664_v57, %v2663_v12  ;;  %v2651_v27 = vadd.f32 %v2650_v29, %v2649_v37  ;;  %v5437_v57 = vld [vmem:[%s6155_s4 + $0x8] sm:$0xff] }
0x12e5   : > { %v2666_v34 = vrot.slane %v2665_v2, 1 }
0x12e7   : > { %v2667_v56 = vadd.f32 %v2666_v34, %v2665_v2 }
0x1312   : > { %s3860_s11 = spop %3859 }
0x1313   : > { %s5393_s13 = smul.f32 0.00024414063, %s3860_s11 }
0x1314   : > { %s3862_s0 = spop %3861 }
0x1315   : > { %s2548_s2 = smul.f32 %s5393_s13, %s5393_s13  ;;  %v5418_v15 = vstv %s5393_s13 }
0x1316   : > { %s2547_s14 = smul.f32 0.00024414063, %s3862_s0  ;;  %6272 = vst [vmem:[#allocation42_spill] sm:$0xff] %v5418_v15 }
0x1318   : > { %s2549_s8 = ssub.f32 %s2547_s14, %s2548_s2 }
0x131a   : > { %s2550_s17 = sadd.f32 1e-08, %s2549_s8 }
0x131c   : > { %v2551_v43 = vstv %s2550_s17 }
0x131d   : > { %4037 = vrsqrt.f32 %v2551_v43 }
0x1327   : > { %v4038_v55 = vpop.eup %4037 }
0x1328   : > { %3863 = vpush %v4038_v55 }
0x1329   : > { %3865 = vpush %v2651_v27 }
0x132a   : > { %3867 = vpush %v2667_v56 }
0x1359   : > { %s3864_s29 = spop %3863 }
0x135a   : > { %v5397_v5 = vstv %s3864_s29  ;;  %s3866_s11 = spop %3865 }
0x135b   : > { %v5406_v17 = vmul.f32 %v5402_v38, %v5397_v5  ;;  %v5415_v0 = vmul.f32 %v5411_v11, %v5397_v5  ;;  %s2669_s17 = smul.f32 0.00024414063, %s3866_s11  ;;  %s3868_s29 = spop %3867 }
0x135c   : > { %s2670_s0 = smul.f32 0.00024414063, %s3868_s29 }
0x135d   : > { %6271 = vst [vmem:[#allocation41_spill] sm:$0xff] %v5406_v17  ;;  %v5422_v28 = vmul.f32 %v5418_v15, %v5406_v17  ;;  %v5426_v36 = vmul.f32 %v5418_v15, %v5415_v0  ;;  %s2671_s2 = smul.f32 %s2669_s17, %s2669_s17  ;;  %v2706_v2 = vstv %s2669_s17 }
0x135f   : > { %6273 = vst [vmem:[#allocation43_spill] sm:$0xff] %v5422_v28  ;;  %6274 = vst [vmem:[#allocation44_spill] sm:$0xff] %v5426_v36  ;;  %s2672_s14 = ssub.f32 %s2670_s0, %s2671_s2 }
0x1361   : > { %s2673_s8 = sadd.f32 1e-08, %s2672_s14 }
0x1363   : > { %v2674_v22 = vstv %s2673_s8 }
0x1364   : > { %4039 = vrsqrt.f32 %v2674_v22 }
0x136e   : > { %v4040_v41 = vpop.eup %4039 }
0x136f   : > { %3869 = vpush %v4040_v41 }
0x13a0   : > { %s3870_s11 = spop %3869 }
0x13a1   : > { %v2677_v12 = vstv %s3870_s11 }
0x13a2   : > { %v2678_v43 = vmul.f32 %v5431_v45, %v2677_v12  ;;  %v2679_v37 = vmul.f32 %v5437_v57, %v2677_v12  ;;  %v2680_v29 = vmul.f32 %v5402_v38, %v2677_v12  ;;  %v2681_v27 = vmul.f32 %v5411_v11, %v2677_v12 }
0x13a4   : > { %v2707_v34 = vmul.f32 %v2706_v2, %v2678_v43  ;;  %v2708_v55 = vmul.f32 %v2706_v2, %v2679_v37  ;;  %v2709_v56 = vmul.f32 %v2706_v2, %v2680_v29  ;;  %v2710_v22 = vmul.f32 %v2706_v2, %v2681_v27 }
0x13a6   : > { %2717 = vrot.lane.b32.xlu0 %v2708_v55, %s6251_s20  ;;  %2715 = vrot.lane.b32.xlu1 %v2707_v34, %s6251_s20 }
0x13aa   : > { %2684 = vperm.xlu0 %3992, %v2678_v43   ;;  %2719 = vrot.lane.b32.xlu1 %v2709_v56, %s6251_s20 }
0x13ae   : > { %2721 = vrot.lane.b32.xlu1 %v2710_v22, %s6251_s20  ;;  %3994 = vset.pattern.permute.xlu0 %v6258_v4 }
0x13b2   : > { %2689 = vperm.xlu1 %3993, %v2679_v37  }
0x13b6   : > { %2694 = vperm.xlu1 %3993, %v2680_v29  }
0x13ba   : > { %2699 = vperm.xlu1 %3993, %v2681_v27  }
0x13be   : > { %3995 = vset.pattern.permute.xlu1 %v6258_v4 }
0x1418   : > { %v2718_v41 = vpop.permute.xlu0 %2717  ;;  %v2716_v55 = vpop.permute.xlu1 %2715 }
0x1419   : > { %v2728_v34 = vsub.f32 %v5437_v57, %v2718_v41  ;;  %v2727_v12 = vsub.f32 %v5431_v45, %v2716_v55 }
0x141b   : > { %2738 = vperm.xlu1 %3995, %v2728_v34   ;;  %2733 = vperm.xlu0 %3994, %v2727_v12  }
0x141c   : > { %v2720_v43 = vpop.permute.xlu1 %2719 }
0x141d   : > { %v2729_v2 = vsub.f32 %v5402_v38, %v2720_v43 }
0x141f   : > { %2743 = vperm.xlu0 %3994, %v2729_v2  }
0x1420   : > { %v2722_v56 = vpop.permute.xlu1 %2721 }
0x1421   : > { %v2730_v22 = vsub.f32 %v5411_v11, %v2722_v56 }
0x1423   : > { %2748 = vperm.xlu1 %3995, %v2730_v22   ;;  %3996 = vset.pattern.permute.xlu0 %v6259_v44 }
0x1427   : > { %3997 = vset.pattern.permute.xlu1 %v6259_v44 }
0x1429   : > { %v2685_v27 = vpop.permute.xlu0 %2684 }
0x142a   : > { %v2702_v55 = vmul.f32 %v2685_v27, %v5337_v39 }
0x1431   : > { %v2690_v37 = vpop.permute.xlu1 %2689 }
0x1432   : > { %v2703_v34 = vmul.f32 %v2690_v37, %v5339_v42 }
0x1435   : > { %v2695_v29 = vpop.permute.xlu1 %2694 }
0x1436   : > { %v2704_v28 = vmul.f32 %v2695_v29, %v5363_v14 }
0x1439   : > { %v2700_v41 = vpop.permute.xlu1 %2699 }
0x143a   : > { %v2705_v22 = vmul.f32 %v2700_v41, %v5385_v46 }
0x149a   : > { %v2734_v12 = vpop.permute.xlu0 %2733  ;;  %v2739_v21 = vpop.permute.xlu1 %2738 }
0x149b   : > { %v2751_v43 = vadd.f32 %v2734_v12, %v2702_v55  ;;  %v2752_v2 = vadd.f32 %v2739_v21, %v2703_v34 }
0x149d   : > { %2755 = vrot.lane.b32.xlu0 %v2751_v43, %s6244_s15  ;;  %2757 = vrot.lane.b32.xlu1 %v2752_v2, %s6244_s15  ;;  %v2771_v29 = vmul.f32 %v2751_v43, %v4525_v32 }
0x149e   : > { %v2744_v56 = vpop.permute.xlu0 %2743 }
0x149f   : > { %v2753_v44 = vadd.f32 %v2744_v56, %v2704_v28 }
0x14a1   : > { %2759 = vrot.lane.b32.xlu0 %v2753_v44, %s6244_s15  ;;  %2779 = vrot.lane.b32.xlu1 %v2751_v43, %s6245_s18  ;;  %v741_v43 = vmul.f32 %v4415_v13, %v5305_v31 }
0x14a2   : > { %v2749_v39 = vpop.permute.xlu1 %2748 }
0x14a3   : > { %v2754_v42 = vadd.f32 %v2749_v39, %v2705_v22  ;;  %v733_v39 = vmul.f32 %v4415_v13, %v5303_v35 }
0x14a5   : > { %2781 = vrot.lane.b32.xlu0 %v2752_v2, %s6245_s18  ;;  %2761 = vrot.lane.b32.xlu1 %v2754_v42, %s6244_s15 }
0x14a9   : > { %2783 = vrot.lane.b32.xlu0 %v2753_v44, %s6245_s18  ;;  %2785 = vrot.lane.b32.xlu1 %v2754_v42, %s6245_s18 }
0x150f   : > { %v2756_v21 = vpop.permute.xlu0 %2755  ;;  %v2758_v14 = vpop.permute.xlu1 %2757 }
0x1510   : > { %v2763_v28 = vsel %vm302_vm5, %v2756_v21, 0.0  ;;  %v2764_v37 = vsel %vm302_vm5, %v2758_v14, 0.0  ;;  %v2772_v21 = vmul.f32 %v2752_v2, %v4519_v47 }
0x1511   : > { %v2767_v46 = vmul.f32 %v2763_v28, %v4541_v62  ;;  %v2768_v56 = vmul.f32 %v2764_v37, %v4517_v23 }
0x1513   : > { %v2760_v27 = vpop.permute.xlu0 %2759  ;;  %v2780_v41 = vpop.permute.xlu1 %2779  ;;  %v2775_v12 = vadd.f32 %v2771_v29, %v2767_v46  ;;  %v2773_v29 = vmul.f32 %v2753_v44, %v4527_v50 }
0x1514   : > { %v2765_v55 = vsel %vm302_vm5, %v2760_v27, 0.0  ;;  %v2787_v34 = vsel %vm306_vm6, %v2780_v41, 0.0 }
0x1515   : > { %v2791_v22 = vmul.f32 %v2787_v34, %v4523_v49  ;;  %v2769_v14 = vmul.f32 %v2765_v55, %v4521_v48  ;;  %v2776_v34 = vadd.f32 %v2772_v21, %v2768_v56  ;;  %v5494_v55 = vsel %vm700_vm15, %v5303_v35, %v733_v39 }
0x1517   : > { %v2795_v28 = vadd.f32 %v2791_v22, %v2775_v12  ;;  %v2782_v27 = vpop.permute.xlu0 %2781  ;;  %v2762_v41 = vpop.permute.xlu1 %2761  ;;  %v2774_v12 = vmul.f32 %v2754_v42, %v4533_v54  ;;  %v5498_v22 = vsel %vm708_vm1, %v5305_v31, %v741_v43  ;;  %v2777_v20 = vadd.f32 %v2773_v29, %v2769_v14 }
0x1518   : > { %v2788_v46 = vsel %vm306_vm6, %v2782_v27, 0.0  ;;  %v2766_v37 = vsel %vm302_vm5, %v2762_v41, 0.0  ;;  %v2947_v29 = vmul.f32 %v5498_v22, %v5498_v22 }
0x1519   : > { %v2792_v17 = vmul.f32 %v2788_v46, %v4531_v53  ;;  %v2770_v2 = vmul.f32 %v2766_v37, %v4529_v52  ;;  %v2803_v27 = vmul.f32 %v2795_v28, %v4558_v33  ;;  %vm2799_vm2 = vcmp.gt.f32.partialorder %v2795_v28, 0.0 }
0x151a   : > { %v2934_v37 = vadd.f32 %v5498_v22, %v5494_v55 }
0x151b   : > { %v2796_v36 = vadd.f32 %v2792_v17, %v2776_v34  ;;  %v2784_v41 = vpop.permute.xlu0 %2783  ;;  %v2786_v15 = vpop.permute.xlu1 %2785  ;;  %v2778_v44 = vadd.f32 %v2774_v12, %v2770_v2  ;;  %v749_v17 = vmul.f32 %v4415_v13, %v5307_v10  ;;  %v5511_v43 = vsel %vm2799_vm2, %v2795_v28, %v2803_v27 }
0x151c   : > { %v2789_v56 = vsel %vm306_vm6, %v2784_v41, 0.0  ;;  %v2790_v35 = vsel %vm306_vm6, %v2786_v15, 0.0  ;;  %6275 = vst [vmem:[#allocation45_spill] sm:$0xff] %v5511_v43  ;;  %v2946_v15 = vmul.f32 %v5494_v55, %v5494_v55  ;;  %v2823_v12 = vmul.f32 %v5511_v43, %v5511_v43 }
0x151d   : > { %vm2800_vm3 = vcmp.gt.f32.partialorder %v2796_v36, 0.0  ;;  %v2804_v42 = vmul.f32 %v2796_v36, %v4558_v33  ;;  %v2793_v31 = vmul.f32 %v2789_v56, %v4535_v59  ;;  %v2794_v39 = vmul.f32 %v2790_v35, %v4537_v60 }
0x151e   : > { %v757_v27 = vmul.f32 %v4415_v13, %v5311_v24 }
0x151f   : > { %v5513_v21 = vsel %vm2800_vm3, %v2796_v36, %v2804_v42  ;;  %v2797_v14 = vadd.f32 %v2793_v31, %v2777_v20  ;;  %v2798_v46 = vadd.f32 %v2794_v39, %v2778_v44  ;;  %v5526_v20 = vsel %vm716_vm4, %v5307_v10, %v749_v17 }
0x1520   : > { %6276 = vst [vmem:[#allocation46_spill] sm:$0xff] %v5513_v21  ;;  %v2824_v34 = vmul.f32 %v5513_v21, %v5513_v21  ;;  %v2811_v2 = vadd.f32 %v5513_v21, %v5511_v43  ;;  %v2950_v42 = vadd.f32 %v2947_v29, %v2946_v15  ;;  %v2935_v31 = vadd.f32 %v2934_v37, %v5526_v20 }
0x1521   : > { %vm2801_vm7 = vcmp.gt.f32.partialorder %v2797_v14, 0.0  ;;  %v2805_v28 = vmul.f32 %v2797_v14, %v4558_v33  ;;  %v2806_v36 = vmul.f32 %v2798_v46, %v4558_v33  ;;  %vm2802_vm0 = vcmp.gt.f32.partialorder %v2798_v46, 0.0 }
0x1522   : > { %v2827_v35 = vadd.f32 %v2824_v34, %v2823_v12  ;;  %v2948_v39 = vmul.f32 %v5526_v20, %v5526_v20  ;;  %v1382_v21 = vstv %s4782_s19 }
0x1523   : > { %v5534_v41 = vsel %vm2801_vm7, %v2797_v14, %v2805_v28  ;;  %v5536_v44 = vsel %vm2802_vm0, %v2798_v46, %v2806_v36  ;;  %v5549_v46 = vsel %vm724_vm8, %v5311_v24, %v757_v27 }
0x1524   : > { %6277 = vst [vmem:[#allocation47_spill] sm:$0xff] %v5534_v41  ;;  %6278 = vst [vmem:[#allocation48_spill] sm:$0xff] %v5536_v44  ;;  %v2812_v56 = vadd.f32 %v2811_v2, %v5534_v41  ;;  %v2825_v10 = vmul.f32 %v5534_v41, %v5534_v41  ;;  %v2826_v17 = vmul.f32 %v5536_v44, %v5536_v44 }
0x1525   : > { %v2949_v34 = vmul.f32 %v5549_v46, %v5549_v46  ;;  %v2936_v15 = vadd.f32 %v2935_v31, %v5549_v46  ;;  %v2951_v37 = vadd.f32 %v2950_v42, %v2948_v39 }
0x1526   : > { %v2813_v13 = vadd.f32 %v2812_v56, %v5536_v44  ;;  %v2828_v14 = vadd.f32 %v2827_v35, %v2825_v10 }
0x1527   : > { %v2952_v29 = vadd.f32 %v2951_v37, %v2949_v34 }
0x1528   : > { %2814 = vadd.xlane.f32.xlu0 %v2813_v13  ;;  %v2829_v28 = vadd.f32 %v2828_v14, %v2826_v17 }
0x152a   : > { %2830 = vadd.xlane.f32.xlu1 %v2829_v28 }
0x152c   : > { %2937 = vadd.xlane.f32.xlu0 %v2936_v15 }
0x1530   : > { %2953 = vadd.xlane.f32.xlu0 %v2952_v29 }
0x15b5   : > { %v2815_v36 = vpop.xlane.xlu0 %2814 }
0x15b6   : > { %v2816_v2 = vrot.slane %v2815_v36, 4 }
0x15b7   : > { %v2831_v12 = vpop.xlane.xlu1 %2830 }
0x15b8   : > { %v2817_v56 = vadd.f32 %v2816_v2, %v2815_v36  ;;  %v2832_v10 = vrot.slane %v2831_v12, 4 }
0x15b9   : > { %v2938_v42 = vpop.xlane.xlu0 %2937 }
0x15ba   : > { %v2833_v35 = vadd.f32 %v2832_v10, %v2831_v12  ;;  %v2818_v24 = vrot.slane %v2817_v56, 2  ;;  %v2939_v39 = vrot.slane %v2938_v42, 4 }
0x15bc   : > { %v2819_v27 = vadd.f32 %v2818_v24, %v2817_v56  ;;  %v2834_v13 = vrot.slane %v2833_v35, 2  ;;  %v2940_v15 = vadd.f32 %v2939_v39, %v2938_v42 }
0x15bd   : > { %v2954_v31 = vpop.xlane.xlu0 %2953 }
0x15be   : > { %v2820_v17 = vrot.slane %v2819_v27, 1  ;;  %v2835_v14 = vadd.f32 %v2834_v13, %v2833_v35  ;;  %v2955_v34 = vrot.slane %v2954_v31, 4  ;;  %v2941_v29 = vrot.slane %v2940_v15, 2 }
0x15c0   : > { %v2821_v41 = vadd.f32 %v2820_v17, %v2819_v27  ;;  %v2836_v44 = vrot.slane %v2835_v14, 1  ;;  %v2956_v37 = vadd.f32 %v2955_v34, %v2954_v31 }
0x15c2   : > { %3871 = vpush %v2821_v41  ;;  %v2837_v28 = vadd.f32 %v2836_v44, %v2835_v14  ;;  %v2957_v2 = vrot.slane %v2956_v37, 2  ;;  %v2942_v41 = vadd.f32 %v2941_v29, %v2940_v15 }
0x15c4   : > { %3873 = vpush %v2837_v28  ;;  %v2958_v44 = vadd.f32 %v2957_v2, %v2956_v37  ;;  %v2943_v12 = vrot.slane %v2942_v41, 1 }
0x15c6   : > { %v2959_v56 = vrot.slane %v2958_v44, 1  ;;  %v2944_v35 = vadd.f32 %v2943_v12, %v2942_v41 }
0x15c8   : > { %v2960_v24 = vadd.f32 %v2959_v56, %v2958_v44 }
0x15f3   : > { %s3872_s1 = spop %3871 }
0x15f4   : > { %s2839_s5 = smul.f32 0.00024414063, %s3872_s1 }
0x15f5   : > { %s3874_s17 = spop %3873 }
0x15f6   : > { %s2841_s0 = smul.f32 %s2839_s5, %s2839_s5  ;;  %v5560_v17 = vstv %s2839_s5 }
0x15f7   : > { %s2840_s2 = smul.f32 0.00024414063, %s3874_s17  ;;  %6281 = vst [vmem:[#allocation51_spill] sm:$0xff] %v5560_v17 }
0x15f9   : > { %s2842_s14 = ssub.f32 %s2840_s2, %s2841_s0 }
0x15fb   : > { %s2843_s8 = sadd.f32 1e-08, %s2842_s14 }
0x15fd   : > { %v2844_v36 = vstv %s2843_s8 }
0x15fe   : > { %4041 = vrsqrt.f32 %v2844_v36 }
0x1608   : > { %v4042_v10 = vpop.eup %4041 }
0x1609   : > { %3875 = vpush %v4042_v10 }
0x160a   : > { %3877 = vpush %v2944_v35 }
0x160b   : > { %3879 = vpush %v2960_v24  ;;  %v1089_v24 = vstv %s4642_s12 }
0x163a   : > { %s3876_s11 = spop %3875 }
0x163b   : > { %v5554_v27 = vstv %s3876_s11  ;;  %s3878_s13 = spop %3877 }
0x163c   : > { %6279 = vst [vmem:[#allocation49_spill] sm:$0xff] %v5554_v27  ;;  %v5558_v13 = vmul.f32 %v5402_v38, %v5554_v27  ;;  %s2962_s29 = smul.f32 0.00024414063, %s3878_s13  ;;  %s3880_s1 = spop %3879 }
0x163d   : > { %s2963_s17 = smul.f32 0.00024414063, %s3880_s1 }
0x163e   : > { %6280 = vst [vmem:[#allocation50_spill] sm:$0xff] %v5558_v13  ;;  %v5564_v14 = vmul.f32 %v5560_v17, %v5558_v13  ;;  %s2964_s0 = smul.f32 %s2962_s29, %s2962_s29  ;;  %v2999_v15 = vstv %s2962_s29 }
0x1640   : > { %6282 = vst [vmem:[#allocation52_spill] sm:$0xff] %v5564_v14  ;;  %s2965_s2 = ssub.f32 %s2963_s17, %s2964_s0 }
0x1642   : > { %s2966_s14 = sadd.f32 1e-08, %s2965_s2 }
0x1644   : > { %v2967_v28 = vstv %s2966_s14 }
0x1645   : > { %4043 = vrsqrt.f32 %v2967_v28 }
0x164f   : > { %v4044_v42 = vpop.eup %4043 }
0x1650   : > { %3881 = vpush %v4044_v42  ;;  %v5580_v42 = vmul.f32 %v5437_v57, %v1089_v24 }
0x1681   : > { %s3882_s8 = spop %3881 }
0x1682   : > { %v2970_v31 = vstv %s3882_s8 }
0x1683   : > { %v2971_v39 = vmul.f32 %v5431_v45, %v2970_v31  ;;  %v2972_v34 = vmul.f32 %v5437_v57, %v2970_v31  ;;  %v2973_v37 = vmul.f32 %v5402_v38, %v2970_v31  ;;  %v2974_v2 = vmul.f32 %v5411_v11, %v2970_v31 }
0x1685   : > { %v3000_v29 = vmul.f32 %v2999_v15, %v2971_v39  ;;  %v3001_v36 = vmul.f32 %v2999_v15, %v2972_v34  ;;  %v3002_v41 = vmul.f32 %v2999_v15, %v2973_v37  ;;  %v3003_v44 = vmul.f32 %v2999_v15, %v2974_v2 }
0x1686   : > { %v5588_v15 = vmul.f32 %v5411_v11, %v1089_v24 }
0x1687   : > { %3010 = vrot.lane.b32.xlu0 %v3001_v36, %s6251_s20  ;;  %3008 = vrot.lane.b32.xlu1 %v3000_v29, %s6251_s20  ;;  %v6283_v36 = vmov 2  }
0x168b   : > { %2977 = vperm.xlu0 %3996, %v2971_v39   ;;  %3012 = vrot.lane.b32.xlu1 %v3002_v41, %s6251_s20  ;;  %v1118_v39 = vstv %s4638_s28 }
0x168f   : > { %3014 = vrot.lane.b32.xlu1 %v3003_v44, %s6251_s20  ;;  %3998 = vset.pattern.permute.xlu0 %v6258_v4  ;;  %v1122_v44 = vmul.f32 %v1118_v39, %v5588_v15 }
0x1693   : > { %2982 = vperm.xlu1 %3997, %v2972_v34  }
0x1697   : > { %2987 = vperm.xlu1 %3997, %v2973_v37   ;;  %v1120_v37 = vmul.f32 %v1118_v39, %v5580_v42 }
0x169b   : > { %2992 = vperm.xlu1 %3997, %v2974_v2   ;;  %v5595_v2 = vmul.f32 %v5402_v38, %v1089_v24 }
0x169f   : > { %3999 = vset.pattern.permute.xlu1 %v6258_v4  ;;  %v5585_v4 = vmul.f32 %v5431_v45, %v1089_v24 }
0x16a1   : > { %v1119_v41 = vmul.f32 %v1118_v39, %v5585_v4 }
0x16f9   : > { %v3011_v12 = vpop.permute.xlu0 %3010  ;;  %v3009_v56 = vpop.permute.xlu1 %3008 }
0x16fa   : > { %v3021_v10 = vsub.f32 %v5437_v57, %v3011_v12  ;;  %v3020_v35 = vsub.f32 %v5431_v45, %v3009_v56  ;;  %v6208_v12 = vmov 3   ;;  %v1121_v56 = vmul.f32 %v1118_v39, %v5595_v2 }
0x16fc   : > { %3031 = vperm.xlu1 %3999, %v3021_v10   ;;  %3026 = vperm.xlu0 %3998, %v3020_v35  }
0x16fd   : > { %v3013_v28 = vpop.permute.xlu1 %3012 }
0x16fe   : > { %v3022_v31 = vsub.f32 %v5402_v38, %v3013_v28 }
0x1700   : > { %3036 = vperm.xlu0 %3998, %v3022_v31  }
0x1701   : > { %v3015_v34 = vpop.permute.xlu1 %3014 }
0x1702   : > { %v3023_v29 = vsub.f32 %v5411_v11, %v3015_v34 }
0x1704   : > { %1129 = vrot.lane.b32.xlu0 %v1120_v37, %s6251_s20  ;;  %3041 = vperm.xlu1 %3999, %v3023_v29  }
0x1705   : > { %4002 = vset.pattern.permute.xlu0 %v6283_v36 }
0x1708   : > { %1133 = vrot.lane.b32.xlu0 %v1122_v44, %s6251_s20  ;;  %1127 = vrot.lane.b32.xlu1 %v1119_v41, %s6251_s20 }
0x1709   : > { %4000 = vset.pattern.permute.xlu1 %v6208_v12 }
0x170a   : > { %v2978_v24 = vpop.permute.xlu0 %2977 }
0x170b   : > { %v2995_v28 = vmul.f32 %v2978_v24, %v5494_v55  ;;  %v5612_v24 = vmul.f32 %v5437_v57, %v1382_v21 }
0x170c   : > { %1131 = vrot.lane.b32.xlu1 %v1121_v56, %s6251_s20 }
0x1712   : > { %v2983_v10 = vpop.permute.xlu1 %2982 }
0x1713   : > { %v2996_v39 = vmul.f32 %v2983_v10, %v5498_v22 }
0x1716   : > { %v2988_v35 = vpop.permute.xlu1 %2987 }
0x1717   : > { %v2997_v29 = vmul.f32 %v2988_v35, %v5526_v20  ;;  %v1411_v35 = vstv %s4778_s16 }
0x1718   : > { %v1413_v22 = vmul.f32 %v1411_v35, %v5612_v24 }
0x171a   : > { %v2993_v31 = vpop.permute.xlu1 %2992 }
0x177b   : > { %v3027_v34 = vpop.permute.xlu0 %3026  ;;  %v3032_v41 = vpop.permute.xlu1 %3031 }
0x177c   : > { %v3044_v37 = vadd.f32 %v3027_v34, %v2995_v28  ;;  %v3045_v43 = vadd.f32 %v3032_v41, %v2996_v39  ;;  %v5618_v28 = vmul.f32 %v5411_v11, %v1382_v21  ;;  %v2998_v34 = vmul.f32 %v2993_v31, %v5549_v46 }
0x177d   : > { %v5637_v31 = vmul.f32 %v5402_v38, %v1382_v21 }
0x177e   : > { %3048 = vrot.lane.b32.xlu0 %v3044_v37, %s6244_s15  ;;  %v1415_v10 = vmul.f32 %v1411_v35, %v5618_v28  ;;  %v3065_v13 = vmul.f32 %v3045_v43, %v4519_v47 }
0x177f   : > { %v3037_v44 = vpop.permute.xlu0 %3036 }
0x1780   : > { %v3046_v12 = vadd.f32 %v3037_v44, %v2997_v29 }
0x1782   : > { %3052 = vrot.lane.b32.xlu0 %v3046_v12, %s6244_s15  ;;  %v3066_v17 = vmul.f32 %v3046_v12, %v4527_v50 }
0x1783   : > { %v3042_v56 = vpop.permute.xlu1 %3041  ;;  %v5628_v41 = vpop.permute.xlu0 %1129 }
0x1784   : > { %v3047_v29 = vadd.f32 %v3042_v56, %v2998_v34  ;;  %6284 = vst [vmem:[#allocation53_spill] sm:$0xff] %v5628_v41 }
0x1786   : > { %3074 = vrot.lane.b32.xlu0 %v3045_v43, %s6245_s18 }
0x1787   : > { %v1128_v55 = vpop.permute.xlu1 %1127 }
0x1788   : > { %v1139_v20 = vsub.f32 %v5431_v45, %v1128_v55  ;;  %v1134_v55 = vpop.permute.xlu0 %1133 }
0x1789   : > { %v1142_v46 = vsub.f32 %v5411_v11, %v1134_v55 }
0x178a   : > { %3076 = vrot.lane.b32.xlu0 %v3046_v12, %s6245_s18  ;;  %1145 = vperm.xlu1 %4000, %v1139_v20   ;;  %v5633_v20 = vmul.f32 %v5431_v45, %v1382_v21 }
0x178b   : > { %v1132_v44 = vpop.permute.xlu1 %1131 }
0x178c   : > { %v1141_v39 = vsub.f32 %v5402_v38, %v1132_v44  ;;  %v1412_v56 = vmul.f32 %v1411_v35, %v5633_v20 }
0x178e   : > { %1422 = vrot.lane.b32.xlu0 %v1413_v22, %s6251_s20  ;;  %3050 = vrot.lane.b32.xlu1 %v3045_v43, %s6244_s15  ;;  %v1414_v22 = vmul.f32 %v1411_v35, %v5637_v31 }
0x1792   : > { %1426 = vrot.lane.b32.xlu0 %v1415_v10, %s6251_s20  ;;  %3072 = vrot.lane.b32.xlu1 %v3044_v37, %s6245_s18 }
0x1796   : > { %3054 = vrot.lane.b32.xlu1 %v3047_v29, %s6244_s15 }
0x179a   : > { %3078 = vrot.lane.b32.xlu1 %v3047_v29, %s6245_s18 }
0x179e   : > { %1155 = vperm.xlu1 %4000, %v1141_v39  }
0x17a2   : > { %1160 = vperm.xlu1 %4000, %v1142_v46  }
0x17a6   : > { %1420 = vrot.lane.b32.xlu1 %v1412_v56, %s6251_s20 }
0x17aa   : > { %1424 = vrot.lane.b32.xlu1 %v1414_v22, %s6251_s20 }
0x17f0   : > { %v3049_v10 = vpop.permute.xlu0 %3048 }
0x17f1   : > { %v3056_v55 = vsel %vm302_vm5, %v3049_v10, 0.0 }
0x17f4   : > { %v3053_v34 = vpop.permute.xlu0 %3052 }
0x17f5   : > { %v3058_v21 = vsel %vm302_vm5, %v3053_v34, 0.0  ;;  %v3064_v34 = vmul.f32 %v3044_v37, %v4525_v32 }
0x17f6   : > { %v3062_v41 = vmul.f32 %v3058_v21, %v4521_v48 }
0x17f8   : > { %v3075_v44 = vpop.permute.xlu0 %3074  ;;  %v3070_v43 = vadd.f32 %v3066_v17, %v3062_v41 }
0x17f9   : > { %v3081_v56 = vsel %vm306_vm6, %v3075_v44, 0.0 }
0x17fa   : > { %v3085_v44 = vmul.f32 %v3081_v56, %v4531_v53 }
0x17fc   : > { %v3077_v14 = vpop.permute.xlu0 %3076 }
0x17fd   : > { %v3082_v35 = vsel %vm306_vm6, %v3077_v14, 0.0 }
0x17fe   : > { %v3086_v27 = vmul.f32 %v3082_v35, %v4535_v59 }
0x1809   : > { %v5643_v39 = vpop.permute.xlu1 %1145 }
0x180a   : > { %6285 = vst [vmem:[#allocation54_spill] sm:$0xff] %v5643_v39  ;;  %v3060_v39 = vmul.f32 %v3056_v55, %v4541_v62  ;;  %v3090_v55 = vadd.f32 %v3086_v27, %v3070_v43 }
0x180c   : > { %v3068_v47 = vadd.f32 %v3064_v34, %v3060_v39  ;;  %vm3094_vm11 = vcmp.gt.f32.partialorder %v3090_v55, 0.0 }
0x180d   : > { %v3051_v46 = vpop.permute.xlu1 %3050 }
0x180e   : > { %v3057_v22 = vsel %vm302_vm5, %v3051_v46, 0.0 }
0x180f   : > { %v3061_v10 = vmul.f32 %v3057_v22, %v4517_v23 }
0x1811   : > { %v3069_v14 = vadd.f32 %v3065_v13, %v3061_v10  ;;  %v3073_v9 = vpop.permute.xlu1 %3072  ;;  %v3098_v13 = vmul.f32 %v3090_v55, %v4558_v33 }
0x1812   : > { %v3080_v46 = vsel %vm306_vm6, %v3073_v9, 0.0  ;;  %v3067_v9 = vmul.f32 %v3047_v29, %v4533_v54 }
0x1813   : > { %v3089_v62 = vadd.f32 %v3085_v44, %v3069_v14  ;;  %v3084_v48 = vmul.f32 %v3080_v46, %v4523_v49  ;;  %v5684_v54 = vsel %vm3094_vm11, %v3090_v55, %v3098_v13  ;;  %v5697_v46 = vpop.permute.xlu0 %1422 }
0x1814   : > { %6286 = vst [vmem:[#allocation55_spill] sm:$0xff] %v5684_v54  ;;  %v3118_v61 = vmul.f32 %v5684_v54, %v5684_v54 }
0x1815   : > { %v3097_v23 = vmul.f32 %v3089_v62, %v4558_v33  ;;  %v3088_v32 = vadd.f32 %v3084_v48, %v3068_v47  ;;  %v3055_v37 = vpop.permute.xlu1 %3054  ;;  %vm3093_vm9 = vcmp.gt.f32.partialorder %v3089_v62, 0.0 }
0x1816   : > { %v3059_v50 = vsel %vm302_vm5, %v3055_v37, 0.0 }
0x1817   : > { %vm3092_vm10 = vcmp.gt.f32.partialorder %v3088_v32, 0.0  ;;  %v3096_v53 = vmul.f32 %v3088_v32, %v4558_v33  ;;  %v3063_v59 = vmul.f32 %v3059_v50, %v4529_v52  ;;  %v5673_v17 = vsel %vm3093_vm9, %v3089_v62, %v3097_v23  ;;  %v1427_v48 = vpop.permute.xlu0 %1426 }
0x1818   : > { %v3117_v52 = vmul.f32 %v5673_v17, %v5673_v17  ;;  %v1435_v55 = vsub.f32 %v5411_v11, %v1427_v48 }
0x1819   : > { %v5675_v49 = vsel %vm3092_vm10, %v3088_v32, %v3096_v53  ;;  %v3079_v27 = vpop.permute.xlu1 %3078  ;;  %v3071_v39 = vadd.f32 %v3067_v9, %v3063_v59  ;;  %v6293_v9 = vld [vmem:[#allocation19_spill] sm:$0xff] }
0x181a   : > { %v3083_v12 = vsel %vm306_vm6, %v3079_v27, 0.0  ;;  %v3116_v41 = vmul.f32 %v5675_v49, %v5675_v49  ;;  %v3104_v23 = vadd.f32 %v5673_v17, %v5675_v49  ;;  %vm3272_vm6 = vcmask 261120  }
0x181b   : > { %v3087_v21 = vmul.f32 %v3083_v12, %v4537_v60 }
0x181c   : > { %v3120_v35 = vadd.f32 %v3117_v52, %v3116_v41  ;;  %v3105_v32 = vadd.f32 %v3104_v23, %v5684_v54  ;;  %v6310_v54 = vld [vmem:[#allocation21_spill] sm:$0xff] }
0x181d   : > { %v3091_v29 = vadd.f32 %v3087_v21, %v3071_v39  ;;  %v5686_v56 = vpop.permute.xlu1 %1155 }
0x181e   : > { %v3121_v44 = vadd.f32 %v3120_v35, %v3118_v61 }
0x181f   : > { %vm3095_vm5 = vcmp.gt.f32.partialorder %v3091_v29, 0.0  ;;  %v3099_v22 = vmul.f32 %v3091_v29, %v4558_v33 }
0x1821   : > { %v5691_v10 = vpop.permute.xlu1 %1160  ;;  %v5693_v34 = vsel %vm3095_vm5, %v3091_v29, %v3099_v22 }
0x1822   : > { %v3119_v60 = vmul.f32 %v5693_v34, %v5693_v34  ;;  %v3106_v37 = vadd.f32 %v3105_v32, %v5693_v34 }
0x1824   : > { %v3122_v14 = vadd.f32 %v3121_v44, %v3119_v60  ;;  %v6294_v44 = vld [vmem:[#allocation15_spill] sm:$0xff] }
0x1825   : > { %v1421_v47 = vpop.permute.xlu1 %1420 }
0x1826   : > { %v1432_v43 = vsub.f32 %v5431_v45, %v1421_v47  ;;  %3123 = vadd.xlane.f32.xlu0 %v3122_v14 }
0x1828   : > { %1438 = vperm.xlu1 %4000, %v1432_v43  }
0x1829   : > { %v1425_v33 = vpop.permute.xlu1 %1424 }
0x182a   : > { %v1434_v62 = vsub.f32 %v5402_v38, %v1425_v33 }
0x182c   : > { %1448 = vperm.xlu1 %4000, %v1434_v62   ;;  %v6295_v62 = vld [vmem:[#allocation14_spill] sm:$0xff] }
0x1830   : > { %1453 = vperm.xlu1 %4000, %v1435_v55  }
0x1834   : > { %4001 = vset.pattern.permute.xlu1 %v6283_v36 }
0x183c   : > { %1096 = vperm.xlu0 %4002, %v5585_v4   ;;  %v5719_v4 = vmul.f32 %v5431_v45, %v5103_v1 }
0x1840   : > { %1111 = vperm.xlu0 %4002, %v5588_v15   ;;  %v6292_v15 = vld [vmem:[#allocation51_spill] sm:$0xff] }
0x1844   : > { %1389 = vperm.xlu0 %4002, %v5633_v20  }
0x1848   : > { %1404 = vperm.xlu0 %4002, %v5618_v28  }
0x184c   : > { %1682 = vperm.xlu0 %4002, %v4910_v25   ;;  %v5724_v25 = vmul.f32 %v5437_v57, %v5103_v1 }
0x1850   : > { %1692 = vperm.xlu0 %4002, %v4926_v19   ;;  %v1999_v19 = vmul.f32 %v5113_v26, %v5724_v25 }
0x1854   : > { %1715 = vrot.lane.b32.xlu0 %v4941_v16, %s6251_s20  ;;  %3107 = vadd.xlane.f32.xlu1 %v3106_v37  ;;  %v5736_v16 = vmul.f32 %v5431_v45, %v5239_v6 }
0x1858   : > { %1719 = vrot.lane.b32.xlu0 %v4947_v58, %s6251_s20  ;;  %v5742_v58 = vmul.f32 %v5437_v57, %v5239_v6  ;;  %v6287_v6 = vmov 3  }
0x185a   : > { %v2292_v1 = vmul.f32 %v5249_v30, %v5742_v58 }
0x185c   : > { %1975 = vperm.xlu0 %4002, %v5719_v4  }
0x1860   : > { %1990 = vperm.xlu0 %4002, %v5111_v51   ;;  %v5755_v51 = vmul.f32 %v5431_v45, %v5397_v5 }
0x1864   : > { %2008 = vrot.lane.b32.xlu0 %v1999_v19, %s6251_s20 }
0x1865   : > { %1101 = vperm.xlu1 %4001, %v5580_v42  }
0x1868   : > { %2012 = vrot.lane.b32.xlu0 %v5121_v63, %s6251_s20  ;;  %v5762_v63 = vmul.f32 %v5437_v57, %v5397_v5 }
0x1869   : > { %1106 = vperm.xlu1 %4001, %v5595_v2  }
0x186c   : > { %2268 = vperm.xlu0 %4002, %v5736_v16  }
0x186d   : > { %1394 = vperm.xlu1 %4001, %v5612_v24  }
0x1870   : > { %2283 = vperm.xlu0 %4002, %v5247_v18  }
0x1871   : > { %1399 = vperm.xlu1 %4001, %v5637_v31  }
0x1874   : > { %2301 = vrot.lane.b32.xlu0 %v2292_v1, %s6251_s20 }
0x1875   : > { %1687 = vperm.xlu1 %4001, %v4918_v7   ;;  %v6288_v7 = vld [vmem:[#allocation24_spill] sm:$0xff] }
0x1878   : > { %2305 = vrot.lane.b32.xlu0 %v5257_v3, %s6251_s20  ;;  %v6290_v3 = vld [vmem:[#allocation44_spill] sm:$0xff] }
0x1879   : > { %1697 = vperm.xlu1 %4001, %v4934_v40   ;;  %v6289_v40 = vld [vmem:[#allocation42_spill] sm:$0xff] }
0x187a   : > { %v2585_v18 = vmul.f32 %v6289_v40, %v5762_v63 }
0x187c   : > { %2561 = vperm.xlu0 %4002, %v5755_v51  }
0x187d   : > { %1713 = vrot.lane.b32.xlu1 %v4938_v8, %s6251_s20  ;;  %v6291_v8 = vld [vmem:[#allocation49_spill] sm:$0xff] }
0x187e   : > { %4003 = vset.pattern.permute.xlu1 %v6287_v6  ;;  %v5775_v42 = vmul.f32 %v5431_v45, %v6291_v8  ;;  %v5780_v5 = vmul.f32 %v5437_v57, %v6291_v8 }
0x1880   : > { %2576 = vperm.xlu0 %4002, %v5415_v0   ;;  %v5784_v0 = vmul.f32 %v5411_v11, %v6291_v8  ;;  %v2878_v2 = vmul.f32 %v6292_v15, %v5780_v5  ;;  %v6296_v8 = vld [vmem:[#allocation18_spill] sm:$0xff] }
0x1881   : > { %1717 = vrot.lane.b32.xlu1 %v6288_v7, %s6251_s20 }
0x1884   : > { %2594 = vrot.lane.b32.xlu0 %v2585_v18, %s6251_s20 }
0x1888   : > { %2598 = vrot.lane.b32.xlu0 %v6290_v3, %s6251_s20 }
0x188c   : > { %2854 = vperm.xlu0 %4002, %v5775_v42  }
0x1890   : > { %2869 = vperm.xlu0 %4002, %v5784_v0  }
0x1894   : > { %2887 = vrot.lane.b32.xlu0 %v2878_v2, %s6251_s20 }
0x18a7   : > { %v5792_v20 = vpop.permute.xlu1 %1438 }
0x18ab   : > { %v1449_v50 = vpop.permute.xlu1 %1448 }
0x18af   : > { %v1454_v27 = vpop.permute.xlu1 %1453 }
0x18b3   : > { %v3124_v24 = vpop.xlane.xlu0 %3123 }
0x18b4   : > { %v3125_v41 = vrot.slane %v3124_v24, 4 }
0x18b6   : > { %v3126_v39 = vadd.f32 %v3125_v41, %v3124_v24 }
0x18b8   : > { %v3127_v21 = vrot.slane %v3126_v39, 2 }
0x18ba   : > { %v3128_v61 = vadd.f32 %v3127_v21, %v3126_v39 }
0x18bb   : > { %v5790_v28 = vpop.permute.xlu0 %1096 }
0x18bc   : > { %v3129_v33 = vrot.slane %v3128_v61, 1 }
0x18be   : > { %v3130_v1 = vadd.f32 %v3129_v33, %v3128_v61 }
0x18bf   : > { %v1112_v31 = vpop.permute.xlu0 %1111 }
0x18c0   : > { %v1117_v14 = vmul.f32 %v1112_v31, %v6294_v44 }
0x18c2   : > { %v5804_v23 = vadd.f32 %v5691_v10, %v1117_v14 }
0x18c3   : > { %v5794_v53 = vpop.permute.xlu0 %1389 }
0x18c7   : > { %v1405_v59 = vpop.permute.xlu0 %1404 }
0x18c8   : > { %v1410_v13 = vmul.f32 %v1405_v59, %v6293_v9 }
0x18ca   : > { %v5797_v12 = vadd.f32 %v1454_v27, %v1410_v13 }
0x18cb   : > { %v5813_v18 = vpop.permute.xlu0 %1682 }
0x18cf   : > { %v5822_v31 = vpop.permute.xlu0 %1692 }
0x18d3   : > { %v5826_v9 = vpop.permute.xlu0 %1715 }
0x18e1   : > { %v3108_v52 = vpop.xlane.xlu1 %3107 }
0x18e2   : > { %v3109_v29 = vrot.slane %v3108_v52, 4 }
0x18e4   : > { %v3110_v35 = vadd.f32 %v3109_v29, %v3108_v52  ;;  %v6297_v52 = vld [vmem:[#allocation29_spill] sm:$0xff]  ;;  %v1998_v29 = vmul.f32 %v5113_v26, %v5719_v4 }
0x18e5   : > { %v5799_v22 = vpop.permute.xlu1 %1101 }
0x18e6   : > { %v3111_v60 = vrot.slane %v3110_v35, 2 }
0x18e8   : > { %v3112_v47 = vadd.f32 %v3111_v60, %v3110_v35 }
0x18e9   : > { %v1107_v43 = vpop.permute.xlu1 %1106 }
0x18ea   : > { %v1116_v48 = vmul.f32 %v1107_v43, %v6295_v62  ;;  %v3113_v55 = vrot.slane %v3112_v47, 1 }
0x18ec   : > { %v5807_v32 = vadd.f32 %v5686_v56, %v1116_v48  ;;  %v3114_v37 = vadd.f32 %v3113_v55, %v3112_v47  ;;  %v5865_v55 = vld [vmem:[%s6155_s4 + $0x18] sm:$0xff] }
0x18ed   : > { %v5809_v19 = vpop.permute.xlu1 %1394 }
0x18ee   : > { %3883 = vpush %v3114_v37 }
0x18ef   : > { %3885 = vpush %v3130_v1 }
0x18f1   : > { %v1400_v3 = vpop.permute.xlu1 %1399 }
0x18f2   : > { %v1409_v2 = vmul.f32 %v1400_v3, %v6296_v8 }
0x18f4   : > { %v5816_v24 = vadd.f32 %v1449_v50, %v1409_v2  ;;  %v1720_v50 = vpop.permute.xlu0 %1719  ;;  %v2880_v2 = vmul.f32 %v6292_v15, %v5784_v0 }
0x18f5   : > { %v5818_v10 = vpop.permute.xlu1 %1687  ;;  %v1728_v21 = vsub.f32 %v5411_v11, %v1720_v50  ;;  %v6300_v50 = vld [vmem:[#allocation20_spill] sm:$0xff] }
0x18f8   : > { %v5840_v35 = vpop.permute.xlu0 %1975 }
0x18f9   : > { %v5824_v59 = vpop.permute.xlu1 %1697 }
0x18fc   : > { %v5842_v26 = vpop.permute.xlu0 %1990 }
0x18fd   : > { %v1714_v13 = vpop.permute.xlu1 %1713 }
0x18fe   : > { %v1725_v27 = vsub.f32 %v5431_v45, %v1714_v13 }
0x1900   : > { %1731 = vperm.xlu1 %4003, %v1725_v27   ;;  %v2009_v4 = vpop.permute.xlu0 %2008 }
0x1901   : > { %v1718_v41 = vpop.permute.xlu1 %1717 }
0x1902   : > { %v1727_v39 = vsub.f32 %v5402_v38, %v1718_v41  ;;  %v6298_v38 = vld [vmem:[#allocation30_spill] sm:$0xff]  ;;  %v6299_v41 = vld [vmem:[#allocation53_spill] sm:$0xff] }
0x1904   : > { %1741 = vperm.xlu1 %4003, %v1727_v39   ;;  %v5844_v61 = vpop.permute.xlu0 %2012  ;;  %v1140_v39 = vsub.f32 %v5437_v57, %v6299_v41 }
0x1908   : > { %1746 = vperm.xlu1 %4003, %v1728_v21   ;;  %v5846_v60 = vpop.permute.xlu0 %2268  ;;  %v1700_v21 = vmul.f32 %v5813_v18, %v6300_v50 }
0x190c   : > { %4004 = vset.pattern.permute.xlu1 %v6283_v36  ;;  %v5848_v44 = vpop.permute.xlu0 %2283 }
0x190d   : > { %1980 = vperm.xlu1 %4004, %v5724_v25  }
0x1910   : > { %v2302_v14 = vpop.permute.xlu0 %2301 }
0x1911   : > { %1985 = vperm.xlu1 %4004, %v6297_v52  }
0x1914   : > { %v5860_v48 = vpop.permute.xlu0 %2305 }
0x1915   : > { %2006 = vrot.lane.b32.xlu1 %v1998_v29, %s6251_s20 }
0x1916   : > { %4005 = vset.pattern.permute.xlu1 %v6287_v6 }
0x1918   : > { %v5876_v8 = vpop.permute.xlu0 %2561 }
0x1919   : > { %2010 = vrot.lane.b32.xlu1 %v6298_v38, %s6251_s20  ;;  %v4060_v38 = vld [vmem:[%s6155_s4 + $0x8] sm:$0xff] }
0x191a   : > { %v1726_v18 = vsub.f32 %v4060_v38, %v5826_v9  ;;  %v2019_v50 = vsub.f32 %v4060_v38, %v2009_v4 }
0x191c   : > { %v5882_v13 = vpop.permute.xlu0 %2576 }
0x191f   : > { %s3884_s28 = spop %3883 }
0x1920   : > { %s3132_s12 = smul.f32 0.00024414063, %s3884_s28  ;;  %s3886_s16 = spop %3885  ;;  %v2595_v27 = vpop.permute.xlu0 %2594 }
0x1921   : > { %s3133_s19 = smul.f32 0.00024414063, %s3886_s16 }
0x1922   : > { %s3134_s15 = smul.f32 %s3132_s12, %s3132_s12  ;;  %v5858_v62 = vstv %s3132_s12 }
0x1924   : > { %s3135_s18 = ssub.f32 %s3133_s19, %s3134_s15  ;;  %v5891_v0 = vpop.permute.xlu0 %2598  ;;  %s6331_s19 = sshll.u32 %s4359_s26, 7 }
0x1925   : > { %s6054_s15 = scalar_lea.vmem [#allocation8], %s6331_s19 }
0x1926   : > { %s3136_s5 = sadd.f32 1e-08, %s3135_s18  ;;  %s3744_s18 = sshll.u32 %s4253_s25, 10 }
0x1927   : > { %s6103_s29 = scalar_lea.hbm %s6157_s6, %s3744_s18  ;;  %s3604_s25 = scalar_lea.sflag [#allocation5], %s4359_s26 }
0x1928   : > { %v3137_v11 = vstv %s3136_s5  ;;  %s3617_s5 = sshll.u32 %s6054_s15, 4  ;;  %s6105_s5 = int_to_ptr.vmem [resolvable:$true] %s3617_s5 }
0x1929   : > { %4045 = vrsqrt.f32 %v3137_v11  ;;  %v1433_v11 = vsub.f32 %v4060_v38, %v5697_v46  ;;  %s4108_s1 = scalar_lea.vmem %s6105_s5, 2048 }
0x192a   : > { %p4109_p5 = scmp.ne.s32.totalorder %s6105_s5, %s4108_s1 }
0x192c   : > { %p4110_p8 = pnand %p4109_p5, %p6337_p12 }
0x192e   : > { %p4111_p9 = pneg %p4110_p8 }
0x1933   : > { %v4046_v25 = vpop.eup %4045 }
0x1934   : > { %3887 = vpush %v4046_v25  ;;  %v6301_v25 = vld [vmem:[#allocation22_spill] sm:$0xff] }
0x1965   : > { %s3888_s11 = spop %3887 }
0x1966   : > { %v5850_v47 = vstv %s3888_s11 }
0x1967   : > { %v3141_v43 = vmul.f32 %v5431_v45, %v5850_v47  ;;  %v5856_v33 = vmul.f32 %v5437_v57, %v5850_v47  ;;  %v3144_v37 = vmul.f32 %v5865_v55, %v5850_v47  ;;  %v1702_v57 = vmul.f32 %v5822_v31, %v6301_v25 }
0x1969   : > { %v5870_v1 = vmul.f32 %v5858_v62, %v3141_v43  ;;  %v3171_v45 = vmul.f32 %v5858_v62, %v5856_v33  ;;  %v3173_v3 = vmul.f32 %v5858_v62, %v3144_v37 }
0x196b   : > { %3180 = vrot.lane.b32.xlu0 %v3171_v45, %s6251_s20  ;;  %v6302_v45 = vld [vmem:[#allocation23_spill] sm:$0xff] }
0x196f   : > { %3184 = vrot.lane.b32.xlu0 %v3173_v3, %s6251_s20  ;;  %v1703_v3 = vmul.f32 %v5824_v59, %v6302_v45  ;;  %v2021_v45 = vsub.f32 %v5865_v55, %v5844_v61 }
0x1973   : > { %2891 = vrot.lane.b32.xlu0 %v2880_v2, %s6251_s20  ;;  %v5904_v2 = vpop.permute.xlu0 %2854 }
0x1977   : > { %3147 = vperm.xlu0 %4002, %v3141_v43  }
0x197b   : > { %3162 = vperm.xlu0 %4002, %v3144_v37  }
0x197f   : > { %4013 = vset.pattern.permute.xlu0 %v6287_v6  ;;  %v1732_v52 = vpop.permute.xlu1 %1731 }
0x1980   : > { %v5889_v29 = vadd.f32 %v1732_v52, %v1700_v21  ;;  %1150 = vperm.xlu0 %4013, %v1140_v39   ;;  %v5910_v21 = vpop.permute.xlu0 %2869  ;;  %v2312_v52 = vsub.f32 %v4060_v38, %v2302_v14  ;;  %v5921_v14 = vld [vmem:[%s6155_s4 + $0x10] sm:$0xff] }
0x1983   : > { %v1742_v43 = vpop.permute.xlu1 %1741 }
0x1984   : > { %v5899_v37 = vadd.f32 %v1742_v43, %v1702_v57  ;;  %1443 = vperm.xlu0 %4013, %v1433_v11   ;;  %v2605_v11 = vsub.f32 %v4060_v38, %v2595_v27  ;;  %v2888_v25 = vpop.permute.xlu0 %2887  ;;  %v5915_v57 = vld [vmem:[%s6155_s4] sm:$0xff] }
0x1985   : > { %v2898_v43 = vsub.f32 %v4060_v38, %v2888_v25 }
0x1987   : > { %v1747_v41 = vpop.permute.xlu1 %1746 }
0x1988   : > { %v5906_v39 = vadd.f32 %v1747_v41, %v1703_v3  ;;  %1736 = vperm.xlu0 %4013, %v1726_v18   ;;  %v6303_v3 = vld [vmem:[#allocation35_spill] sm:$0xff]  ;;  %v2291_v41 = vmul.f32 %v5249_v30, %v5736_v16  ;;  %v6306_v16 = vld [vmem:[#allocation13_spill] sm:$0xff] }
0x198c   : > { %2029 = vperm.xlu0 %4013, %v2019_v50   ;;  %v1981_v31 = vpop.permute.xlu1 %1980  ;;  %v6304_v50 = vld [vmem:[#allocation36_spill] sm:$0xff] }
0x1990   : > { %2322 = vperm.xlu0 %4013, %v2312_v52   ;;  %v1986_v9 = vpop.permute.xlu1 %1985 }
0x1994   : > { %2615 = vperm.xlu0 %4013, %v2605_v11   ;;  %v2007_v59 = vpop.permute.xlu1 %2006 }
0x1995   : > { %v2018_v4 = vsub.f32 %v5915_v57, %v2007_v59 }
0x1997   : > { %2024 = vperm.xlu1 %4005, %v2018_v4   ;;  %v6305_v4 = vld [vmem:[#allocation12_spill] sm:$0xff] }
0x1998   : > { %2908 = vperm.xlu0 %4013, %v2898_v43   ;;  %v2011_v18 = vpop.permute.xlu1 %2010  ;;  %v1114_v30 = vmul.f32 %v5790_v28, %v6305_v4  ;;  %v1115_v43 = vmul.f32 %v5799_v22, %v6306_v16  ;;  %v1701_v28 = vmul.f32 %v5818_v10, %v6310_v54  ;;  %v6314_v54 = vld [vmem:[#allocation26_spill] sm:$0xff] }
0x1999   : > { %v2020_v27 = vsub.f32 %v5921_v14, %v2011_v18 }
0x199b   : > { %2034 = vperm.xlu1 %4005, %v2020_v27   ;;  %v6307_v27 = vld [vmem:[#allocation54_spill] sm:$0xff] }
0x199f   : > { %2039 = vperm.xlu1 %4005, %v2021_v45   ;;  %v1163_v45 = vadd.f32 %v6307_v27, %v1114_v30 }
0x19a3   : > { %4006 = vset.pattern.permute.xlu1 %v6283_v36 }
0x19a4   : > { %2273 = vperm.xlu1 %4006, %v5742_v58  }
0x19a8   : > { %2278 = vperm.xlu1 %4006, %v6303_v3   ;;  %v6308_v3 = vld [vmem:[#allocation16_spill] sm:$0xff] }
0x19ac   : > { %2299 = vrot.lane.b32.xlu1 %v2291_v41, %s6251_s20 }
0x19ad   : > { %4007 = vset.pattern.permute.xlu1 %v6287_v6 }
0x19b0   : > { %2303 = vrot.lane.b32.xlu1 %v6304_v50, %s6251_s20  ;;  %v6309_v50 = vld [vmem:[#allocation17_spill] sm:$0xff] }
0x19dd   : > { %v3181_v52 = vpop.permute.xlu0 %3180 }
0x19de   : > { %v3191_v11 = vsub.f32 %v4060_v38, %v3181_v52  ;;  %v1407_v38 = vmul.f32 %v5794_v53, %v6308_v3  ;;  %v1408_v52 = vmul.f32 %v5809_v19, %v6309_v50  ;;  %v6311_v53 = vpack.c.bf16 %v5797_v12, %v5816_v24  ;;  %v6316_v24 = vld [vmem:[#allocation27_spill] sm:$0xff] }
0x19df   : > { %v6312_v19 = vpack.c.bf16 %v5804_v23, %v5807_v32  ;;  %v1995_v3 = vmul.f32 %v1986_v9, %v6316_v24  ;;  %v2314_v9 = vsub.f32 %v5865_v55, %v5860_v48  ;;  %v6321_v48 = vld [vmem:[#allocation31_spill] sm:$0xff] }
0x19e0   : > { %3201 = vperm.xlu0 %4013, %v3191_v11   ;;  %v1456_v7 = vadd.f32 %v5792_v20, %v1407_v38 }
0x19e1   : > { %v5935_v61 = vpop.permute.xlu0 %3184 }
0x19e5   : > { %v5937_v25 = vpop.permute.xlu0 %2891 }
0x19f6   : > { %v5939_v58 = vpop.permute.xlu0 %3147 }
0x19fa   : > { %v5941_v59 = vpop.permute.xlu0 %3162 }
0x19ff   : > { %v1151_v18 = vpop.permute.xlu0 %1150 }
0x1a00   : > { %v1164_v41 = vadd.f32 %v1151_v18, %v1115_v43 }
0x1a02   : > { %v3763_v11 = vpack.c.bf16 %v1164_v41, %v1163_v45 }
0x1a03   : > { %v1444_v46 = vpop.permute.xlu0 %1443 }
0x1a04   : > { %v1457_v56 = vadd.f32 %v1444_v46, %v1408_v52  ;;  %v6313_v46 = vld [vmem:[#allocation25_spill] sm:$0xff] }
0x1a05   : > { %v1993_v43 = vmul.f32 %v5840_v35, %v6313_v46  ;;  %v6322_v46 = vld [vmem:[#allocation33_spill] sm:$0xff] }
0x1a06   : > { %v3761_v4 = vpack.c.bf16 %v1457_v56, %v1456_v7  ;;  %v1994_v7 = vmul.f32 %v1981_v31, %v6314_v54  ;;  %v6317_v31 = vpack.c.bf16 %v5906_v39, %v5899_v37  ;;  %v2584_v37 = vmul.f32 %v6289_v40, %v5755_v51  ;;  %v6319_v39 = vld [vmem:[#allocation43_spill] sm:$0xff] }
0x1a07   : > { %v1737_v22 = vpop.permute.xlu0 %1736 }
0x1a08   : > { %v1750_v16 = vadd.f32 %v1737_v22, %v1701_v28  ;;  %3762 = vmatprep.subr.bf16.mxu0 %v3761_v4  ;;  %v6318_v4 = vld [vmem:[#allocation41_spill] sm:$0xff]  ;;  %v6320_v22 = vld [vmem:[#allocation32_spill] sm:$0xff] }
0x1a09   : > { %3764 = vmatpush1.bf16.msra.mxu0 %v3763_v11 }
0x1a0a   : > { %v3771_v30 = vpack.c.bf16 %v1750_v16, %v5889_v29  ;;  %3766 = vmatprep.subr.bf16.mxu0 %v6311_v53  ;;  %v6315_v29 = vld [vmem:[#allocation28_spill] sm:$0xff] }
0x1a0b   : > { %v2030_v20 = vpop.permute.xlu0 %2029  ;;  %v1996_v12 = vmul.f32 %v5842_v26, %v6315_v29 }
0x1a0c   : > { %v2043_v56 = vadd.f32 %v2030_v20, %v1994_v7  ;;  %v6323_v7 = vld [vmem:[#allocation34_spill] sm:$0xff] }
0x1a0d   : > { %3768 = vmatpush1.bf16.msra.mxu0 %v6312_v19 }
0x1a0f   : > { %v2323_v53 = vpop.permute.xlu0 %2322 }
0x1a16   : > { %v2025_v10 = vpop.permute.xlu1 %2024 }
0x1a17   : > { %v2042_v18 = vadd.f32 %v2025_v10, %v1993_v43  ;;  %v2289_v10 = vmul.f32 %v5848_v44, %v6323_v7  ;;  %v2607_v44 = vsub.f32 %v5865_v55, %v5891_v0  ;;  %v3143_v0 = vmul.f32 %v5921_v14, %v5850_v47 }
0x1a19   : > { %v3769_v27 = vpack.c.bf16 %v2043_v56, %v2042_v18 }
0x1a1a   : > { %v2035_v45 = vpop.permute.xlu1 %2034 }
0x1a1b   : > { %3770 = vmatprep.subr.bf16.mxu1 %v3769_v27  ;;  %v2044_v32 = vadd.f32 %v2035_v45, %v1995_v3 }
0x1a1c   : > { %3772 = vmatpush1.bf16.msra.mxu1 %v3771_v30  ;;  %v2286_v30 = vmul.f32 %v5846_v60, %v6321_v48 }
0x1a1e   : > { %v2040_v23 = vpop.permute.xlu1 %2039 }
0x1a1f   : > { %v2045_v38 = vadd.f32 %v2040_v23, %v1996_v12  ;;  %v5995_v23 = vld [vmem:[%s6154_s3] sm:$0xff] }
0x1a20   : > { %3730 = vmatmul.mubr.msk.f32.vlgmr.msra.gmra.mrb[16].mxu0 %vm3272_vm6, %v5995_v23 }
0x1a21   : > { %v3773_v41 = vpack.c.bf16 %v2045_v38, %v2044_v32  ;;  %v6324_v32 = vmov 0.0   ;;  %v6325_v38 = vld [vmem:[#allocation50_spill] sm:$0xff] }
0x1a22   : > { %3349 = vmatprep.mubr.f32.mxu0 %v6324_v32 }
0x1a23   : > { %3774 = vmatprep.subr.bf16.mxu1 %v3773_v41  ;;  %v2274_v35 = vpop.permute.xlu1 %2273  ;;  %v2877_v41 = vmul.f32 %v6292_v15, %v5775_v42  ;;  %v6328_v42 = vld [vmem:[#allocation37_spill] sm:$0xff] }
0x1a24   : > { %3776 = vmatpush1.bf16.msra.mxu1 %v6317_v31  ;;  %v2287_v16 = vmul.f32 %v2274_v35, %v6320_v22  ;;  %v3172_v35 = vmul.f32 %v5858_v62, %v3143_v0  ;;  %v6327_v31 = vld [vmem:[#allocation38_spill] sm:$0xff]  ;;  %v2579_v15 = vmul.f32 %v5876_v8, %v6328_v42 }
0x1a27   : > { %v2279_v50 = vpop.permute.xlu1 %2278  ;;  %3732 = vmatmul.mubr.msk.f32.vlgmr.msra.gmra.mrb[16].mxu1 %vm3272_vm6, %v5995_v23 }
0x1a28   : > { %v2288_v43 = vmul.f32 %v2279_v50, %v6322_v46  ;;  %3426 = vmatprep.mubr.f32.mxu1 %v6324_v32 }
0x1a2b   : > { %v2300_v52 = vpop.permute.xlu1 %2299 }
0x1a2c   : > { %v2311_v11 = vsub.f32 %v5915_v57, %v2300_v52  ;;  %v2616_v52 = vpop.permute.xlu0 %2615 }
0x1a2e   : > { %2317 = vperm.xlu1 %4007, %v2311_v11  }
0x1a2f   : > { %v2304_v28 = vpop.permute.xlu1 %2303 }
0x1a30   : > { %v2313_v26 = vsub.f32 %v5921_v14, %v2304_v28 }
0x1a32   : > { %2327 = vperm.xlu1 %4007, %v2313_v26  }
0x1a36   : > { %2332 = vperm.xlu1 %4007, %v2314_v9  }
0x1a3a   : > { %4008 = vset.pattern.permute.xlu1 %v6283_v36 }
0x1a3b   : > { %2566 = vperm.xlu1 %4008, %v5762_v63   ;;  %v2336_v63 = vadd.f32 %v2323_v53, %v2287_v16 }
0x1a3f   : > { %2571 = vperm.xlu1 %4008, %v6318_v4   ;;  %v6330_v4 = vld [vmem:[#allocation39_spill] sm:$0xff] }
0x1a43   : > { %2592 = vrot.lane.b32.xlu1 %v2584_v37, %s6251_s20 }
0x1a44   : > { %4009 = vset.pattern.permute.xlu1 %v6287_v6 }
0x1a47   : > { %2596 = vrot.lane.b32.xlu1 %v6319_v39, %s6251_s20 }
0x1aad   : > { %v2318_v19 = vpop.permute.xlu1 %2317 }
0x1aae   : > { %v2335_v20 = vadd.f32 %v2318_v19, %v2286_v30 }
0x1ab0   : > { %v3779_v54 = vpack.c.bf16 %v2336_v63, %v2335_v20 }
0x1ab1   : > { %v2328_v51 = vpop.permute.xlu1 %2327 }
0x1ab2   : > { %v2337_v40 = vadd.f32 %v2328_v51, %v2288_v43 }
0x1ab5   : > { %v2333_v56 = vpop.permute.xlu1 %2332 }
0x1ab6   : > { %v2338_v18 = vadd.f32 %v2333_v56, %v2289_v10 }
0x1ab8   : > { %v3783_v27 = vpack.c.bf16 %v2338_v18, %v2337_v40 }
0x1aba   : > { %v2567_v45 = vpop.permute.xlu1 %2566 }
0x1abb   : > { %v2580_v50 = vmul.f32 %v2567_v45, %v6327_v31  ;;  %v6332_v45 = vld [vmem:[#allocation46_spill] sm:$0xff]  ;;  %v6335_v31 = vld [vmem:[#allocation47_spill] sm:$0xff] }
0x1abd   : > { %v2629_v28 = vadd.f32 %v2616_v52, %v2580_v50 }
0x1abe   : > { %v2572_v29 = vpop.permute.xlu1 %2571 }
0x1abf   : > { %v2581_v37 = vmul.f32 %v2572_v29, %v6330_v4 }
0x1ac2   : > { %v2593_v12 = vpop.permute.xlu1 %2592 }
0x1ac3   : > { %v2604_v60 = vsub.f32 %v5915_v57, %v2593_v12  ;;  %v6333_v12 = vld [vmem:[#allocation45_spill] sm:$0xff] }
0x1ac5   : > { %2610 = vperm.xlu1 %4009, %v2604_v60   ;;  %v2872_v60 = vmul.f32 %v5904_v2, %v6333_v12  ;;  %v3165_v2 = vmul.f32 %v5939_v58, %v5675_v49  ;;  %v3271_v12 = vld [vmem:[%s4365_s7 + $0x78] sm:$0xff] }
0x1ac6   : > { %v2597_v24 = vpop.permute.xlu1 %2596 }
0x1ac7   : > { %v2606_v3 = vsub.f32 %v5921_v14, %v2597_v24  ;;  %v2909_v24 = vpop.permute.xlu0 %2908 }
0x1ac9   : > { %2620 = vperm.xlu1 %4009, %v2606_v3  }
0x1acd   : > { %2625 = vperm.xlu1 %4009, %v2607_v44  }
0x1ad1   : > { %4010 = vset.pattern.permute.xlu1 %v6283_v36 }
0x1ad2   : > { %2859 = vperm.xlu1 %4010, %v5780_v5   ;;  %v6326_v5 = vld [vmem:[#allocation52_spill] sm:$0xff] }
0x1ad6   : > { %2864 = vperm.xlu1 %4010, %v6325_v38  }
0x1ada   : > { %2885 = vrot.lane.b32.xlu1 %v2877_v41, %s6251_s20 }
0x1adb   : > { %4011 = vset.pattern.permute.xlu1 %v6287_v6 }
0x1ade   : > { %3178 = vrot.lane.b32.xlu1 %v5870_v1, %s6251_s20  ;;  %v6329_v1 = vld [vmem:[#allocation40_spill] sm:$0xff] }
0x1adf   : > { %v2582_v62 = vmul.f32 %v5882_v13, %v6329_v1  ;;  %v2900_v13 = vsub.f32 %v5865_v55, %v5937_v25  ;;  %v3193_v25 = vsub.f32 %v5865_v55, %v5935_v61  ;;  %v3257_v55 = vld [vmem:[%s4365_s7 + $0x8] sm:$0xff] }
0x1ae2   : > { %3182 = vrot.lane.b32.xlu1 %v3172_v35, %s6251_s20  ;;  %v6334_v35 = vld [vmem:[#allocation48_spill] sm:$0xff] }
0x1ae6   : > { %2889 = vrot.lane.b32.xlu1 %v6326_v5, %s6251_s20  ;;  %v2875_v5 = vmul.f32 %v5910_v21, %v6334_v35 }
0x1afa   : > { %v3422_v61 = vpop.f32.mrb[16].mxu1 }
0x1afb   : > { %v3424_v56 = vpop.f32.mrb[17].mxu1 }
0x1b44   : > { %v2611_v11 = vpop.permute.xlu1 %2610 }
0x1b45   : > { %v2628_v26 = vadd.f32 %v2611_v11, %v2579_v15 }
0x1b47   : > { %v3777_v47 = vpack.c.bf16 %v2629_v28, %v2628_v26 }
0x1b48   : > { %v2621_v9 = vpop.permute.xlu1 %2620 }
0x1b49   : > { %3778 = vmatprep.subr.bf16.mxu0 %v3777_v47  ;;  %v2630_v22 = vadd.f32 %v2621_v9, %v2581_v37  ;;  %v3202_v9 = vpop.permute.xlu0 %3201 }
0x1b4a   : > { %3780 = vmatpush1.bf16.msra.mxu0 %v3779_v54 }
0x1b4c   : > { %v2626_v39 = vpop.permute.xlu1 %2625 }
0x1b4d   : > { %v2631_v16 = vadd.f32 %v2626_v39, %v2582_v62  ;;  %v3168_v39 = vmul.f32 %v5941_v59, %v5693_v34  ;;  %v3264_v34 = vld [vmem:[%s4365_s7 + $0x40] sm:$0xff]  ;;  %v3266_v59 = vld [vmem:[%s4365_s7 + $0x50] sm:$0xff] }
0x1b4f   : > { %v3781_v48 = vpack.c.bf16 %v2631_v16, %v2630_v22  ;;  %v6336_v22 = vld [vmem:[#allocation55_spill] sm:$0xff] }
0x1b51   : > { %3782 = vmatprep.subr.bf16.mxu0 %v3781_v48  ;;  %v2860_v30 = vpop.permute.xlu1 %2859 }
0x1b52   : > { %3784 = vmatpush1.bf16.msra.mxu0 %v3783_v27  ;;  %v2873_v29 = vmul.f32 %v2860_v30, %v6332_v45  ;;  %v3265_v30 = vld [vmem:[%s4365_s7 + $0x48] sm:$0xff] }
0x1b54   : > { %v2922_v44 = vadd.f32 %v2909_v24, %v2873_v29  ;;  %v3270_v29 = vld [vmem:[%s4365_s7 + $0x70] sm:$0xff] }
0x1b55   : > { %v2865_v8 = vpop.permute.xlu1 %2864 }
0x1b56   : > { %v2874_v50 = vmul.f32 %v2865_v8, %v6335_v31  ;;  %v3267_v8 = vld [vmem:[%s4365_s7 + $0x58] sm:$0xff] }
0x1b59   : > { %v2886_v53 = vpop.permute.xlu1 %2885 }
0x1b5a   : > { %v2897_v19 = vsub.f32 %v5915_v57, %v2886_v53 }
0x1b5c   : > { %2903 = vperm.xlu1 %4011, %v2897_v19  }
0x1b5d   : > { %v3179_v63 = vpop.permute.xlu1 %3178 }
0x1b5e   : > { %v3190_v54 = vsub.f32 %v5915_v57, %v3179_v63  ;;  %v3259_v57 = vld [vmem:[%s4365_s7 + $0x18] sm:$0xff] }
0x1b5f   : > { %v3425_v27 = vadd.f32 %v3424_v56, %v3259_v57 }
0x1b61   : > { %v3183_v20 = vpop.permute.xlu1 %3182  ;;  %3590 = vst [vmem:[%s6054_s15 + $0x18] sm:$0xff] %v3425_v27 }
0x1b62   : > { %v3192_v51 = vsub.f32 %v5921_v14, %v3183_v20 }
0x1b65   : > { %v2890_v46 = vpop.permute.xlu1 %2889 }
0x1b66   : > { %v2899_v43 = vsub.f32 %v5921_v14, %v2890_v46  ;;  %v3345_v14 = vpop.f32.mrb[16].mxu0 }
0x1b67   : > { %v3347_v10 = vpop.f32.mrb[17].mxu0 }
0x1b68   : > { %2913 = vperm.xlu1 %4011, %v2899_v43   ;;  %v3348_v18 = vadd.f32 %v3347_v10, %v3257_v55  ;;  %v3263_v10 = vld [vmem:[%s4365_s7 + $0x38] sm:$0xff] }
0x1b6a   : > { %3588 = vst [vmem:[%s6054_s15 + $0x8] sm:$0xff] %v3348_v18 }
0x1b6c   : > { %2918 = vperm.xlu1 %4011, %v2900_v13   ;;  %v3260_v13 = vld [vmem:[%s4365_s7 + $0x20] sm:$0xff] }
0x1b70   : > { %4012 = vset.pattern.permute.xlu1 %v6283_v36  ;;  %v3223_v36 = vld [vmem:[%s6154_s3 + $0x8] sm:$0xff] }
0x1b71   : > { %3152 = vperm.xlu1 %4012, %v5856_v33   ;;  %3731 = vmatmul.mubr.msk.f32.gmra.mrb[18].mxu0 %vm3272_vm6, %v3223_v36  ;;  %v3258_v33 = vld [vmem:[%s4365_s7 + $0x10] sm:$0xff] }
0x1b72   : > { %3733 = vmatmul.mubr.msk.f32.gmra.mrb[18].mxu1 %vm3272_vm6, %v3223_v36  ;;  %3497 = vmatprep.mubr.f32.mxu0 %v6324_v32  ;;  %v3423_v7 = vadd.f32 %v3422_v61, %v3258_v33  ;;  %v3268_v33 = vld [vmem:[%s4365_s7 + $0x60] sm:$0xff] }
0x1b73   : > { %3574 = vmatprep.mubr.f32.mxu1 %v6324_v32 }
0x1b74   : > { %3589 = vst [vmem:[%s6054_s15 + $0x10] sm:$0xff] %v3423_v7  ;;  %v3262_v7 = vld [vmem:[%s4365_s7 + $0x30] sm:$0xff] }
0x1b75   : > { %3157 = vperm.xlu1 %4012, %v3143_v0   ;;  %3734 = vmatmul.mubr.msk.f32.vlgmr.msra.gmra.mrb[20].mxu0 %vm3272_vm6, %v5995_v23 }
0x1b76   : > { %3503 = vmatprep.mubr.f32.mxu0 %v6324_v32 }
0x1b79   : > { %4014 = vset.pattern.permute.xlu1 %v6287_v6  ;;  %3735 = vmatmul.mubr.msk.f32.gmra.mrb[22].mxu0 %vm3272_vm6, %v3223_v36  ;;  %v3256_v6 = vld [vmem:[%s4365_s7] sm:$0xff] }
0x1b7a   : > { %3196 = vperm.xlu1 %4014, %v3190_v54   ;;  %v3346_v40 = vadd.f32 %v3345_v14, %v3256_v6  ;;  %v3269_v14 = vld [vmem:[%s4365_s7 + $0x68] sm:$0xff] }
0x1b7c   : > { %3587 = vst [vmem:[%s6054_s15] sm:$0xff] %v3346_v40 }
0x1b7e   : > { %3206 = vperm.xlu1 %4014, %v3192_v51  }
0x1b82   : > { %3211 = vperm.xlu1 %4014, %v3193_v25   ;;  %v3261_v25 = vld [vmem:[%s4365_s7 + $0x28] sm:$0xff]  ;;  %s4193_s7 = smov [#allocation8]  }
0x1b83   : > { %s4112_s17 = sshll.u32 %s4193_s7, 4  ;;  %s4113_s17 = int_to_ptr.vmem [resolvable:$false] %s4112_s17 }
0x1b84   : > { %s4114_s0 = scalar_lea.vmem %s4113_s17, 4096  ;;  %p4115_p10 = scmp.lt.s32.totalorder %s6105_s5, %s4113_s17 }
0x1b85   : > { %p4116_p1 = scmp.lt.s32.totalorder %s4114_s0, %s4108_s1 }
0x1b87   : > { %p4117_p4 = por %p4116_p1, %p4115_p10 }
0x1b89   : > { %p4118_p11 = pnand %p4117_p4, %p4111_p9 }
0x1bdb   : > { %v2904_v3 = vpop.permute.xlu1 %2903 }
0x1bdc   : > { %v2921_v38 = vadd.f32 %v2904_v3, %v2872_v60 }
0x1bde   : > { %v3787_v41 = vpack.c.bf16 %v2922_v44, %v2921_v38 }
0x1be7   : > { %v2914_v0 = vpop.permute.xlu1 %2913 }
0x1be8   : > { %v2923_v15 = vadd.f32 %v2914_v0, %v2874_v50 }
0x1beb   : > { %v2919_v42 = vpop.permute.xlu1 %2918 }
0x1bec   : > { %v2924_v52 = vadd.f32 %v2919_v42, %v2875_v5 }
0x1bee   : > { %v3791_v11 = vpack.c.bf16 %v2924_v52, %v2923_v15 }
0x1bf0   : > { %v3153_v28 = vpop.permute.xlu1 %3152 }
0x1bf1   : > { %v3166_v47 = vmul.f32 %v3153_v28, %v5673_v17 }
0x1bf3   : > { %v3215_v62 = vadd.f32 %v3202_v9, %v3166_v47 }
0x1bf4   : > { %v3158_v26 = vpop.permute.xlu1 %3157 }
0x1bf5   : > { %v3167_v17 = vmul.f32 %v3158_v26, %v6336_v22 }
0x1bf9   : > { %v3197_v1 = vpop.permute.xlu1 %3196 }
0x1bfa   : > { %v3214_v4 = vadd.f32 %v3197_v1, %v3165_v2 }
0x1bfc   : > { %v3785_v37 = vpack.c.bf16 %v3215_v62, %v3214_v4 }
0x1bfd   : > { %v3207_v21 = vpop.permute.xlu1 %3206 }
0x1bfe   : > { %3786 = vmatprep.subr.bf16.mxu1 %v3785_v37  ;;  %v3216_v48 = vadd.f32 %v3207_v21, %v3167_v17 }
0x1bff   : > { %3788 = vmatpush1.bf16.msra.mxu1 %v3787_v41 }
0x1c01   : > { %v3212_v16 = vpop.permute.xlu1 %3211 }
0x1c02   : > { %v3217_v49 = vadd.f32 %v3212_v16, %v3168_v39 }
0x1c04   : > { %v3789_v58 = vpack.c.bf16 %v3217_v49, %v3216_v48 }
0x1c06   : > { %3790 = vmatprep.subr.bf16.mxu1 %v3789_v58 }
0x1c07   : > { %3792 = vmatpush1.bf16.msra.mxu1 %v3791_v11 }
0x1c0a   : > { %3736 = vmatmul.mubr.msk.f32.vlgmr.msra.gmra.mrb[20].mxu1 %vm3272_vm6, %v5995_v23 }
0x1c0b   : > { %3580 = vmatprep.mubr.f32.mxu1 %v6324_v32 }
0x1c0e   : > { %3737 = vmatmul.mubr.msk.f32.gmra.mrb[22].mxu1 %vm3272_vm6, %v3223_v36 }
0x1c44   : > { %v3351_v53 = vpop.f32.mrb[18].mxu0 }
0x1c45   : > { %v3428_v19 = vpop.f32.mrb[18].mxu1  ;;  %v3352_v63 = vadd.f32 %v3351_v53, %v3264_v34  ;;  %v3353_v23 = vpop.f32.mrb[19].mxu0 }
0x1c46   : > { %v3429_v20 = vadd.f32 %v3428_v19, %v3266_v59  ;;  %v3430_v46 = vpop.f32.mrb[19].mxu1  ;;  %v3354_v32 = vadd.f32 %v3353_v23, %v3265_v30 }
0x1c47   : > { %v3431_v43 = vadd.f32 %v3430_v46, %v3267_v8  ;;  %3595 = vst [vmem:[%s6054_s15 + $0x40] sm:$0xff] %v3352_v63 }
0x1c48   : > { %3597 = vst [vmem:[%s6054_s15 + $0x50] sm:$0xff] %v3429_v20  ;;  %3596 = vst [vmem:[%s6054_s15 + $0x48] sm:$0xff] %v3354_v32  ;;  %v3499_v54 = vpop.f32.mrb[20].mxu0 }
0x1c49   : > { %3598 = vst [vmem:[%s6054_s15 + $0x58] sm:$0xff] %v3431_v43  ;;  %v3500_v51 = vadd.f32 %v3499_v54, %v3260_v13  ;;  %v3501_v36 = vpop.f32.mrb[21].mxu0 }
0x1c4a   : > { %v3502_v6 = vadd.f32 %v3501_v36, %v3261_v25 }
0x1c4b   : > { %3591 = vst [vmem:[%s6054_s15 + $0x20] sm:$0xff] %v3500_v51 }
0x1c4c   : > { %3592 = vst [vmem:[%s6054_s15 + $0x28] sm:$0xff] %v3502_v6  ;;  %v3505_v55 = vpop.f32.mrb[22].mxu0 }
0x1c4d   : > { %v3506_v57 = vadd.f32 %v3505_v55, %v3268_v33  ;;  %v3507_v61 = vpop.f32.mrb[23].mxu0 }
0x1c4e   : > { %v3508_v40 = vadd.f32 %v3507_v61, %v3269_v14 }
0x1c4f   : > { %3599 = vst [vmem:[%s6054_s15 + $0x60] sm:$0xff] %v3506_v57 }
0x1c50   : > { %3600 = vst [vmem:[%s6054_s15 + $0x68] sm:$0xff] %v3508_v40 }
0x1cdd   : > { %v3576_v56 = vpop.f32.mrb[20].mxu1 }
0x1cde   : > { %v3577_v18 = vadd.f32 %v3576_v56, %v3262_v7  ;;  %v3578_v27 = vpop.f32.mrb[21].mxu1 }
0x1cdf   : > { %v3579_v45 = vadd.f32 %v3578_v27, %v3263_v10 }
0x1ce0   : > { %3593 = vst [vmem:[%s6054_s15 + $0x30] sm:$0xff] %v3577_v18 }
0x1ce1   : > { %3594 = vst [vmem:[%s6054_s15 + $0x38] sm:$0xff] %v3579_v45  ;;  %v3582_v60 = vpop.f32.mrb[22].mxu1 }
0x1ce2   : > { %v3583_v24 = vadd.f32 %v3582_v60, %v3270_v29  ;;  %v3584_v3 = vpop.f32.mrb[23].mxu1 }
0x1ce3   : > { %v3585_v44 = vadd.f32 %v3584_v3, %v3271_v12 }
0x1ce4   : > { %3601 = vst [vmem:[%s6054_s15 + $0x70] sm:$0xff] %v3583_v24 }
0x1ce5   : > { %3602 = vst [vmem:[%s6054_s15 + $0x78] sm:$0xff] %v3585_v44 }
0x1ce6   : > { %4121 = shalt.err (!%p4118_p11)
}
0x1ce7   : > { %s4122_s2 = scalar_lea.hbm %s6103_s29, 2048  ;;  %s4126_s28 = scalar_lea.hbm %s6157_s6, 4096 }
0x1ce8   : > { %p4123_p0 = scmp.ne.s32.totalorder %s6103_s29, %s4122_s2  ;;  %p4127_p6 = scmp.lt.u32.totalorder %s6103_s29, %s6157_s6 }
0x1ce9   : > { %p4128_p3 = scmp.lt.u32.totalorder %s4126_s28, %s4122_s2  ;;  %p4130_p5 = scmp.lt.u32.totalorder %s4122_s2, %s6103_s29 }
0x1cea   : > { %p4124_p2 = pnand %p4123_p0, %p6337_p12 }
0x1ceb   : > { %p4129_p13 = por %p4128_p3, %p4127_p6 }
0x1cec   : > { %p4125_p7 = pneg %p4124_p2 }
0x1ced   : > { %p4131_p8 = por %p4130_p5, %p4129_p13 }
0x1cef   : > { %p4132_p9 = pnand %p4131_p8, %p4125_p7 }
0x1cf1   : > { %4135 = shalt.err (!%p4132_p9)
}
0x1cf2   : > { %s4194_s16 = smov 1024   ;;  %s4195_s19 = smov 2048  }
0x1cf3   : > { %s4196_s15 = smov 64  }
0x1cf4   : > { %3895 = dma.vmem_to_hbm [thread:$0]  (%p6337_p12), %s6105_s5, 2048, %s6103_s29, %s3604_s25, %s4194_s16, %s4195_s19, %s4196_s15  }
0x1cf5 PF: > { %s3632_s18 = sand.u32 1, %s4166_s21   ;;  %p6338_p10 = scmp.ne.s32.totalorder %s6225_s10, 0 }
0x1cf6   : > { %p6339_p1 = scmp.ge.s32.totalorder %s4178_s24, 2  ;;  %s3633_s11 = scalar_lea.sflag [#allocation5], %s3632_s18 }
0x1cf8   : > { %p3906_p4 = pnand %p6339_p1, %p6338_p10 }
0x1cfa   : > { %4161 = dma.done.wait (!%p3906_p4), %s3633_s11, 2048  }
0x1cfb   : > { %4163 = vsyncadd (!%p3906_p4), %s3633_s11, 4294965248  ;;  %p20_p11 = scmp.ge.s32.totalorder %s4257_s27, 4   ;;  %s6340_s21 = smov %s4170_s22 }
0x1cfc   : > { %s6341_s22 = smov %s4174_s23  ;;  %s6342_s23 = smov %s4269_s30 }
0x1cfd   : > { %s6343_s24 = smov %s4257_s27  ;;  %22 = sbr.rel (!%p20_p11) target bundleno = 11 (0xb), region = 101 }
0x1d04   :  { %3638 = vsyncpa [#allocation4], 1 }
0x1d05   :  { %3640 = vsyncpa [#allocation4 + $0x1], 1 }
0x1d06   :  { %3641 = vsyncpa [#allocation5], 1 }
0x1d07   :  { %3643 = vsyncpa [#allocation5 + $0x1], 1 }
0x1d08   :  { %3644 = vsyncpa [#allocation6], 1 }
0x1d09   :  { %3646 = vsyncpa [#allocation6 + $0x1], 1 }

</bundles_post_ra>
